<compile_context>
chip_gen: v5e
topology: v5e:2x2
jax: 0.10.0
libtpu: 0.0.40
codegen_flags: <defaults>
</compile_context>

<pallas_src>
import jax
import jax.numpy as jnp
from jax import lax
from jax.experimental import pallas as pl
from jax.experimental.pallas import tpu as pltpu


def _structured_dist_kernel(logits_ref, targets_ref,
                            log_probs_ref, log_partitions_ref, max_ref,
                            marginals_ref, argmax_ref):
    """Grid = (batch tiles, time tiles); time (reduction) axis is last/innermost.

    Per-tile work: softmax marginals, per-position argmax indices, and running
    f32 accumulation of log-partition / target-score / max sums over time.
    The scalar outputs are resident in VMEM across the time axis (their
    BlockSpec index map ignores `t`), so they act as the accumulators.
    """
    t = pl.program_id(1)
    nt = pl.num_programs(1)

    @pl.when(t == 0)
    def _init():
        log_probs_ref[...] = jnp.zeros_like(log_probs_ref)       # holds score sum
        log_partitions_ref[...] = jnp.zeros_like(log_partitions_ref)
        max_ref[...] = jnp.zeros_like(max_ref)

    x = logits_ref[...].astype(jnp.float32)          # (Bb, Tt, N), cast in-kernel
    tgt = targets_ref[...]                           # (Bb, Tt) int32
    Bb, Tt, N = x.shape

    # Stable logsumexp pieces.
    m = jnp.max(x, axis=-1, keepdims=True)           # (Bb, Tt, 1)
    e = jnp.exp(x - m)                                # (Bb, Tt, N)  (EUP)
    s = jnp.sum(e, axis=-1, keepdims=True)            # (Bb, Tt, 1)  (XLU)
    lse = m + jnp.log(s)                               # (Bb, Tt, 1)

    # marginals = softmax over N; narrow only at the store.
    marginals_ref[...] = (e * pl.reciprocal(s, approx=True)).astype(marginals_ref.dtype)

    # Per-position argmax as indices (ties -> first/smallest index, like jnp.argmax).
    iota_n = lax.broadcasted_iota(jnp.int32, (Bb, Tt, N), 2)
    argmax_ref[...] = jnp.min(jnp.where(x == m, iota_n, N), axis=-1).astype(jnp.int32)

    # log_scores gather via fused select-and-sum (no separately-kept one-hot).
    tile_scores = jnp.sum(jnp.where(iota_n == tgt[:, :, None], x, 0.0),
                          axis=2, keepdims=True)      # (Bb, Tt, 1)

    # Accumulate the time reductions directly into the resident output blocks.
    log_partitions_ref[...] += jnp.sum(lse, axis=1)          # (Bb, 1)
    log_probs_ref[...] += jnp.sum(tile_scores, axis=1)        # (Bb, 1)  score sum
    max_ref[...] += jnp.sum(m, axis=1)                        # (Bb, 1)

    @pl.when(t == nt - 1)
    def _finalize():
        log_probs_ref[...] = log_probs_ref[...] - log_partitions_ref[...]


def _pick_block(dim: int, quantum: int, max_block: int) -> int:
    """Largest block <= max_block that divides dim and is a multiple of quantum.
    Falls back to the full dim (full-extent blocks are exempt from (8,128))."""
    if dim <= max_block:
        return dim
    b = (max_block // quantum) * quantum
    while b >= quantum:
        if dim % b == 0:
            return b
        b -= quantum
    return dim


class StructuredDistribution:
    """JAX counterpart of torchlatent's StructuredDistribution; concrete fields
    are produced by one tiled Pallas kernel call."""

    def __init__(self, logits: jnp.ndarray, targets: jnp.ndarray,
                 *, block_t: int = None, block_b: int = None,
                 marginals_dtype=None):
        logits = jnp.asarray(logits)
        targets = jnp.asarray(targets)
        if targets.dtype != jnp.int32:
            targets = targets.astype(jnp.int32)
        self.logits = logits
        B, T, N = logits.shape
        marg_dtype = marginals_dtype if marginals_dtype is not None else logits.dtype

        # --- tile selection (sized against v7x's 64 MiB VMEM / 32 MiB scoped) ---
        if block_b is not None:
            Bb = block_b
        else:
            Bb = 8 if (B > 8 and B % 8 == 0) else B
        if not (Bb == B or (Bb % 8 == 0 and B % Bb == 0)):
            Bb = B

        if block_t is not None:
            Tt = block_t
        else:
            # Target <= ~2 MiB per f32 tile-sized buffer: Bb*Tt*N*4 <= 2 MiB.
            # (Kernel keeps a handful of such temporaries live + double-buffered
            #  I/O, comfortably inside the 32 MiB scoped VMEM request below.)
            budget = max(128, (((1 << 21) // max(1, Bb * N * 4)) // 128) * 128)
            Tt = _pick_block(T, 128, budget)
        if not (Tt == T or (Tt % 128 == 0 and T % Tt == 0)):
            Tt = T

        grid = (B // Bb, T // Tt)

        # Advisory cost estimate for the XLA scheduler (memory-bound kernel).
        elems = B * T * N
        cost = pl.CostEstimate(
            flops=8 * elems,
            transcendentals=elems + 2 * B * T,           # exp per elem + log/recip per pos
            bytes_accessed=(logits.size * logits.dtype.itemsize   # logits in
                            + targets.size * 4                     # targets in
                            + elems * jnp.dtype(marg_dtype).itemsize  # marginals out
                            + B * T * 4                            # argmax idx out
                            + 3 * B * 4),                          # scalars out
        )

        scalar_spec = pl.BlockSpec((Bb, 1), lambda b, t: (b, 0))
        outs = pl.pallas_call(
            _structured_dist_kernel,
            out_shape=(
                jax.ShapeDtypeStruct((B, 1), jnp.float32),     # log_probs
                jax.ShapeDtypeStruct((B, 1), jnp.float32),     # log_partitions
                jax.ShapeDtypeStruct((B, 1), jnp.float32),     # max
                jax.ShapeDtypeStruct((B, T, N), marg_dtype),   # marginals
                jax.ShapeDtypeStruct((B, T), jnp.int32),       # argmax indices
            ),
            grid_spec=pltpu.PrefetchScalarGridSpec(
                num_scalar_prefetch=0,
                grid=grid,
                in_specs=[
                    pl.BlockSpec((Bb, Tt, N), lambda b, t: (b, t, 0)),   # logits
                    pl.BlockSpec((Bb, Tt), lambda b, t: (b, t)),          # targets
                ],
                out_specs=(
                    scalar_spec,                                          # log_probs
                    scalar_spec,                                          # log_partitions
                    scalar_spec,                                          # max
                    pl.BlockSpec((Bb, Tt, N), lambda b, t: (b, t, 0)),   # marginals
                    pl.BlockSpec((Bb, Tt), lambda b, t: (b, t)),          # argmax idx
                ),
            ),
            compiler_params=pltpu.CompilerParams(
                dimension_semantics=("parallel", "arbitrary"),
                vmem_limit_bytes=32 * 1024 * 1024,
            ),
            cost_estimate=cost,
        )(logits, targets)

        (self._log_probs, self._log_partitions, self._max,
         self._marginals, self._argmax_idx) = outs

    def log_probs(self):
        return self._log_probs[:, 0]

    @property
    def log_partitions(self):
        return self._log_partitions[:, 0]

    @property
    def marginals(self):
        return self._marginals

    @property
    def max(self):
        return self._max[:, 0]

    @property
    def argmax_indices(self):
        return self._argmax_idx

    @property
    def argmax(self):
        # One-hot d(max)/d(logits), built lazily from indices (avoids a full
        # [B,T,N] writeback inside the memory-bound kernel).
        N = self.logits.shape[-1]
        return (self._argmax_idx[..., None] == jnp.arange(N, dtype=jnp.int32)
                ).astype(self.logits.dtype)


class StructuredDecoder:
    """JAX/Pallas counterpart of torchlatent's StructuredDecoder.
    No learnable parameters (matching the PyTorch __init__)."""

    def __init__(self, *, num_targets: int) -> None:
        self.num_targets = num_targets

    def reset_parameters(self) -> None:
        pass

    def extra_repr(self) -> str:
        return f"num_targets={self.num_targets}"

    def __call__(self, logits: jnp.ndarray, targets: jnp.ndarray,
                 **kwargs) -> StructuredDistribution:
        assert logits.shape[-1] == self.num_targets
        return StructuredDistribution(logits, targets, **kwargs)


if __name__ == "__main__":
    key = jax.random.PRNGKey(0)
    B, T, N = 2, 256, 32
    k1, k2 = jax.random.split(key)
    logits = jax.random.normal(k1, (B, T, N), dtype=jnp.float32)
    targets = jax.random.randint(k2, (B, T), 0, N, dtype=jnp.int32)

    decoder = StructuredDecoder(num_targets=N)
    # block_t=128 exercises the multi-tile time reduction (grid = (1, 2)).
    dist = decoder(logits, targets, block_t=128)

    log_probs = jax.block_until_ready(dist.log_probs())
    log_z = jax.block_until_ready(dist.log_partitions)
    marg = jax.block_until_ready(dist.marginals)
    mx = jax.block_until_ready(dist.max)
    amx_idx = jax.block_until_ready(dist.argmax_indices)
    amx = jax.block_until_ready(dist.argmax)

    # Pure-JAX reference check.
    ref_lse = jax.nn.logsumexp(logits, axis=-1)                     # [B, T]
    ref_log_z = ref_lse.sum(axis=1)
    ref_scores = jnp.take_along_axis(logits, targets[..., None], axis=-1)[..., 0].sum(axis=1)
    ref_log_probs = ref_scores - ref_log_z
    ref_marg = jax.nn.softmax(logits, axis=-1)
    ref_max = logits.max(axis=-1).sum(axis=1)
    ref_idx = jnp.argmax(logits, axis=-1).astype(jnp.int32)

    assert jnp.allclose(log_z, ref_log_z, rtol=1e-5, atol=1e-2), "log_partitions mismatch"
    assert jnp.allclose(log_probs, ref_log_probs, rtol=1e-5, atol=1e-2), "log_probs mismatch"
    assert jnp.allclose(marg, ref_marg, atol=5e-3), "marginals mismatch"
    assert jnp.allclose(mx, ref_max, rtol=1e-5, atol=1e-2), "max mismatch"
    assert jnp.array_equal(amx_idx, ref_idx), "argmax indices mismatch"
    assert amx.shape == (B, T, N)
    assert jnp.allclose(amx.sum(-1), jnp.ones((B, T), dtype=amx.dtype)), "argmax not one-hot"

    print("KERNEL_OK")
</pallas_src>

<mosaic_0001>
module attributes {stable_mosaic.version = 11 : i64} {
  func.func @_structured_dist_kernel(%arg0: i32, %arg1: i32, %arg2: memref<2x128x32xf32, #tpu.memory_space<vmem>>, %arg3: memref<2x128xi32, #tpu.memory_space<vmem>>, %arg4: memref<2x1xf32, #tpu.memory_space<vmem>>, %arg5: memref<2x1xf32, #tpu.memory_space<vmem>>, %arg6: memref<2x1xf32, #tpu.memory_space<vmem>>, %arg7: memref<2x128x32xf32, #tpu.memory_space<vmem>>, %arg8: memref<2x128xi32, #tpu.memory_space<vmem>>) attributes {dimension_semantics = [#tpu.dimension_semantics<parallel>, #tpu.dimension_semantics<arbitrary>], iteration_bounds = array<i64: 1, 2>, scalar_prefetch = 0 : i64, scratch_operands = 0 : i64, tpu.core_type = #tpu.core_type<tc>, window_params = [{transform_indices = @transform_0, window_bounds = array<i64: 2, 128, 32>}, {transform_indices = @transform_1, window_bounds = array<i64: 2, 128>}, {transform_indices = @transform_2, window_bounds = array<i64: 2, 1>}, {transform_indices = @transform_3, window_bounds = array<i64: 2, 1>}, {transform_indices = @transform_4, window_bounds = array<i64: 2, 1>}, {transform_indices = @transform_5, window_bounds = array<i64: 2, 128, 32>}, {transform_indices = @transform_6, window_bounds = array<i64: 2, 128>}]} {
    %c0_i32 = arith.constant 0 : i32
    %0 = arith.cmpi eq, %arg1, %c0_i32 : i32
    %1 = arith.extui %0 : i1 to i32
    %c0_i32_0 = arith.constant 0 : i32
    %2 = arith.cmpi ne, %1, %c0_i32_0 : i32
    scf.if %2 {
      %cst_30 = arith.constant 0.000000e+00 : f32
      %47 = vector.broadcast %cst_30 : f32 to vector<2x1xf32>
      %c0_31 = arith.constant 0 : index
      %c0_32 = arith.constant 0 : index
      %48 = vector.load %arg4[%c0_31, %c0_32] : memref<2x1xf32, #tpu.memory_space<vmem>>, vector<2x1xf32>
      tpu.vector_store %arg4[%c0_31, %c0_32], %47 {strides = array<i32>} : memref<2x1xf32, #tpu.memory_space<vmem>>, vector<2x1xf32>,
      %cst_33 = arith.constant 0.000000e+00 : f32
      %49 = vector.broadcast %cst_33 : f32 to vector<2x1xf32>
      %c0_34 = arith.constant 0 : index
      %c0_35 = arith.constant 0 : index
      %50 = vector.load %arg5[%c0_34, %c0_35] : memref<2x1xf32, #tpu.memory_space<vmem>>, vector<2x1xf32>
      tpu.vector_store %arg5[%c0_34, %c0_35], %49 {strides = array<i32>} : memref<2x1xf32, #tpu.memory_space<vmem>>, vector<2x1xf32>,
      %cst_36 = arith.constant 0.000000e+00 : f32
      %51 = vector.broadcast %cst_36 : f32 to vector<2x1xf32>
      %c0_37 = arith.constant 0 : index
      %c0_38 = arith.constant 0 : index
      %52 = vector.load %arg6[%c0_37, %c0_38] : memref<2x1xf32, #tpu.memory_space<vmem>>, vector<2x1xf32>
      tpu.vector_store %arg6[%c0_37, %c0_38], %51 {strides = array<i32>} : memref<2x1xf32, #tpu.memory_space<vmem>>, vector<2x1xf32>,
    } else {
    }
    %c0 = arith.constant 0 : index
    %c0_1 = arith.constant 0 : index
    %c0_2 = arith.constant 0 : index
    %3 = vector.load %arg2[%c0, %c0_1, %c0_2] : memref<2x128x32xf32, #tpu.memory_space<vmem>>, vector<2x128x32xf32>
    %c0_3 = arith.constant 0 : index
    %c0_4 = arith.constant 0 : index
    %4 = vector.load %arg3[%c0_3, %c0_4] : memref<2x128xi32, #tpu.memory_space<vmem>>, vector<2x128xi32>
    %cst = arith.constant dense<0xFF800000> : vector<2x128xf32>
    %5 = vector.multi_reduction <maximumf>, %3, %cst [2] : vector<2x128x32xf32> to vector<2x128xf32>
    %6 = vector.shape_cast %5 : vector<2x128xf32> to vector<2x128x1xf32>
    %7 = vector.broadcast %6 : vector<2x128x1xf32> to vector<2x128x32xf32>
    %8 = arith.subf %3, %7 : vector<2x128x32xf32>
    %9 = math.exp %8 : vector<2x128x32xf32>
    %cst_5 = arith.constant dense<0.000000e+00> : vector<2x128xf32>
    %10 = vector.multi_reduction <add>, %9, %cst_5 [2] : vector<2x128x32xf32> to vector<2x128xf32>
    %11 = vector.shape_cast %10 : vector<2x128xf32> to vector<2x128x1xf32>
    %12 = math.log %11 : vector<2x128x1xf32>
    %13 = arith.addf %6, %12 : vector<2x128x1xf32>
    %14 = tpu.reciprocal %11 {approx = true} : vector<2x128x1xf32> -> vector<2x128x1xf32>
    %15 = vector.broadcast %14 : vector<2x128x1xf32> to vector<2x128x32xf32>
    %16 = arith.mulf %9, %15 : vector<2x128x32xf32>
    %c0_6 = arith.constant 0 : index
    %c0_7 = arith.constant 0 : index
    %c0_8 = arith.constant 0 : index
    %17 = vector.load %arg7[%c0_6, %c0_7, %c0_8] : memref<2x128x32xf32, #tpu.memory_space<vmem>>, vector<2x128x32xf32>
    tpu.vector_store %arg7[%c0_6, %c0_7, %c0_8], %16 {strides = array<i32>} : memref<2x128x32xf32, #tpu.memory_space<vmem>>, vector<2x128x32xf32>,
    %18 = tpu.iota {dimensions = array<i32: 2>} : vector<2x128x32xi32>
    %19 = vector.broadcast %6 : vector<2x128x1xf32> to vector<2x128x32xf32>
    %20 = arith.cmpf oeq, %3, %19 : vector<2x128x32xf32>
    %c32_i32 = arith.constant 32 : i32
    %21 = vector.broadcast %c32_i32 : i32 to vector<2x128x32xi32>
    %22 = arith.select %20, %18, %21 : vector<2x128x32xi1>, vector<2x128x32xi32>
    %cst_9 = arith.constant dense<2147483647> : vector<2x128xi32>
    %23 = vector.multi_reduction <minsi>, %22, %cst_9 [2] : vector<2x128x32xi32> to vector<2x128xi32>
    %c0_10 = arith.constant 0 : index
    %c0_11 = arith.constant 0 : index
    %24 = vector.load %arg8[%c0_10, %c0_11] : memref<2x128xi32, #tpu.memory_space<vmem>>, vector<2x128xi32>
    tpu.vector_store %arg8[%c0_10, %c0_11], %23 {strides = array<i32>} : memref<2x128xi32, #tpu.memory_space<vmem>>, vector<2x128xi32>,
    %25 = vector.shape_cast %4 : vector<2x128xi32> to vector<2x128x1xi32>
    %26 = vector.broadcast %25 : vector<2x128x1xi32> to vector<2x128x32xi32>
    %27 = arith.cmpi eq, %18, %26 : vector<2x128x32xi32>
    %cst_12 = arith.constant 0.000000e+00 : f32
    %28 = vector.broadcast %cst_12 : f32 to vector<2x128x32xf32>
    %29 = arith.select %27, %3, %28 : vector<2x128x32xi1>, vector<2x128x32xf32>
    %cst_13 = arith.constant dense<0.000000e+00> : vector<2x128xf32>
    %30 = vector.multi_reduction <add>, %29, %cst_13 [2] : vector<2x128x32xf32> to vector<2x128xf32>
    %31 = vector.shape_cast %30 : vector<2x128xf32> to vector<2x128x1xf32>
    %c0_14 = arith.constant 0 : index
    %c0_15 = arith.constant 0 : index
    %32 = vector.load %arg5[%c0_14, %c0_15] : memref<2x1xf32, #tpu.memory_space<vmem>>, vector<2x1xf32>
    %cst_16 = arith.constant dense<0.000000e+00> : vector<2x1xf32>
    %33 = vector.multi_reduction <add>, %13, %cst_16 [1] : vector<2x128x1xf32> to vector<2x1xf32>
    %34 = arith.addf %32, %33 : vector<2x1xf32>
    %c0_17 = arith.constant 0 : index
    %c0_18 = arith.constant 0 : index
    %35 = vector.load %arg5[%c0_17, %c0_18] : memref<2x1xf32, #tpu.memory_space<vmem>>, vector<2x1xf32>
    tpu.vector_store %arg5[%c0_17, %c0_18], %34 {strides = array<i32>} : memref<2x1xf32, #tpu.memory_space<vmem>>, vector<2x1xf32>,
    %c0_19 = arith.constant 0 : index
    %c0_20 = arith.constant 0 : index
    %36 = vector.load %arg4[%c0_19, %c0_20] : memref<2x1xf32, #tpu.memory_space<vmem>>, vector<2x1xf32>
    %cst_21 = arith.constant dense<0.000000e+00> : vector<2x1xf32>
    %37 = vector.multi_reduction <add>, %31, %cst_21 [1] : vector<2x128x1xf32> to vector<2x1xf32>
    %38 = arith.addf %36, %37 : vector<2x1xf32>
    %c0_22 = arith.constant 0 : index
    %c0_23 = arith.constant 0 : index
    %39 = vector.load %arg4[%c0_22, %c0_23] : memref<2x1xf32, #tpu.memory_space<vmem>>, vector<2x1xf32>
    tpu.vector_store %arg4[%c0_22, %c0_23], %38 {strides = array<i32>} : memref<2x1xf32, #tpu.memory_space<vmem>>, vector<2x1xf32>,
    %c0_24 = arith.constant 0 : index
    %c0_25 = arith.constant 0 : index
    %40 = vector.load %arg6[%c0_24, %c0_25] : memref<2x1xf32, #tpu.memory_space<vmem>>, vector<2x1xf32>
    %cst_26 = arith.constant dense<0.000000e+00> : vector<2x1xf32>
    %41 = vector.multi_reduction <add>, %6, %cst_26 [1] : vector<2x128x1xf32> to vector<2x1xf32>
    %42 = arith.addf %40, %41 : vector<2x1xf32>
    %c0_27 = arith.constant 0 : index
    %c0_28 = arith.constant 0 : index
    %43 = vector.load %arg6[%c0_27, %c0_28] : memref<2x1xf32, #tpu.memory_space<vmem>>, vector<2x1xf32>
    tpu.vector_store %arg6[%c0_27, %c0_28], %42 {strides = array<i32>} : memref<2x1xf32, #tpu.memory_space<vmem>>, vector<2x1xf32>,
    %c1_i32 = arith.constant 1 : i32
    %44 = arith.cmpi eq, %arg1, %c1_i32 : i32
    %45 = arith.extui %44 : i1 to i32
    %c0_i32_29 = arith.constant 0 : i32
    %46 = arith.cmpi ne, %45, %c0_i32_29 : i32
    scf.if %46 {
      %c0_30 = arith.constant 0 : index
      %c0_31 = arith.constant 0 : index
      %47 = vector.load %arg4[%c0_30, %c0_31] : memref<2x1xf32, #tpu.memory_space<vmem>>, vector<2x1xf32>
      %c0_32 = arith.constant 0 : index
      %c0_33 = arith.constant 0 : index
      %48 = vector.load %arg5[%c0_32, %c0_33] : memref<2x1xf32, #tpu.memory_space<vmem>>, vector<2x1xf32>
      %49 = arith.subf %47, %48 : vector<2x1xf32>
      %c0_34 = arith.constant 0 : index
      %c0_35 = arith.constant 0 : index
      %50 = vector.load %arg4[%c0_34, %c0_35] : memref<2x1xf32, #tpu.memory_space<vmem>>, vector<2x1xf32>
      tpu.vector_store %arg4[%c0_34, %c0_35], %49 {strides = array<i32>} : memref<2x1xf32, #tpu.memory_space<vmem>>, vector<2x1xf32>,
    } else {
    }
    return
  }
  func.func @transform_0(%arg0: i32, %arg1: i32) -> (i32, i32, i32) {
    %c0_i32 = arith.constant 0 : i32
    %c0_i32_0 = arith.constant 0 : i32
    return %arg0, %arg1, %c0_i32 : i32, i32, i32
  }
  func.func @transform_1(%arg0: i32, %arg1: i32) -> (i32, i32) {
    %c0_i32 = arith.constant 0 : i32
    return %arg0, %arg1 : i32, i32
  }
  func.func @transform_2(%arg0: i32, %arg1: i32) -> (i32, i32) {
    %c0_i32 = arith.constant 0 : i32
    %c0_i32_0 = arith.constant 0 : i32
    return %arg0, %c0_i32 : i32, i32
  }
  func.func @transform_3(%arg0: i32, %arg1: i32) -> (i32, i32) {
    %c0_i32 = arith.constant 0 : i32
    %c0_i32_0 = arith.constant 0 : i32
    return %arg0, %c0_i32 : i32, i32
  }
  func.func @transform_4(%arg0: i32, %arg1: i32) -> (i32, i32) {
    %c0_i32 = arith.constant 0 : i32
    %c0_i32_0 = arith.constant 0 : i32
    return %arg0, %c0_i32 : i32, i32
  }
  func.func @transform_5(%arg0: i32, %arg1: i32) -> (i32, i32, i32) {
    %c0_i32 = arith.constant 0 : i32
    %c0_i32_0 = arith.constant 0 : i32
    return %arg0, %arg1, %c0_i32 : i32, i32, i32
  }
  func.func @transform_6(%arg0: i32, %arg1: i32) -> (i32, i32) {
    %c0_i32 = arith.constant 0 : i32
    return %arg0, %arg1 : i32, i32
  }
}

</mosaic_0001>

<bundles_post_ra>
// kernel: tpu_custom_call.1
= control target key start
LH: loop header
LB: loop body
LE: loop exit
PB: predicated region body
PF: predicated region fallthrough
CT: control target
= control target key end

     0   :  { %12 = vsyncpa [#allocation5], 0  ;;  %s4652_s0 = inlined_call_operand.vmem [shape: f32[2,256,32], index: 0, kind: input, shape index: {}]   ;;  %s4653_s1 = inlined_call_operand.vmem [shape: s32[2,256], index: 1, kind: input, shape index: {}]   ;;  %s4654_s2 = inlined_call_operand.vmem [shape: f32[2,1], index: 2, kind: output, shape index: {0}]   ;;  %s4655_s3 = inlined_call_operand.vmem [shape: f32[2,1], index: 3, kind: output, shape index: {1}]   ;;  %s4656_s4 = inlined_call_operand.vmem [shape: f32[2,1], index: 4, kind: output, shape index: {2}]   ;;  %s4657_s5 = inlined_call_operand.vmem [shape: f32[2,256,32], index: 5, kind: output, shape index: {3}]   ;;  %s4658_s6 = inlined_call_operand.hbm [shape: s32[2,256], index: 6, kind: output, shape index: {4}]  }
   0x1   :  { %14 = vsyncpa [#allocation5 + $0x1], 0  ;;  %s3032_s21 = smov 0   ;;  %s3034_s22 = smov 0  }
   0x2   :  { %s3036_s23 = smov 0   ;;  %s3038_s24 = smov 0  }
   0x3   :  { %s3040_s25 = smov 0   ;;  %s3042_s26 = smov 0  }
   0x4 LB: > { %s2575_s27 = sadd.s32 4294967295, %s2994_s26   ;;  %s2576_s28 = sadd.s32 4294967294, %s2994_s26   ;;  %s2994_s26 = sphi %s3042_s26, %s20_s26   ;;  %s2990_s25 = sphi %s3040_s25, %s4855_s25   ;;  %s2986_s24 = sphi %s3038_s24, %s4854_s24   ;;  %s2982_s23 = sphi %s3036_s23, %s4853_s23   ;;  %s2978_s22 = sphi %s3034_s22, %s4852_s22   ;;  %s2974_s21 = sphi %s3032_s21, %s4851_s21  }
   0x5   : > { %s29_s29 = sadd.s32 1, %s2990_s25  ;;  %s41_s30 = sadd.s32 1, %s2982_s23 }
   0x6   : > { %p30_p0 = scmp.ge.s32.totalorder %s29_s29, 2  ;;  %p48_p1 = scmp.ne.s32.totalorder %s2982_s23, %s2978_s22 }
   0x7   : > { %p49_p2 = scmp.eq.s32.totalorder %s2994_s26, 0  ;;  %p186_p3 = scmp.eq.s32.totalorder %s2575_s27, 1 }
   0x8   : > { %s4857_s29 = smov (%p30_p0, %s29_s29), 0  ;;  %p219_p6 = scmp.ne.s32.totalorder %s2978_s22, %s2974_s21 }
   0x9   : > { %p50_p4 = por %p49_p2, %p48_p1  ;;  %p3071_p5 = por %p186_p3, %p48_p1 }
   0xa   : > { %s37_s8 = ssub.s32 %s2990_s25, %s4857_s29  ;;  %p220_p8 = scmp.eq.s32.totalorder %s2576_s28, 1 }
   0xb   : > { %p39_p7 = scmp.eq.s32.totalorder %s37_s8, 0  ;;  %p2578_p10 = scmp.ge.s32.totalorder %s2994_s26, 2 }
   0xc   : > { %p3082_p9 = por %p220_p8, %p219_p6 }
   0xd   : > { %s3080_s9 = scalar_select %p39_p7, %s2982_s23, %s41_s30  }
   0xe   : > { %236 = sbr.rel (%p2578_p10) target bundleno = 55 (0x37), region = 16 }
  0x13   : > { %239 = sbr.rel (!%p50_p4) target bundleno = 55 (0x37), region = 20  ;;  %s241_s11 = sand.u32 (%p50_p4), 1, %s2982_s23  }
  0x14   : > { %s2599_s12 = sshll.u32 (%p50_p4), %s2990_s25, 7  ;;  %s2579_s13 = sshll.u32 (%p50_p4), %s241_s11, 8 }
  0x15   : > { %s3094_s16 = scalar_lea.vmem (%p50_p4), %s4652_s0, %s2599_s12  ;;  %s3099_s17 = scalar_lea.vmem (%p50_p4), [#allocation2], %s2579_s13 }
  0x16   : > { %v340_v0 = vld [vmem:[%s3094_s16] sm:$0xff] (%p50_p4)  ;;  %v342_v1 = vld [vmem:[%s3094_s16 + $0x8] sm:$0xff] (%p50_p4)  ;;  %v344_v2 = vld [vmem:[%s3094_s16 + $0x10] sm:$0xff] (%p50_p4) }
  0x17   : > { %341 = vst [vmem:[%s3099_s17] sm:$0xff] (%p50_p4), %v340_v0  ;;  %v346_v3 = vld [vmem:[%s3094_s16 + $0x18] sm:$0xff] (%p50_p4)  ;;  %v348_v4 = vld [vmem:[%s3094_s16 + $0x20] sm:$0xff] (%p50_p4)  ;;  %v350_v5 = vld [vmem:[%s3094_s16 + $0x28] sm:$0xff] (%p50_p4) }
  0x18   : > { %343 = vst [vmem:[%s3099_s17 + $0x8] sm:$0xff] %v342_v1  ;;  %v352_v6 = vld [vmem:[%s3094_s16 + $0x30] sm:$0xff]  ;;  %v354_v7 = vld [vmem:[%s3094_s16 + $0x38] sm:$0xff]  ;;  %v356_v8 = vld [vmem:[%s3094_s16 + $0x40] sm:$0xff] }
  0x19   : > { %345 = vst [vmem:[%s3099_s17 + $0x10] sm:$0xff] %v344_v2  ;;  %v358_v9 = vld [vmem:[%s3094_s16 + $0x48] sm:$0xff]  ;;  %v360_v10 = vld [vmem:[%s3094_s16 + $0x50] sm:$0xff]  ;;  %v362_v11 = vld [vmem:[%s3094_s16 + $0x58] sm:$0xff] }
  0x1a   : > { %347 = vst [vmem:[%s3099_s17 + $0x18] sm:$0xff] %v346_v3  ;;  %v364_v12 = vld [vmem:[%s3094_s16 + $0x60] sm:$0xff]  ;;  %v366_v13 = vld [vmem:[%s3094_s16 + $0x68] sm:$0xff]  ;;  %v368_v14 = vld [vmem:[%s3094_s16 + $0x70] sm:$0xff] }
  0x1b   : > { %349 = vst [vmem:[%s3099_s17 + $0x20] sm:$0xff] %v348_v4  ;;  %v370_v15 = vld [vmem:[%s3094_s16 + $0x78] sm:$0xff]  ;;  %v372_v16 = vld [vmem:[%s3094_s16 + $0x100] sm:$0xff]  ;;  %v374_v17 = vld [vmem:[%s3094_s16 + $0x108] sm:$0xff] }
  0x1c   : > { %351 = vst [vmem:[%s3099_s17 + $0x28] sm:$0xff] %v350_v5  ;;  %v376_v18 = vld [vmem:[%s3094_s16 + $0x110] sm:$0xff]  ;;  %v378_v19 = vld [vmem:[%s3094_s16 + $0x118] sm:$0xff]  ;;  %v380_v20 = vld [vmem:[%s3094_s16 + $0x120] sm:$0xff] }
  0x1d   : > { %353 = vst [vmem:[%s3099_s17 + $0x30] sm:$0xff] %v352_v6  ;;  %v382_v21 = vld [vmem:[%s3094_s16 + $0x128] sm:$0xff]  ;;  %v384_v22 = vld [vmem:[%s3094_s16 + $0x130] sm:$0xff]  ;;  %v386_v23 = vld [vmem:[%s3094_s16 + $0x138] sm:$0xff] }
  0x1e   : > { %355 = vst [vmem:[%s3099_s17 + $0x38] sm:$0xff] %v354_v7  ;;  %v388_v24 = vld [vmem:[%s3094_s16 + $0x140] sm:$0xff]  ;;  %v390_v25 = vld [vmem:[%s3094_s16 + $0x148] sm:$0xff]  ;;  %v392_v26 = vld [vmem:[%s3094_s16 + $0x150] sm:$0xff] }
  0x1f   : > { %357 = vst [vmem:[%s3099_s17 + $0x40] sm:$0xff] %v356_v8  ;;  %v394_v27 = vld [vmem:[%s3094_s16 + $0x158] sm:$0xff]  ;;  %v396_v28 = vld [vmem:[%s3094_s16 + $0x160] sm:$0xff]  ;;  %v398_v29 = vld [vmem:[%s3094_s16 + $0x168] sm:$0xff] }
  0x20   : > { %359 = vst [vmem:[%s3099_s17 + $0x48] sm:$0xff] %v358_v9  ;;  %v400_v30 = vld [vmem:[%s3094_s16 + $0x170] sm:$0xff]  ;;  %v402_v31 = vld [vmem:[%s3094_s16 + $0x178] sm:$0xff] }
  0x21   : > { %361 = vst [vmem:[%s3099_s17 + $0x50] sm:$0xff] %v360_v10 }
  0x22   : > { %363 = vst [vmem:[%s3099_s17 + $0x58] sm:$0xff] %v362_v11 }
  0x23   : > { %365 = vst [vmem:[%s3099_s17 + $0x60] sm:$0xff] %v364_v12 }
  0x24   : > { %367 = vst [vmem:[%s3099_s17 + $0x68] sm:$0xff] %v366_v13 }
  0x25   : > { %369 = vst [vmem:[%s3099_s17 + $0x70] sm:$0xff] %v368_v14 }
  0x26   : > { %371 = vst [vmem:[%s3099_s17 + $0x78] sm:$0xff] %v370_v15 }
  0x27   : > { %373 = vst [vmem:[%s3099_s17 + $0x80] sm:$0xff] %v372_v16 }
  0x28   : > { %375 = vst [vmem:[%s3099_s17 + $0x88] sm:$0xff] %v374_v17 }
  0x29   : > { %377 = vst [vmem:[%s3099_s17 + $0x90] sm:$0xff] %v376_v18 }
  0x2a   : > { %379 = vst [vmem:[%s3099_s17 + $0x98] sm:$0xff] %v378_v19 }
  0x2b   : > { %381 = vst [vmem:[%s3099_s17 + $0xa0] sm:$0xff] %v380_v20 }
  0x2c   : > { %383 = vst [vmem:[%s3099_s17 + $0xa8] sm:$0xff] %v382_v21 }
  0x2d   : > { %385 = vst [vmem:[%s3099_s17 + $0xb0] sm:$0xff] %v384_v22 }
  0x2e   : > { %387 = vst [vmem:[%s3099_s17 + $0xb8] sm:$0xff] %v386_v23 }
  0x2f   : > { %389 = vst [vmem:[%s3099_s17 + $0xc0] sm:$0xff] %v388_v24 }
  0x30   : > { %391 = vst [vmem:[%s3099_s17 + $0xc8] sm:$0xff] %v390_v25 }
  0x31   : > { %393 = vst [vmem:[%s3099_s17 + $0xd0] sm:$0xff] %v392_v26 }
  0x32   : > { %395 = vst [vmem:[%s3099_s17 + $0xd8] sm:$0xff] %v394_v27 }
  0x33   : > { %397 = vst [vmem:[%s3099_s17 + $0xe0] sm:$0xff] %v396_v28 }
  0x34   : > { %399 = vst [vmem:[%s3099_s17 + $0xe8] sm:$0xff] %v398_v29 }
  0x35   : > { %401 = vst [vmem:[%s3099_s17 + $0xf0] sm:$0xff] %v400_v30 }
  0x36   : > { %403 = vst [vmem:[%s3099_s17 + $0xf8] sm:$0xff] %v402_v31 }
  0x37 PF: > { %p2582_p11 = scmp.ge.s32.totalorder %s2994_s26, 1  ;;  %p419_p12 = scmp.lt.s32.totalorder %s2994_s26, 3 }
  0x39   : > { %p420_p13 = pnand %p2582_p11, %p419_p12 }
  0x3b   : > { %423 = sbr.rel (%p420_p13) target bundleno = 2109 (0x83d), region = 62 }
  0x40   : > { %s3165_s18 = sand.u32 1, %s2978_s22   ;;  %p483_p0 = scmp.lt.s32.totalorder %s2986_s24, 1 }
  0x41   : > { %s2583_s19 = sshll.u32 %s3165_s18, 8  ;;  %s2585_s20 = sshll.u32 %s3165_s18, 1 }
  0x42   : > { %s484_s27 = scalar_select %p483_p0, %s2986_s24, 1 }
  0x43   : > { %s3176_s12 = scalar_lea.vmem [#allocation2], %s2583_s19  ;;  %s3178_s13 = scalar_lea.vmem [#allocation3], %s2583_s19 }
  0x44   : > { %s2586_s28 = sshll.u32 %s484_s27, 1  ;;  %s3180_s14 = scalar_lea.vmem [#allocation4], %s2585_s20 }
  0x45   : > { %s3174_s11 = scalar_lea.vmem %s4653_s1, %s2586_s28  ;;  %p2587_p1 = scmp.ne.s32.totalorder %s2986_s24, 0 }
  0x47   : > { %506 = sbr.rel (%p2587_p1) target bundleno = 80 (0x50), region = 70 }
  0x4c   : > { %vm507_vm0 = vcmask 1024   ;;  %v2996_v32 = vmov 0.0  }
  0x4d   : > { %508 = vst.msk [vmem:[%s4654_s2] sm:$0x3] %vm507_vm0, %v2996_v32 }
  0x4e   : > { %509 = vst.msk [vmem:[%s4655_s3] sm:$0x3] %vm507_vm0, %v2996_v32 }
  0x4f   : > { %510 = vst.msk [vmem:[%s4656_s4] sm:$0x3] %vm507_vm0, %v2996_v32 }
  0x50 PF: > { %v3193_v33 = vld [vmem:[%s3176_s12 + $0x20] sm:$0xff]  ;;  %vm544_vm1 = vcmask 261120   ;;  %v3196_v34 = vld [vmem:[%s3176_s12 + $0x10] sm:$0xff]  ;;  %v3208_v39 = vld [vmem:[%s3176_s12 + $0x28] sm:$0xff]  ;;  %vm4731_vm8 = vcmask 1041409   ;;  %vm4730_vm9 = vcmask 1024  }
  0x51   : > { %v3199_v35 = vld [vmem:[%s3176_s12] sm:$0xff]  ;;  %v557_v36 = vsel %vm544_vm1, %v3193_v33, -inf  ;;  %v551_v37 = vsel %vm544_vm1, %v3196_v34, -inf  ;;  %v3211_v40 = vld [vmem:[%s3176_s12 + $0x18] sm:$0xff]  ;;  %v3214_v41 = vld [vmem:[%s3176_s12 + $0x8] sm:$0xff]  ;;  %v560_v42 = vsel %vm544_vm1, %v3208_v39, -inf }
  0x52   : > { %v545_v38 = vsel %vm544_vm1, %v3199_v35, -inf  ;;  %558 = vmax.xlane.f32.xlu2 %v557_v36  ;;  %552 = vmax.xlane.f32.xlu1 %v551_v37  ;;  %v554_v43 = vsel %vm544_vm1, %v3211_v40, -inf  ;;  %v548_v44 = vsel %vm544_vm1, %v3214_v41, -inf  ;;  %v3223_v45 = vld [vmem:[%s3176_s12 + $0x40] sm:$0xff]  ;;  %v3226_v46 = vld [vmem:[%s3176_s12 + $0x38] sm:$0xff]  ;;  %v3229_v47 = vld [vmem:[%s3176_s12 + $0x30] sm:$0xff] }
  0x53   : > { %546 = vmax.xlane.f32.xlu0 %v545_v38  ;;  %v569_v48 = vsel %vm544_vm1, %v3223_v45, -inf  ;;  %v566_v49 = vsel %vm544_vm1, %v3226_v46, -inf  ;;  %v563_v50 = vsel %vm544_vm1, %v3229_v47, -inf  ;;  %v3238_v51 = vld [vmem:[%s3176_s12 + $0x58] sm:$0xff]  ;;  %v3241_v52 = vld [vmem:[%s3176_s12 + $0x50] sm:$0xff]  ;;  %v3244_v53 = vld [vmem:[%s3176_s12 + $0x48] sm:$0xff] }
  0x54   : > { %v578_v54 = vsel %vm544_vm1, %v3238_v51, -inf  ;;  %v575_v55 = vsel %vm544_vm1, %v3241_v52, -inf  ;;  %v572_v56 = vsel %vm544_vm1, %v3244_v53, -inf  ;;  %v3253_v57 = vld [vmem:[%s3176_s12 + $0x70] sm:$0xff]  ;;  %v3256_v58 = vld [vmem:[%s3176_s12 + $0x68] sm:$0xff]  ;;  %v3259_v59 = vld [vmem:[%s3176_s12 + $0x60] sm:$0xff] }
  0x55   : > { %v587_v60 = vsel %vm544_vm1, %v3253_v57, -inf  ;;  %v584_v61 = vsel %vm544_vm1, %v3256_v58, -inf  ;;  %v581_v62 = vsel %vm544_vm1, %v3259_v59, -inf  ;;  %v3268_v63 = vld [vmem:[%s3176_s12 + $0x88] sm:$0xff]  ;;  %v3271_v0 = vld [vmem:[%s3176_s12 + $0x80] sm:$0xff]  ;;  %v3274_v1 = vld [vmem:[%s3176_s12 + $0x78] sm:$0xff] }
  0x56   : > { %v596_v2 = vsel %vm544_vm1, %v3268_v63, -inf  ;;  %v593_v3 = vsel %vm544_vm1, %v3271_v0, -inf  ;;  %v590_v4 = vsel %vm544_vm1, %v3274_v1, -inf  ;;  %v3283_v5 = vld [vmem:[%s3176_s12 + $0xa0] sm:$0xff]  ;;  %v3286_v6 = vld [vmem:[%s3176_s12 + $0x98] sm:$0xff]  ;;  %v3289_v7 = vld [vmem:[%s3176_s12 + $0x90] sm:$0xff] }
  0x57   : > { %v605_v8 = vsel %vm544_vm1, %v3283_v5, -inf  ;;  %v602_v9 = vsel %vm544_vm1, %v3286_v6, -inf  ;;  %v599_v10 = vsel %vm544_vm1, %v3289_v7, -inf  ;;  %v3298_v11 = vld [vmem:[%s3176_s12 + $0xb8] sm:$0xff]  ;;  %v3301_v12 = vld [vmem:[%s3176_s12 + $0xb0] sm:$0xff]  ;;  %v3304_v13 = vld [vmem:[%s3176_s12 + $0xa8] sm:$0xff] }
  0x58   : > { %v614_v14 = vsel %vm544_vm1, %v3298_v11, -inf  ;;  %v611_v15 = vsel %vm544_vm1, %v3301_v12, -inf  ;;  %v608_v16 = vsel %vm544_vm1, %v3304_v13, -inf  ;;  %v3313_v17 = vld [vmem:[%s3176_s12 + $0xd0] sm:$0xff]  ;;  %v3316_v18 = vld [vmem:[%s3176_s12 + $0xc8] sm:$0xff]  ;;  %v3319_v19 = vld [vmem:[%s3176_s12 + $0xc0] sm:$0xff] }
  0x59   : > { %v623_v20 = vsel %vm544_vm1, %v3313_v17, -inf  ;;  %v620_v21 = vsel %vm544_vm1, %v3316_v18, -inf  ;;  %v617_v22 = vsel %vm544_vm1, %v3319_v19, -inf  ;;  %v3328_v23 = vld [vmem:[%s3176_s12 + $0xe8] sm:$0xff]  ;;  %v3331_v24 = vld [vmem:[%s3176_s12 + $0xe0] sm:$0xff]  ;;  %v3334_v25 = vld [vmem:[%s3176_s12 + $0xd8] sm:$0xff] }
  0x5a   : > { %561 = vmax.xlane.f32.xlu2 %v560_v42  ;;  %555 = vmax.xlane.f32.xlu1 %v554_v43  ;;  %v632_v26 = vsel %vm544_vm1, %v3328_v23, -inf  ;;  %v629_v27 = vsel %vm544_vm1, %v3331_v24, -inf  ;;  %v626_v28 = vsel %vm544_vm1, %v3334_v25, -inf  ;;  %v3343_v29 = vld [vmem:[%s3176_s12 + $0xf8] sm:$0xff]  ;;  %v3346_v30 = vld [vmem:[%s3176_s12 + $0xf0] sm:$0xff]  ;;  %p2588_p2 = scmp.ne.s32.totalorder %s2986_s24, 1 }
  0x5b   : > { %549 = vmax.xlane.f32.xlu0 %v548_v44  ;;  %v638_v31 = vsel %vm544_vm1, %v3343_v29, -inf  ;;  %v635_v32 = vsel %vm544_vm1, %v3346_v30, -inf }
  0x62   : > { %570 = vmax.xlane.f32.xlu2 %v569_v48  ;;  %567 = vmax.xlane.f32.xlu1 %v566_v49 }
  0x63   : > { %564 = vmax.xlane.f32.xlu0 %v563_v50 }
  0x6a   : > { %579 = vmax.xlane.f32.xlu2 %v578_v54  ;;  %576 = vmax.xlane.f32.xlu1 %v575_v55 }
  0x6b   : > { %573 = vmax.xlane.f32.xlu0 %v572_v56 }
  0x72   : > { %588 = vmax.xlane.f32.xlu2 %v587_v60  ;;  %585 = vmax.xlane.f32.xlu1 %v584_v61 }
  0x73   : > { %582 = vmax.xlane.f32.xlu0 %v581_v62 }
  0x7a   : > { %597 = vmax.xlane.f32.xlu2 %v596_v2  ;;  %594 = vmax.xlane.f32.xlu1 %v593_v3 }
  0x7b   : > { %591 = vmax.xlane.f32.xlu0 %v590_v4 }
  0x82   : > { %606 = vmax.xlane.f32.xlu2 %v605_v8  ;;  %603 = vmax.xlane.f32.xlu1 %v602_v9 }
  0x83   : > { %600 = vmax.xlane.f32.xlu0 %v599_v10 }
  0x8a   : > { %615 = vmax.xlane.f32.xlu2 %v614_v14  ;;  %612 = vmax.xlane.f32.xlu1 %v611_v15 }
  0x8b   : > { %609 = vmax.xlane.f32.xlu0 %v608_v16 }
  0x92   : > { %624 = vmax.xlane.f32.xlu2 %v623_v20  ;;  %621 = vmax.xlane.f32.xlu1 %v620_v21 }
  0x93   : > { %618 = vmax.xlane.f32.xlu0 %v617_v22 }
  0x9a   : > { %633 = vmax.xlane.f32.xlu2 %v632_v26  ;;  %630 = vmax.xlane.f32.xlu1 %v629_v27 }
  0x9b   : > { %627 = vmax.xlane.f32.xlu0 %v626_v28 }
  0xa2   : > { %639 = vmax.xlane.f32.xlu1 %v638_v31 }
  0xa3   : > { %636 = vmax.xlane.f32.xlu0 %v635_v32 }
  0xc5   : > { %v3352_v36 = vpop.xlane.xlu2 %558  ;;  %v3354_v37 = vpop.xlane.xlu1 %552 }
  0xc6   : > { %v3356_v38 = vpop.xlane.xlu0 %546  ;;  %v643_v42 = vsub.f32 %v3196_v34, %v3354_v37  ;;  %v645_v3 = vsub.f32 %v3193_v33, %v3352_v36  ;;  %vm1029_vm4 = vcmp.eq.f32.partialorder %v3196_v34, %v3354_v37  ;;  %vm1031_vm12 = vcmp.eq.f32.partialorder %v3193_v33, %v3352_v36 }
  0xc7   : > { %v641_v43 = vsub.f32 %v3199_v35, %v3356_v38  ;;  %vm1027_vm2 = vcmp.eq.f32.partialorder %v3199_v35, %v3356_v38 }
  0xc8   : > { %v677_v44 = vmul.f32 1.442695, %v643_v42  ;;  %v681_v14 = vmul.f32 1.442695, %v645_v3 }
  0xc9   : > { %v673_v48 = vmul.f32 1.442695, %v641_v43 }
  0xca   : > { %2690 = vpow2.f32 %v677_v44 }
  0xcb   : > { %2692 = vpow2.f32 %v673_v48 }
  0xcd   : > { %v3362_v49 = vpop.xlane.xlu2 %561  ;;  %v3364_v50 = vpop.xlane.xlu1 %555 }
  0xce   : > { %v3366_v54 = vpop.xlane.xlu0 %549  ;;  %v646_v55 = vsub.f32 %v3208_v39, %v3362_v49  ;;  %v644_v56 = vsub.f32 %v3211_v40, %v3364_v50  ;;  %vm1030_vm3 = vcmp.eq.f32.partialorder %v3211_v40, %v3364_v50  ;;  %vm1032_vm5 = vcmp.eq.f32.partialorder %v3208_v39, %v3362_v49 }
  0xcf   : > { %v642_v60 = vsub.f32 %v3214_v41, %v3366_v54  ;;  %v2120_v44 = vadd.f32 %v3366_v54, %v3356_v38  ;;  %vm1028_vm7 = vcmp.eq.f32.partialorder %v3214_v41, %v3366_v54 }
  0xd0   : > { %v3374_v61 = vpop.eup %2690  ;;  %v683_v62 = vmul.f32 1.442695, %v646_v55  ;;  %v679_v2 = vmul.f32 1.442695, %v644_v56 }
  0xd1   : > { %v3378_v4 = vpop.eup %2692  ;;  %v743_v8 = vsel %vm544_vm1, %v3374_v61, 0.0  ;;  %v675_v9 = vmul.f32 1.442695, %v642_v60  ;;  %v2121_v3 = vadd.f32 %v2120_v44, %v3354_v37 }
  0xd2   : > { %744 = vadd.xlane.f32.xlu1 %v743_v8  ;;  %v737_v10 = vsel %vm544_vm1, %v3378_v4, 0.0  ;;  %2694 = vpow2.f32 %v683_v62 }
  0xd3   : > { %738 = vadd.xlane.f32.xlu2 %v737_v10  ;;  %2696 = vpow2.f32 %v679_v2  ;;  %v2122_v44 = vadd.f32 %v2121_v3, %v3364_v50 }
  0xd4   : > { %2698 = vpow2.f32 %v675_v9 }
  0xd5   : > { %v3384_v15 = vpop.xlane.xlu2 %570  ;;  %v3386_v16 = vpop.xlane.xlu1 %567  ;;  %2700 = vpow2.f32 %v681_v14 }
  0xd6   : > { %v3388_v20 = vpop.xlane.xlu0 %564  ;;  %v649_v21 = vsub.f32 %v3223_v45, %v3384_v15  ;;  %v648_v28 = vsub.f32 %v3226_v46, %v3386_v16  ;;  %vm1035_vm10 = vcmp.eq.f32.partialorder %v3223_v45, %v3384_v15  ;;  %vm1034_vm15 = vcmp.eq.f32.partialorder %v3226_v46, %v3386_v16 }
  0xd7   : > { %v647_v22 = vsub.f32 %v3229_v47, %v3388_v20  ;;  %vm1033_vm6 = vcmp.eq.f32.partialorder %v3229_v47, %v3388_v20  ;;  %v2119_v47 = vld [vmem:[%s4656_s4] sm:$0x3] }
  0xd8   : > { %v3394_v26 = vpop.eup %2694  ;;  %v689_v27 = vmul.f32 1.442695, %v649_v21  ;;  %v687_v56 = vmul.f32 1.442695, %v648_v28 }
  0xd9   : > { %4737 = vst [vmem:[#allocation7_spill] sm:$0xff] %v3394_v26  ;;  %v3398_v31 = vpop.eup %2696  ;;  %v752_v32 = vsel %vm544_vm1, %v3394_v26, 0.0  ;;  %v685_v42 = vmul.f32 1.442695, %v647_v22 }
  0xda   : > { %4738 = vst [vmem:[#allocation8_spill] sm:$0xff] %v3398_v31  ;;  %v3402_v43 = vpop.eup %2698  ;;  %753 = vadd.xlane.f32.xlu1 %v752_v32  ;;  %v746_v48 = vsel %vm544_vm1, %v3398_v31, 0.0  ;;  %2702 = vpow2.f32 %v689_v27 }
  0xdb   : > { %4739 = vst [vmem:[#allocation9_spill] sm:$0xff] %v3402_v43  ;;  %747 = vadd.xlane.f32.xlu2 %v746_v48  ;;  %v740_v55 = vsel %vm544_vm1, %v3402_v43, 0.0  ;;  %2704 = vpow2.f32 %v685_v42  ;;  %v3414_v2 = vpop.eup %2700 }
  0xdc   : > { %741 = vadd.xlane.f32.xlu0 %v740_v55  ;;  %4740 = vst [vmem:[#allocation10_spill] sm:$0xff] %v3414_v2  ;;  %2706 = vpow2.f32 %v687_v56  ;;  %v749_v32 = vsel %vm544_vm1, %v3414_v2, 0.0  ;;  %v2123_v2 = vadd.f32 %v2122_v44, %v3352_v36 }
  0xdd   : > { %v3410_v60 = vpop.xlane.xlu2 %579  ;;  %v3412_v62 = vpop.xlane.xlu1 %576 }
  0xde   : > { %v3417_v8 = vpop.xlane.xlu0 %573  ;;  %v652_v9 = vsub.f32 %v3238_v51, %v3410_v60  ;;  %v651_v22 = vsub.f32 %v3241_v52, %v3412_v62  ;;  %v2124_v43 = vadd.f32 %v2123_v2, %v3362_v49  ;;  %vm1038_vm13 = vcmp.eq.f32.partialorder %v3238_v51, %v3410_v60 }
  0xdf   : > { %v650_v10 = vsub.f32 %v3244_v53, %v3417_v8  ;;  %vm1036_vm11 = vcmp.eq.f32.partialorder %v3244_v53, %v3417_v8 }
  0xe0   : > { %v3423_v14 = vpop.eup %2702  ;;  %v695_v21 = vmul.f32 1.442695, %v652_v9  ;;  %v693_v55 = vmul.f32 1.442695, %v651_v22 }
  0xe1   : > { %4741 = vst [vmem:[#allocation11_spill] sm:$0xff] %v3423_v14  ;;  %v3427_v27 = vpop.eup %2704  ;;  %v761_v28 = vsel %vm544_vm1, %v3423_v14, 0.0  ;;  %v691_v42 = vmul.f32 1.442695, %v650_v10 }
  0xe2   : > { %4742 = vst [vmem:[#allocation12_spill] sm:$0xff] %v3427_v27  ;;  %762 = vadd.xlane.f32.xlu1 %v761_v28  ;;  %v755_v48 = vsel %vm544_vm1, %v3427_v27, 0.0  ;;  %2708 = vpow2.f32 %v695_v21  ;;  %v3440_v14 = vpop.eup %2706 }
  0xe3   : > { %756 = vadd.xlane.f32.xlu2 %v755_v48  ;;  %2710 = vpow2.f32 %v691_v42  ;;  %4743 = vst [vmem:[#allocation13_spill] sm:$0xff] %v3440_v14  ;;  %v758_v48 = vsel %vm544_vm1, %v3440_v14, 0.0  ;;  %v2125_v14 = vadd.f32 %v2124_v43, %v3388_v20 }
  0xe4   : > { %750 = vadd.xlane.f32.xlu0 %v749_v32  ;;  %2712 = vpow2.f32 %v693_v55 }
  0xe5   : > { %v3436_v56 = vpop.xlane.xlu2 %588  ;;  %v3438_v9 = vpop.xlane.xlu1 %585 }
  0xe6   : > { %v3443_v10 = vpop.xlane.xlu0 %582  ;;  %v655_v3 = vsub.f32 %v3253_v57, %v3436_v56  ;;  %v654_v22 = vsub.f32 %v3256_v58, %v3438_v9  ;;  %vm1041_vm0 = vcmp.eq.f32.partialorder %v3253_v57, %v3436_v56 }
  0xe7   : > { %v653_v21 = vsub.f32 %v3259_v59, %v3443_v10  ;;  %vm1039_vm14 = vcmp.eq.f32.partialorder %v3259_v59, %v3443_v10 }
  0xe8   : > { %v3449_v28 = vpop.eup %2708  ;;  %v701_v32 = vmul.f32 1.442695, %v655_v3  ;;  %v699_v55 = vmul.f32 1.442695, %v654_v22 }
  0xe9   : > { %4744 = vst [vmem:[#allocation14_spill] sm:$0xff] %v3449_v28  ;;  %v3453_v42 = vpop.eup %2710  ;;  %v770_v44 = vsel %vm544_vm1, %v3449_v28, 0.0  ;;  %v697_v27 = vmul.f32 1.442695, %v653_v21 }
  0xea   : > { %4745 = vst [vmem:[#allocation15_spill] sm:$0xff] %v3453_v42  ;;  %771 = vadd.xlane.f32.xlu1 %v770_v44  ;;  %v764_v31 = vsel %vm544_vm1, %v3453_v42, 0.0  ;;  %2714 = vpow2.f32 %v701_v32  ;;  %v3466_v28 = vpop.eup %2712 }
  0xeb   : > { %765 = vadd.xlane.f32.xlu2 %v764_v31  ;;  %2716 = vpow2.f32 %v697_v27  ;;  %4748 = vst [vmem:[#allocation18_spill] sm:$0xff] %v3466_v28 }
  0xec   : > { %759 = vadd.xlane.f32.xlu0 %v758_v48  ;;  %2718 = vpow2.f32 %v699_v55  ;;  %v767_v48 = vsel %vm544_vm1, %v3466_v28, 0.0 }
  0xed   : > { %v3462_v3 = vpop.xlane.xlu2 %597  ;;  %v3464_v26 = vpop.xlane.xlu1 %594 }
  0xee   : > { %4746 = vst [vmem:[#allocation16_spill] sm:$0xff] %v3462_v3  ;;  %v3469_v21 = vpop.xlane.xlu0 %591  ;;  %v658_v2 = vsub.f32 %v3268_v63, %v3462_v3  ;;  %v657_v22 = vsub.f32 %v3271_v0, %v3464_v26  ;;  %v2126_v63 = vadd.f32 %v2125_v14, %v3386_v16  ;;  %v2141_v55 = vadd.f32 %v3462_v3, %v3464_v26 }
  0xef   : > { %4747 = vst [vmem:[#allocation17_spill] sm:$0xff] %v3464_v26  ;;  %v656_v32 = vsub.f32 %v3274_v1, %v3469_v21 }
  0xf0   : > { %v3475_v31 = vpop.eup %2714  ;;  %v707_v27 = vmul.f32 1.442695, %v658_v2  ;;  %v705_v0 = vmul.f32 1.442695, %v657_v22  ;;  %v2127_v14 = vadd.f32 %v2126_v63, %v3384_v15 }
  0xf1   : > { %4749 = vst [vmem:[#allocation19_spill] sm:$0xff] %v3475_v31  ;;  %v3479_v44 = vpop.eup %2716  ;;  %v779_v43 = vsel %vm544_vm1, %v3475_v31, 0.0  ;;  %v703_v42 = vmul.f32 1.442695, %v656_v32 }
  0xf2   : > { %780 = vadd.xlane.f32.xlu1 %v779_v43  ;;  %v773_v1 = vsel %vm544_vm1, %v3479_v44, 0.0  ;;  %2720 = vpow2.f32 %v707_v27  ;;  %v3494_v28 = vpop.eup %2718 }
  0xf3   : > { %774 = vadd.xlane.f32.xlu2 %v773_v1  ;;  %2722 = vpow2.f32 %v703_v42 }
  0xf4   : > { %768 = vadd.xlane.f32.xlu0 %v767_v48  ;;  %2724 = vpow2.f32 %v705_v0 }
  0xf5   : > { %v3490_v2 = vpop.xlane.xlu2 %606  ;;  %v3492_v31 = vpop.xlane.xlu1 %603 }
  0xf6   : > { %4750 = vst [vmem:[#allocation20_spill] sm:$0xff] %v3490_v2  ;;  %v3497_v32 = vpop.xlane.xlu0 %600  ;;  %v661_v27 = vsub.f32 %v3283_v5, %v3490_v2  ;;  %v660_v1 = vsub.f32 %v3286_v6, %v3492_v31  ;;  %v776_v5 = vsel %vm544_vm1, %v3494_v28, 0.0 }
  0xf7   : > { %4751 = vst [vmem:[#allocation21_spill] sm:$0xff] %v3492_v31  ;;  %v2142_v43 = vadd.f32 %v2141_v55, %v3497_v32  ;;  %v659_v42 = vsub.f32 %v3289_v7, %v3497_v32  ;;  %v2128_v7 = vadd.f32 %v2127_v14, %v3417_v8 }
  0xf8   : > { %4752 = vst [vmem:[#allocation22_spill] sm:$0xff] %v3497_v32  ;;  %v3504_v48 = vpop.eup %2720  ;;  %v713_v22 = vmul.f32 1.442695, %v661_v27  ;;  %v711_v27 = vmul.f32 1.442695, %v660_v1 }
  0xf9   : > { %v3508_v3 = vpop.eup %2722  ;;  %v2143_v63 = vadd.f32 %v2142_v43, %v3492_v31  ;;  %v788_v26 = vsel %vm544_vm1, %v3504_v48, 0.0  ;;  %v709_v55 = vmul.f32 1.442695, %v659_v42  ;;  %v2129_v42 = vadd.f32 %v2128_v7, %v3412_v62 }
  0xfa   : > { %789 = vadd.xlane.f32.xlu1 %v788_v26  ;;  %v782_v0 = vsel %vm544_vm1, %v3508_v3, 0.0  ;;  %2726 = vpow2.f32 %v713_v22  ;;  %v3523_v32 = vpop.eup %2724 }
  0xfb   : > { %783 = vadd.xlane.f32.xlu2 %v782_v0  ;;  %v2144_v6 = vadd.f32 %v2143_v63, %v3490_v2  ;;  %2728 = vpow2.f32 %v709_v55 }
  0xfc   : > { %777 = vadd.xlane.f32.xlu0 %v776_v5  ;;  %2730 = vpow2.f32 %v711_v27 }
  0xfd   : > { %v3519_v43 = vpop.xlane.xlu2 %615  ;;  %v3521_v31 = vpop.xlane.xlu1 %612 }
  0xfe   : > { %4753 = vst [vmem:[#allocation23_spill] sm:$0xff] %v3519_v43  ;;  %v3526_v14 = vpop.xlane.xlu0 %609  ;;  %v664_v26 = vsub.f32 %v3298_v11, %v3519_v43  ;;  %v663_v55 = vsub.f32 %v3301_v12, %v3521_v31  ;;  %v785_v11 = vsel %vm544_vm1, %v3523_v32, 0.0 }
  0xff   : > { %4754 = vst [vmem:[#allocation24_spill] sm:$0xff] %v3521_v31  ;;  %v2145_v22 = vadd.f32 %v2144_v6, %v3526_v14  ;;  %v662_v63 = vsub.f32 %v3304_v13, %v3526_v14  ;;  %v2130_v13 = vadd.f32 %v2129_v42, %v3410_v60 }
 0x100   : > { %4755 = vst [vmem:[#allocation25_spill] sm:$0xff] %v3526_v14  ;;  %v3533_v5 = vpop.eup %2726  ;;  %v719_v1 = vmul.f32 1.442695, %v664_v26  ;;  %v717_v26 = vmul.f32 1.442695, %v663_v55 }
 0x101   : > { %v3537_v0 = vpop.eup %2728  ;;  %v2146_v7 = vadd.f32 %v2145_v22, %v3521_v31  ;;  %v797_v2 = vsel %vm544_vm1, %v3533_v5, 0.0  ;;  %v715_v6 = vmul.f32 1.442695, %v662_v63  ;;  %v2131_v12 = vadd.f32 %v2130_v13, %v3443_v10 }
 0x102   : > { %798 = vadd.xlane.f32.xlu1 %v797_v2  ;;  %v791_v27 = vsel %vm544_vm1, %v3537_v0, 0.0  ;;  %2732 = vpow2.f32 %v719_v1  ;;  %v3553_v63 = vpop.eup %2730 }
 0x103   : > { %792 = vadd.xlane.f32.xlu2 %v791_v27  ;;  %2734 = vpow2.f32 %v715_v6  ;;  %v2147_v31 = vadd.f32 %v2146_v7, %v3519_v43  ;;  %4758 = vst [vmem:[#allocation28_spill] sm:$0xff] %v3553_v63  ;;  %v2132_v55 = vadd.f32 %v2131_v12, %v3438_v9 }
 0x104   : > { %786 = vadd.xlane.f32.xlu0 %v785_v11  ;;  %2736 = vpow2.f32 %v717_v26 }
 0x105   : > { %v3548_v22 = vpop.xlane.xlu2 %624  ;;  %v3551_v14 = vpop.xlane.xlu1 %621 }
 0x106   : > { %4756 = vst [vmem:[#allocation26_spill] sm:$0xff] %v3548_v22  ;;  %v3555_v42 = vpop.xlane.xlu0 %618  ;;  %v667_v2 = vsub.f32 %v3313_v17, %v3548_v22  ;;  %v666_v7 = vsub.f32 %v3316_v18, %v3551_v14  ;;  %v2133_v18 = vadd.f32 %v2132_v55, %v3436_v56 }
 0x107   : > { %4757 = vst [vmem:[#allocation27_spill] sm:$0xff] %v3551_v14  ;;  %v2148_v1 = vadd.f32 %v2147_v31, %v3555_v42  ;;  %v665_v6 = vsub.f32 %v3319_v19, %v3555_v42  ;;  %v794_v31 = vsel %vm544_vm1, %v3553_v63, 0.0 }
 0x108   : > { %4759 = vst [vmem:[#allocation29_spill] sm:$0xff] %v3555_v42  ;;  %v3562_v11 = vpop.eup %2732  ;;  %v725_v13 = vmul.f32 1.442695, %v667_v2  ;;  %v723_v26 = vmul.f32 1.442695, %v666_v7  ;;  %v4695_v2 = vlaneseq }
 0x109   : > { %v3567_v27 = vpop.eup %2734  ;;  %v2149_v43 = vadd.f32 %v2148_v1, %v3551_v14  ;;  %v806_v17 = vsel %vm544_vm1, %v3562_v11, 0.0  ;;  %v721_v19 = vmul.f32 1.442695, %v665_v6  ;;  %v2134_v6 = vadd.f32 %v2133_v18, %v3469_v21 }
 0x10a   : > { %807 = vadd.xlane.f32.xlu1 %v806_v17  ;;  %v800_v12 = vsel %vm544_vm1, %v3567_v27, 0.0  ;;  %2738 = vpow2.f32 %v725_v13  ;;  %v3582_v63 = vpop.eup %2736 }
 0x10b   : > { %801 = vadd.xlane.f32.xlu2 %v800_v12  ;;  %2740 = vpow2.f32 %v721_v19  ;;  %v2150_v14 = vadd.f32 %v2149_v43, %v3548_v22  ;;  %v3595_v43 = vand.u32 127, %v4695_v2 }
 0x10c   : > { %795 = vadd.xlane.f32.xlu0 %v794_v31  ;;  %2742 = vpow2.f32 %v723_v26 }
 0x10d   : > { %v3577_v1 = vpop.xlane.xlu2 %633  ;;  %v3580_v42 = vpop.xlane.xlu1 %630  ;;  %4763 = vst [vmem:[#allocation33_spill] sm:$0xff] %v3595_v43  ;;  %v1067_v45 = vsel %vm1035_vm10, %v3595_v43, 32 }
 0x10e   : > { %4760 = vst [vmem:[#allocation30_spill] sm:$0xff] %v3577_v1  ;;  %v3585_v17 = vpop.xlane.xlu0 %627  ;;  %v670_v13 = vsub.f32 %v3328_v23, %v3577_v1  ;;  %v669_v12 = vsub.f32 %v3331_v24, %v3580_v42 }
 0x10f   : > { %4761 = vst [vmem:[#allocation31_spill] sm:$0xff] %v3580_v42  ;;  %v2151_v55 = vadd.f32 %v2150_v14, %v3585_v17  ;;  %v668_v7 = vsub.f32 %v3334_v25, %v3585_v17  ;;  %v803_v25 = vsel %vm544_vm1, %v3582_v63, 0.0 }
 0x110   : > { %4762 = vst [vmem:[#allocation32_spill] sm:$0xff] %v3585_v17  ;;  %v3592_v31 = vpop.eup %2738  ;;  %v731_v19 = vmul.f32 1.442695, %v670_v13  ;;  %v2135_v17 = vrot.slane %v2134_v6, 4  ;;  %v729_v24 = vmul.f32 1.442695, %v669_v12 }
 0x111   : > { %v3599_v18 = vpop.eup %2740  ;;  %v2152_v22 = vadd.f32 %v2151_v55, %v3580_v42  ;;  %v815_v23 = vsel %vm544_vm1, %v3592_v31, 0.0  ;;  %v727_v14 = vmul.f32 1.442695, %v668_v7  ;;  %v1059_v55 = vsel %vm1027_vm2, %v3595_v43, 32 }
 0x112   : > { %816 = vadd.xlane.f32.xlu1 %v815_v23  ;;  %v809_v26 = vsel %vm544_vm1, %v3599_v18, 0.0  ;;  %2744 = vpow2.f32 %v731_v19  ;;  %v3612_v2 = vpop.eup %2742  ;;  %v2136_v7 = vadd.f32 %v2135_v17, %v2134_v6  ;;  %v3624_v12 = vsel %vm544_vm1, %v1059_v55, 2147483647 }
 0x113   : > { %810 = vadd.xlane.f32.xlu2 %v809_v26  ;;  %2746 = vpow2.f32 %v727_v14  ;;  %v2153_v13 = vadd.f32 %v2152_v22, %v3577_v1  ;;  %vm1037_vm2 = vcmp.eq.f32.partialorder %v3241_v52, %v3412_v62 }
 0x114   : > { %804 = vadd.xlane.f32.xlu0 %v803_v25  ;;  %2748 = vpow2.f32 %v729_v24 }
 0x115   : > { %v3616_v23 = vpop.xlane.xlu1 %639 }
 0x116   : > { %v3614_v42 = vpop.xlane.xlu0 %636  ;;  %4765 = vst [vmem:[#allocation35_spill] sm:$0xff] %v3616_v23  ;;  %v672_v22 = vsub.f32 %v3343_v29, %v3616_v23  ;;  %v1093_v29 = vshra.s32 %v3624_v12, 16 }
 0x117   : > { %4764 = vst [vmem:[#allocation34_spill] sm:$0xff] %v3614_v42  ;;  %v671_v19 = vsub.f32 %v3346_v30, %v3614_v42  ;;  %v2154_v35 = vadd.f32 %v2153_v13, %v3614_v42  ;;  %v812_v30 = vsel %vm544_vm1, %v3612_v2, 0.0  ;;  %v2137_v13 = vrot.slane %v2136_v7, 2 }
 0x118   : > { %v3621_v26 = vpop.eup %2744  ;;  %v1062_v42 = vsel %vm1030_vm3, %v3595_v43, 32  ;;  %vm1040_vm3 = vcmp.eq.f32.partialorder %v3256_v58, %v3438_v9 }
 0x119   : > { %v3628_v25 = vpop.eup %2746  ;;  %v733_v6 = vmul.f32 1.442695, %v671_v19  ;;  %v2155_v17 = vadd.f32 %v2154_v35, %v3616_v23  ;;  %v824_v14 = vsel %vm544_vm1, %v3621_v26, 0.0  ;;  %v735_v19 = vmul.f32 1.442695, %v672_v22 }
 0x11a   : > { %825 = vadd.xlane.f32.xlu1 %v824_v14  ;;  %v818_v55 = vsel %vm544_vm1, %v3628_v25, 0.0  ;;  %v3642_v23 = vpop.eup %2748  ;;  %v2138_v14 = vadd.f32 %v2137_v13, %v2136_v7  ;;  %v3653_v34 = vsel %vm544_vm1, %v1062_v42, 2147483647 }
 0x11b   : > { %2750 = vpow2.f32 %v733_v6  ;;  %v2156_v24 = vrot.slane %v2155_v17, 4  ;;  %819 = vadd.xlane.f32.xlu2 %v818_v55  ;;  %4766 = vst [vmem:[#allocation36_spill] sm:$0xff] %v3642_v23  ;;  %v1061_v6 = vsel %vm1029_vm4, %v3595_v43, 32  ;;  %v3646_v55 = vcvt.s32.f32 %v1093_v29 }
 0x11c   : > { %813 = vadd.xlane.f32.xlu0 %v812_v30  ;;  %2752 = vpow2.f32 %v735_v19  ;;  %v821_v22 = vsel %vm544_vm1, %v3642_v23, 0.0  ;;  %v3659_v13 = vsel %vm544_vm1, %v1061_v6, 2147483647  ;;  %v1138_v42 = vshra.s32 %v3653_v34, 16 }
 0x11d   : > { %v2157_v35 = vadd.f32 %v2156_v24, %v2155_v17  ;;  %v2139_v17 = vrot.slane %v2138_v14, 1  ;;  %v1123_v29 = vshra.s32 %v3659_v13, 16  ;;  %v1064_v19 = vsel %vm1032_vm5, %v3595_v43, 32 }
 0x11e   : > { %v1065_v6 = vsel %vm1033_vm6, %v3595_v43, 32  ;;  %v3680_v41 = vsel %vm544_vm1, %v1064_v19, 2147483647 }
 0x11f   : > { %v2158_v1 = vrot.slane %v2157_v35, 2  ;;  %v2140_v39 = vadd.f32 %v2139_v17, %v2138_v14  ;;  %v3685_v14 = vcvt.s32.f32 %v1123_v29  ;;  %v3688_v17 = vsel %vm544_vm1, %v1065_v6, 2147483647 }
 0x120   : > { %v1183_v29 = vshra.s32 %v3688_v17, 16 }
 0x121   : > { %v3648_v40 = vpop.eup %2750  ;;  %v2159_v30 = vadd.f32 %v2158_v1, %v2157_v35 }
 0x122   : > { %1096 = vmin.xlane.f32.xlu1 %v3646_v55  ;;  %v827_v7 = vsel %vm544_vm1, %v3648_v40, 0.0  ;;  %v3670_v35 = vpop.eup %2752  ;;  %v3712_v53 = vcvt.s32.f32 %v1183_v29  ;;  %v1070_v29 = vsel %vm1038_vm13, %v3595_v43, 32 }
 0x123   : > { %v2160_v24 = vrot.slane %v2159_v30, 1  ;;  %828 = vadd.xlane.f32.xlu2 %v827_v7  ;;  %4767 = vst [vmem:[#allocation37_spill] sm:$0xff] %v3670_v35  ;;  %v3677_v7 = vcvt.s32.f32 %v1138_v42  ;;  %v3746_v59 = vsel %vm544_vm1, %v1070_v29, 2147483647  ;;  %v1073_v29 = vsel %vm1041_vm0, %v3595_v43, 32 }
 0x124   : > { %822 = vadd.xlane.f32.xlu0 %v821_v22  ;;  %v1060_v22 = vsel %vm1028_vm7, %v3595_v43, 32  ;;  %4770 = vst [vmem:[#allocation40_spill] sm:$0xff] %v3712_v53 }
 0x125   : > { %v2161_v1 = vadd.f32 %v2160_v24, %v2159_v30  ;;  %v830_v24 = vsel %vm544_vm1, %v3670_v35, 0.0  ;;  %v3695_v42 = vsel %vm544_vm1, %v1060_v22, 2147483647  ;;  %4777 = vst [vmem:[#allocation47_spill] sm:$0xff] %v3746_v59 }
 0x126   : > { %4768 = vst [vmem:[#allocation38_spill] sm:$0xff] %v3695_v42  ;;  %v1108_v19 = vshra.s32 %v3695_v42, 16 }
 0x127   : > { %v2164_v30 = vsel %vm4731_vm8, %v2161_v1, %v2140_v39  ;;  %v1168_v1 = vshra.s32 %v3680_v41, 16  ;;  %v1068_v39 = vsel %vm1036_vm11, %v3595_v43, 32 }
 0x128   : > { %v2166_v23 = vadd.f32 %v2164_v30, %v2119_v47  ;;  %v1063_v47 = vsel %vm1031_vm12, %v3595_v43, 32  ;;  %v3719_v22 = vsel %vm544_vm1, %v1068_v39, 2147483647  ;;  %v3721_v30 = vcvt.s32.f32 %v1108_v19 }
 0x129   : > { %v3710_v6 = vcvt.s32.f32 %v1168_v1  ;;  %4772 = vst [vmem:[#allocation42_spill] sm:$0xff] %v3719_v22  ;;  %v3728_v33 = vsel %vm544_vm1, %v1063_v47, 2147483647  ;;  %v1228_v1 = vshra.s32 %v3719_v22, 16  ;;  %v1066_v47 = vsel %vm1034_vm15, %v3595_v43, 32 }
 0x12a   : > { %1141 = vmin.xlane.f32.xlu1 %v3677_v7  ;;  %2167 = vst.msk [vmem:[%s4656_s4] sm:$0x3] %vm4730_vm9, %v2166_v23  ;;  %v3716_v23 = vsel %vm544_vm1, %v1067_v45, 2147483647  ;;  %v1153_v51 = vshra.s32 %v3728_v33, 16  ;;  %v1071_v45 = vsel %vm1039_vm14, %v3595_v43, 32 }
 0x12b   : > { %1126 = vmin.xlane.f32.xlu2 %v3685_v14  ;;  %4769 = vst [vmem:[#allocation39_spill] sm:$0xff] %v3710_v6  ;;  %v3742_v39 = vcvt.s32.f32 %v1228_v1  ;;  %v3758_v46 = vsel %vm544_vm1, %v1066_v47, 2147483647  ;;  %v1069_v47 = vsel %vm1037_vm2, %v3595_v43, 32 }
 0x12c   : > { %831 = vadd.xlane.f32.xlu0 %v830_v24  ;;  %4771 = vst [vmem:[#allocation41_spill] sm:$0xff] %v3716_v23  ;;  %v1213_v24 = vshra.s32 %v3716_v23, 16  ;;  %v3749_v23 = vsel %vm544_vm1, %v1071_v45, 2147483647  ;;  %v3780_v52 = vsel %vm544_vm1, %v1069_v47, 2147483647 }
 0x12d   : > { %4773 = vst [vmem:[#allocation43_spill] sm:$0xff] %v3721_v30  ;;  %v1273_v1 = vshra.s32 %v3749_v23, 16 }
 0x12e   : > { %4774 = vst [vmem:[#allocation44_spill] sm:$0xff] %v3728_v33  ;;  %v3740_v19 = vcvt.s32.f32 %v1213_v24  ;;  %v1258_v24 = vshra.s32 %v3746_v59, 16 }
 0x12f   : > { %4776 = vst [vmem:[#allocation46_spill] sm:$0xff] %v3742_v39  ;;  %v3769_v57 = vcvt.s32.f32 %v1273_v1 }
 0x130   : > { %4775 = vst [vmem:[#allocation45_spill] sm:$0xff] %v3740_v19  ;;  %v3767_v45 = vcvt.s32.f32 %v1258_v24 }
 0x131   : > { %4778 = vst [vmem:[#allocation48_spill] sm:$0xff] %v3749_v23 }
 0x132   : > { %1186 = vmin.xlane.f32.xlu1 %v3712_v53  ;;  %4780 = vst [vmem:[#allocation50_spill] sm:$0xff] %v3758_v46 }
 0x133   : > { %1171 = vmin.xlane.f32.xlu2 %v3710_v6  ;;  %4781 = vst [vmem:[#allocation51_spill] sm:$0xff] %v3767_v45 }
 0x134   : > { %1111 = vmin.xlane.f32.xlu0 %v3721_v30  ;;  %v3751_v30 = vcvt.s32.f32 %v1153_v51  ;;  %v1198_v51 = vshra.s32 %v3758_v46, 16  ;;  %4782 = vst [vmem:[#allocation52_spill] sm:$0xff] %v3769_v57 }
 0x135   : > { %4785 = vst [vmem:[#allocation55_spill] sm:$0xff] %v3780_v52 }
 0x136   : > { %4779 = vst [vmem:[#allocation49_spill] sm:$0xff] %v3751_v30  ;;  %v3775_v59 = vcvt.s32.f32 %v1198_v51 }
 0x138   : > { %4784 = vst [vmem:[#allocation54_spill] sm:$0xff] %v3775_v59 }
 0x13a   : > { %1231 = vmin.xlane.f32.xlu1 %v3742_v39  ;;  %v4793_v39 = vld [vmem:[#allocation11_spill] sm:$0xff] }
 0x13b   : > { %1216 = vmin.xlane.f32.xlu2 %v3740_v19  ;;  %v3773_v19 = vsel %vm544_vm1, %v1073_v29, 2147483647  ;;  %v1243_v29 = vshra.s32 %v3780_v52, 16 }
 0x13c   : > { %1156 = vmin.xlane.f32.xlu0 %v3751_v30  ;;  %4783 = vst [vmem:[#allocation53_spill] sm:$0xff] %v3773_v19  ;;  %v1303_v46 = vshra.s32 %v3773_v19, 16 }
 0x13d   : > { %v3790_v47 = vcvt.s32.f32 %v1243_v29 }
 0x13e   : > { %v3787_v51 = vcvt.s32.f32 %v1303_v46 }
 0x13f   : > { %4787 = vst [vmem:[#allocation57_spill] sm:$0xff] %v3790_v47 }
 0x140   : > { %4786 = vst [vmem:[#allocation56_spill] sm:$0xff] %v3787_v51 }
 0x142   : > { %1276 = vmin.xlane.f32.xlu1 %v3769_v57 }
 0x143   : > { %1261 = vmin.xlane.f32.xlu2 %v3767_v45  ;;  %v1072_v45 = vsel %vm1040_vm3, %v3595_v43, 32 }
 0x144   : > { %1201 = vmin.xlane.f32.xlu0 %v3775_v59  ;;  %v3794_v19 = vsel %vm544_vm1, %v1072_v45, 2147483647 }
 0x145   : > { %v745_v24 = vpop.xlane.xlu1 %744  ;;  %4788 = vst [vmem:[#allocation58_spill] sm:$0xff] %v3794_v19  ;;  %v1288_v57 = vshra.s32 %v3794_v19, 16  ;;  %v4790_v19 = vld [vmem:[#allocation7_spill] sm:$0xff] }
 0x146   : > { %v739_v1 = vpop.xlane.xlu2 %738  ;;  %2754 = vrcp.f32 %v745_v24 }
 0x147   : > { %2756 = vrcp.f32 %v739_v1 }
 0x14b   : > { %1306 = vmin.xlane.f32.xlu2 %v3787_v51 }
 0x14c   : > { %1246 = vmin.xlane.f32.xlu0 %v3790_v47  ;;  %v2755_v58 = vpop.eup %2754  ;;  %v3807_v47 = vcvt.s32.f32 %v1288_v57 }
 0x14d   : > { %v3797_v59 = vpop.xlane.xlu1 %753  ;;  %v963_v52 = vmul.f32 %v2755_v58, %v3374_v61  ;;  %v2757_v43 = vpop.eup %2756 }
 0x14e   : > { %v748_v46 = vpop.xlane.xlu2 %747  ;;  %2758 = vrcp.f32 %v3797_v59  ;;  %v961_v45 = vmul.f32 %v2757_v43, %v3378_v4  ;;  %4789 = vst [vmem:[#allocation59_spill] sm:$0xff] %v3807_v47  ;;  %v4791_v43 = vld [vmem:[#allocation8_spill] sm:$0xff] }
 0x14f   : > { %v742_v29 = vpop.xlane.xlu0 %741  ;;  %995 = vst.msk [vmem:[%s3178_s13 + $0x10] sm:$0xff] %vm544_vm1, %v963_v52  ;;  %2760 = vrcp.f32 %v748_v46 }
 0x150   : > { %993 = vst.msk [vmem:[%s3178_s13] sm:$0xff] %vm544_vm1, %v961_v45  ;;  %2762 = vrcp.f32 %v742_v29  ;;  %v4792_v45 = vld [vmem:[#allocation9_spill] sm:$0xff] }
 0x154   : > { %1291 = vmin.xlane.f32.xlu0 %v3807_v47  ;;  %v2759_v61 = vpop.eup %2758 }
 0x155   : > { %v3810_v58 = vpop.xlane.xlu1 %762  ;;  %v966_v51 = vmul.f32 %v2759_v61, %v4790_v19  ;;  %v2761_v30 = vpop.eup %2760 }
 0x156   : > { %v757_v23 = vpop.xlane.xlu2 %756  ;;  %2764 = vrcp.f32 %v3810_v58  ;;  %v964_v52 = vmul.f32 %v2761_v30, %v4791_v43  ;;  %v2763_v57 = vpop.eup %2762 }
 0x157   : > { %v751_v4 = vpop.xlane.xlu0 %750  ;;  %998 = vst.msk [vmem:[%s3178_s13 + $0x28] sm:$0xff] %vm544_vm1, %v966_v51  ;;  %2766 = vrcp.f32 %v757_v23  ;;  %v962_v47 = vmul.f32 %v2763_v57, %v4792_v45  ;;  %v4794_v57 = vld [vmem:[#allocation12_spill] sm:$0xff] }
 0x158   : > { %996 = vst.msk [vmem:[%s3178_s13 + $0x18] sm:$0xff] %vm544_vm1, %v964_v52  ;;  %2768 = vrcp.f32 %v751_v4 }
 0x159   : > { %2770 = vlog2.f32 %v742_v29  ;;  %994 = vst.msk [vmem:[%s3178_s13 + $0x8] sm:$0xff] %vm544_vm1, %v962_v47 }
 0x15a   : > { %2772 = vlog2.f32 %v739_v1  ;;  %v4795_v1 = vld [vmem:[#allocation10_spill] sm:$0xff] }
 0x15c   : > { %v2765_v19 = vpop.eup %2764 }
 0x15d   : > { %v3822_v61 = vpop.xlane.xlu1 %771  ;;  %v969_v51 = vmul.f32 %v2765_v19, %v4793_v39  ;;  %v2767_v43 = vpop.eup %2766 }
 0x15e   : > { %v3825_v30 = vpop.xlane.xlu2 %765  ;;  %2774 = vrcp.f32 %v3822_v61  ;;  %v967_v29 = vmul.f32 %v2767_v43, %v4794_v57  ;;  %v2769_v45 = vpop.eup %2768  ;;  %v4796_v43 = vld [vmem:[#allocation14_spill] sm:$0xff] }
 0x15f   : > { %v760_v52 = vpop.xlane.xlu0 %759  ;;  %1001 = vst.msk [vmem:[%s3178_s13 + $0x40] sm:$0xff] %vm544_vm1, %v969_v51  ;;  %2776 = vrcp.f32 %v3825_v30  ;;  %v2771_v47 = vpop.eup %2770  ;;  %v965_v33 = vmul.f32 %v2769_v45, %v4795_v1 }
 0x160   : > { %2778 = vlog2.f32 %v745_v24  ;;  %999 = vst.msk [vmem:[%s3178_s13 + $0x30] sm:$0xff] %vm544_vm1, %v967_v29  ;;  %v2773_v39 = vpop.eup %2772  ;;  %v836_v51 = vmul.f32 0.6931472, %v2771_v47 }
 0x161   : > { %2780 = vrcp.f32 %v760_v52  ;;  %997 = vst.msk [vmem:[%s3178_s13 + $0x20] sm:$0xff] %vm544_vm1, %v965_v33  ;;  %v834_v29 = vmul.f32 0.6931472, %v2773_v39  ;;  %v4797_v33 = vld [vmem:[#allocation15_spill] sm:$0xff] }
 0x162   : > { %2782 = vlog2.f32 %v748_v46  ;;  %v898_v47 = vadd.f32 %v836_v51, %v3366_v54  ;;  %v4799_v51 = vld [vmem:[#allocation19_spill] sm:$0xff] }
 0x163   : > { %2784 = vlog2.f32 %v751_v4  ;;  %v4798_v4 = vld [vmem:[#allocation13_spill] sm:$0xff]  ;;  %v897_v53 = vadd.f32 %v834_v29, %v3356_v38 }
 0x164   : > { %v2775_v19 = vpop.eup %2774 }
 0x165   : > { %v3837_v22 = vpop.xlane.xlu1 %780  ;;  %v972_v57 = vmul.f32 %v2775_v19, %v4796_v43  ;;  %v2777_v24 = vpop.eup %2776 }
 0x166   : > { %v3840_v35 = vpop.xlane.xlu2 %774  ;;  %2786 = vrcp.f32 %v3837_v22  ;;  %v2779_v1 = vpop.eup %2778  ;;  %v970_v46 = vmul.f32 %v2777_v24, %v4797_v33  ;;  %v2021_v24 = vadd.f32 %v898_v47, %v897_v53 }
 0x167   : > { %v769_v45 = vpop.xlane.xlu0 %768  ;;  %1004 = vst.msk [vmem:[%s3178_s13 + $0x58] sm:$0xff] %vm544_vm1, %v972_v57  ;;  %v2781_v6 = vpop.eup %2780  ;;  %2788 = vrcp.f32 %v3840_v35  ;;  %v838_v39 = vmul.f32 0.6931472, %v2779_v1 }
 0x168   : > { %1002 = vst.msk [vmem:[%s3178_s13 + $0x48] sm:$0xff] %vm544_vm1, %v970_v46  ;;  %v968_v19 = vmul.f32 %v2781_v6, %v4798_v4  ;;  %v2783_v43 = vpop.eup %2782  ;;  %2790 = vrcp.f32 %v769_v45 }
 0x169   : > { %v2785_v42 = vpop.eup %2784  ;;  %2792 = vlog2.f32 %v3797_v59  ;;  %v899_v1 = vadd.f32 %v838_v39, %v3354_v37  ;;  %v840_v38 = vmul.f32 0.6931472, %v2783_v43 }
 0x16a   : > { %1000 = vst.msk [vmem:[%s3178_s13 + $0x38] sm:$0xff] %vm544_vm1, %v968_v19  ;;  %2794 = vlog2.f32 %v757_v23  ;;  %v842_v29 = vmul.f32 0.6931472, %v2785_v42  ;;  %v4800_v19 = vld [vmem:[#allocation18_spill] sm:$0xff] }
 0x16b   : > { %v2022_v59 = vadd.f32 %v2021_v24, %v899_v1  ;;  %v900_v42 = vadd.f32 %v840_v38, %v3364_v50 }
 0x16c   : > { %v2787_v57 = vpop.eup %2786  ;;  %v901_v43 = vadd.f32 %v842_v29, %v3352_v36 }
 0x16d   : > { %v790_v54 = vpop.xlane.xlu1 %789  ;;  %v975_v33 = vmul.f32 %v2787_v57, %v4799_v51  ;;  %v2789_v6 = vpop.eup %2788  ;;  %v2023_v57 = vadd.f32 %v2022_v59, %v900_v42 }
 0x16e   : > { %v3856_v46 = vpop.xlane.xlu2 %783  ;;  %2796 = vrcp.f32 %v790_v54  ;;  %v973_v53 = vmul.f32 %v2789_v6, %v3479_v44  ;;  %v2791_v23 = vpop.eup %2790 }
 0x16f   : > { %v3859_v4 = vpop.xlane.xlu0 %777  ;;  %2798 = vlog2.f32 %v760_v52  ;;  %1007 = vst.msk [vmem:[%s3178_s13 + $0x70] sm:$0xff] %vm544_vm1, %v975_v33  ;;  %v2793_v47 = vpop.eup %2792  ;;  %v971_v37 = vmul.f32 %v2791_v23, %v4800_v19  ;;  %v2024_v6 = vadd.f32 %v2023_v57, %v901_v43 }
 0x170   : > { %2800 = vrcp.f32 %v3856_v46  ;;  %1005 = vst.msk [vmem:[%s3178_s13 + $0x60] sm:$0xff] %vm544_vm1, %v973_v53  ;;  %v2795_v52 = vpop.eup %2794  ;;  %v844_v39 = vmul.f32 0.6931472, %v2793_v47 }
 0x171   : > { %2802 = vrcp.f32 %v3859_v4  ;;  %1003 = vst.msk [vmem:[%s3178_s13 + $0x50] sm:$0xff] %vm544_vm1, %v971_v37  ;;  %v846_v29 = vmul.f32 0.6931472, %v2795_v52 }
 0x172   : > { %2804 = vlog2.f32 %v3810_v58 }
 0x173   : > { %2806 = vlog2.f32 %v3825_v30  ;;  %v902_v30 = vadd.f32 %v844_v39, %v3362_v49  ;;  %v903_v49 = vadd.f32 %v846_v29, %v3388_v20  ;;  %v4802_v29 = vld [vmem:[#allocation16_spill] sm:$0xff] }
 0x174   : > { %v2797_v44 = vpop.eup %2796  ;;  %2808 = vlog2.f32 %v769_v45 }
 0x175   : > { %v799_v24 = vpop.xlane.xlu1 %798  ;;  %v2799_v51 = vpop.eup %2798  ;;  %v978_v50 = vmul.f32 %v2797_v44, %v3504_v48  ;;  %v2025_v59 = vadd.f32 %v2024_v6, %v902_v30 }
 0x176   : > { %v793_v36 = vpop.xlane.xlu2 %792  ;;  %v2801_v33 = vpop.eup %2800  ;;  %2810 = vrcp.f32 %v799_v24  ;;  %v848_v53 = vmul.f32 0.6931472, %v2799_v51 }
 0x177   : > { %v787_v1 = vpop.xlane.xlu0 %786  ;;  %2812 = vlog2.f32 %v790_v54  ;;  %1010 = vst.msk [vmem:[%s3178_s13 + $0x88] sm:$0xff] %vm544_vm1, %v978_v50  ;;  %v976_v58 = vmul.f32 %v2801_v33, %v3508_v3  ;;  %v2803_v38 = vpop.eup %2802  ;;  %v2026_v44 = vadd.f32 %v2025_v59, %v903_v49 }
 0x178   : > { %2814 = vrcp.f32 %v793_v36  ;;  %v2805_v45 = vpop.eup %2804  ;;  %v974_v48 = vmul.f32 %v2803_v38, %v3494_v28  ;;  %v904_v47 = vadd.f32 %v848_v53, %v3386_v16 }
 0x179   : > { %1008 = vst.msk [vmem:[%s3178_s13 + $0x78] sm:$0xff] %vm544_vm1, %v976_v58  ;;  %2816 = vlog2.f32 %v787_v1  ;;  %v2807_v23 = vpop.eup %2806  ;;  %v850_v42 = vmul.f32 0.6931472, %v2805_v45 }
 0x17a   : > { %2818 = vrcp.f32 %v787_v1  ;;  %v2809_v54 = vpop.eup %2808  ;;  %1006 = vst.msk [vmem:[%s3178_s13 + $0x68] sm:$0xff] %vm544_vm1, %v974_v48  ;;  %v4801_v1 = vld [vmem:[#allocation17_spill] sm:$0xff] }
 0x17b   : > { %2820 = vlog2.f32 %v793_v36  ;;  %v854_v6 = vmul.f32 0.6931472, %v2809_v54 }
 0x17c   : > { %v2811_v3 = vpop.eup %2810  ;;  %2822 = vlog2.f32 %v3822_v61  ;;  %v2027_v61 = vadd.f32 %v2026_v44, %v904_v47 }
 0x17d   : > { %v808_v19 = vpop.xlane.xlu1 %807  ;;  %v2813_v37 = vpop.eup %2812  ;;  %2824 = vlog2.f32 %v3840_v35  ;;  %v981_v28 = vmul.f32 %v2811_v3, %v3533_v5  ;;  %v905_v5 = vadd.f32 %v850_v42, %v3384_v15 }
 0x17e   : > { %v802_v43 = vpop.xlane.xlu2 %801  ;;  %v2815_v52 = vpop.eup %2814  ;;  %2826 = vrcp.f32 %v808_v19  ;;  %v868_v51 = vmul.f32 0.6931472, %v2813_v37 }
 0x17f   : > { %v796_v39 = vpop.xlane.xlu0 %795  ;;  %v2817_v57 = vpop.eup %2816  ;;  %2828 = vlog2.f32 %v799_v24  ;;  %1013 = vst.msk [vmem:[%s3178_s13 + $0xa0] sm:$0xff] %vm544_vm1, %v981_v28  ;;  %v979_v20 = vmul.f32 %v2815_v52, %v3537_v0  ;;  %v852_v24 = vmul.f32 0.6931472, %v2807_v23  ;;  %v2028_v30 = vadd.f32 %v2027_v61, %v905_v5 }
 0x180   : > { %v2819_v16 = vpop.eup %2818  ;;  %v866_v50 = vmul.f32 0.6931472, %v2817_v57  ;;  %2830 = vrcp.f32 %v802_v43  ;;  %v914_v15 = vadd.f32 %v868_v51, %v4802_v29 }
 0x181   : > { %v2821_v35 = vpop.eup %2820  ;;  %1011 = vst.msk [vmem:[%s3178_s13 + $0x90] sm:$0xff] %vm544_vm1, %v979_v20  ;;  %v977_v36 = vmul.f32 %v2819_v16, %v3523_v32  ;;  %2832 = vlog2.f32 %v796_v39  ;;  %v906_v54 = vadd.f32 %v852_v24, %v3417_v8  ;;  %v4805_v16 = vld [vmem:[#allocation21_spill] sm:$0xff] }
 0x182   : > { %v2823_v33 = vpop.eup %2822  ;;  %v913_v58 = vadd.f32 %v866_v50, %v4801_v1  ;;  %2834 = vrcp.f32 %v796_v39  ;;  %v870_v53 = vmul.f32 0.6931472, %v2821_v35 }
 0x183   : > { %v2825_v0 = vpop.eup %2824  ;;  %2836 = vlog2.f32 %v3859_v4  ;;  %1009 = vst.msk [vmem:[%s3178_s13 + $0x80] sm:$0xff] %vm544_vm1, %v977_v36  ;;  %v907_v4 = vadd.f32 %v854_v6, %v3412_v62  ;;  %v856_v37 = vmul.f32 0.6931472, %v2823_v33  ;;  %v2029_v28 = vadd.f32 %v2028_v30, %v906_v54  ;;  %v4806_v6 = vld [vmem:[#allocation20_spill] sm:$0xff] }
 0x184   : > { %v2827_v38 = vpop.eup %2826  ;;  %2838 = vlog2.f32 %v802_v43  ;;  %v2042_v3 = vadd.f32 %v914_v15, %v913_v58  ;;  %v858_v51 = vmul.f32 0.6931472, %v2825_v0 }
 0x185   : > { %v817_v32 = vpop.xlane.xlu1 %816  ;;  %v2829_v45 = vpop.eup %2828  ;;  %2840 = vlog2.f32 %v3837_v22  ;;  %v984_v48 = vmul.f32 %v2827_v38, %v3562_v11  ;;  %v4803_v11 = vld [vmem:[#allocation22_spill] sm:$0xff]  ;;  %v2030_v57 = vadd.f32 %v2029_v28, %v907_v4  ;;  %v908_v35 = vadd.f32 %v856_v37, %v3410_v60  ;;  %v4808_v28 = vld [vmem:[#allocation24_spill] sm:$0xff] }
 0x186   : > { %v811_v23 = vpop.xlane.xlu2 %810  ;;  %v2831_v59 = vpop.eup %2830  ;;  %2842 = vlog2.f32 %v808_v19  ;;  %v915_v43 = vadd.f32 %v870_v53, %v4803_v11  ;;  %v874_v62 = vmul.f32 0.6931472, %v2829_v45  ;;  %v4804_v19 = vld [vmem:[#allocation28_spill] sm:$0xff]  ;;  %v909_v60 = vadd.f32 %v858_v51, %v3443_v10 }
 0x187   : > { %v805_v49 = vpop.xlane.xlu0 %804  ;;  %v2833_v47 = vpop.eup %2832  ;;  %1016 = vst.msk [vmem:[%s3178_s13 + $0xb8] sm:$0xff] %vm544_vm1, %v984_v48  ;;  %v982_v42 = vmul.f32 %v2831_v59, %v3567_v27  ;;  %2844 = vrcp.f32 %v817_v32  ;;  %v2031_v0 = vadd.f32 %v2030_v57, %v908_v35 }
 0x188   : > { %v2835_v22 = vpop.eup %2834  ;;  %v872_v52 = vmul.f32 0.6931472, %v2833_v47  ;;  %2846 = vlog2.f32 %v811_v23  ;;  %v2043_v20 = vadd.f32 %v2042_v3, %v915_v43  ;;  %v917_v58 = vadd.f32 %v874_v62, %v4806_v6  ;;  %v4807_v3 = vld [vmem:[#allocation25_spill] sm:$0xff] }
 0x189   : > { %v2837_v8 = vpop.eup %2836  ;;  %1014 = vst.msk [vmem:[%s3178_s13 + $0xa8] sm:$0xff] %vm544_vm1, %v982_v42  ;;  %v980_v44 = vmul.f32 %v2835_v22, %v4804_v19  ;;  %2848 = vrcp.f32 %v811_v23  ;;  %v1092_v23 = vand.u32 65535, %v3624_v12  ;;  %v2032_v42 = vadd.f32 %v2031_v0, %v909_v60 }
 0x18a   : > { %v2839_v39 = vpop.eup %2838  ;;  %v916_v27 = vadd.f32 %v872_v52, %v4805_v16  ;;  %2850 = vlog2.f32 %v805_v49  ;;  %v860_v5 = vmul.f32 0.6931472, %v2837_v8  ;;  %v4809_v8 = vld [vmem:[#allocation23_spill] sm:$0xff] }
 0x18b   : > { %v2841_v61 = vpop.eup %2840  ;;  %1012 = vst.msk [vmem:[%s3178_s13 + $0x98] sm:$0xff] %vm544_vm1, %v980_v44  ;;  %2852 = vrcp.f32 %v805_v49  ;;  %v876_v38 = vmul.f32 0.6931472, %v2839_v39  ;;  %v1094_v39 = vcvt.s32.f32 %v1092_v23 }
 0x18c   : > { %v2843_v50 = vpop.eup %2842  ;;  %2854 = vlog2.f32 %v3856_v46  ;;  %v2044_v36 = vadd.f32 %v2043_v20, %v916_v27  ;;  %v910_v54 = vadd.f32 %v860_v5, %v3438_v9  ;;  %v862_v37 = vmul.f32 0.6931472, %v2841_v61 }
 0x18d   : > { %v826_v33 = vpop.xlane.xlu1 %825  ;;  %v2845_v24 = vpop.eup %2844  ;;  %2856 = vlog2.f32 %v817_v32  ;;  %v880_v4 = vmul.f32 0.6931472, %v2843_v50  ;;  %v918_v49 = vadd.f32 %v876_v38, %v4807_v3  ;;  %v1137_v5 = vand.u32 65535, %v3653_v34  ;;  %v4810_v38 = vld [vmem:[#allocation29_spill] sm:$0xff] }
 0x18e   : > { %v820_v30 = vpop.xlane.xlu2 %819  ;;  %v2847_v15 = vpop.eup %2846  ;;  %v987_v53 = vmul.f32 %v2845_v24, %v3592_v31  ;;  %2858 = vrcp.f32 %v826_v33  ;;  %v2045_v46 = vadd.f32 %v2044_v36, %v917_v58  ;;  %v2033_v52 = vadd.f32 %v2032_v42, %v910_v54 }
 0x18f   : > { %v814_v45 = vpop.xlane.xlu0 %813  ;;  %v2849_v48 = vpop.eup %2848  ;;  %2860 = vlog2.f32 %v820_v30  ;;  %v920_v62 = vadd.f32 %v880_v4, %v4809_v8  ;;  %v882_v19 = vmul.f32 0.6931472, %v2847_v15  ;;  %v911_v51 = vadd.f32 %v862_v37, %v3436_v56 }
 0x190   : > { %v2851_v59 = vpop.eup %2850  ;;  %1019 = vst.msk [vmem:[%s3178_s13 + $0xd0] sm:$0xff] %vm544_vm1, %v987_v53  ;;  %v985_v32 = vmul.f32 %v2849_v48, %v3599_v18  ;;  %2862 = vrcp.f32 %v820_v30  ;;  %v2046_v22 = vadd.f32 %v2045_v46, %v918_v49  ;;  %v4811_v53 = vld [vmem:[#allocation27_spill] sm:$0xff] }
 0x191   : > { %v2853_v31 = vpop.eup %2852  ;;  %v878_v47 = vmul.f32 0.6931472, %v2851_v59  ;;  %2864 = vlog2.f32 %v814_v45  ;;  %v921_v56 = vadd.f32 %v882_v19, %v4810_v38  ;;  %v2034_v15 = vadd.f32 %v2033_v52, %v911_v51  ;;  %v4812_v59 = vld [vmem:[#allocation26_spill] sm:$0xff]  ;;  %v4814_v19 = vld [vmem:[#allocation36_spill] sm:$0xff] }
 0x192   : > { %v2855_v10 = vpop.eup %2854  ;;  %1017 = vst.msk [vmem:[%s3178_s13 + $0xc0] sm:$0xff] %vm544_vm1, %v985_v32  ;;  %v983_v12 = vmul.f32 %v2853_v31, %v3582_v63  ;;  %2866 = vrcp.f32 %v814_v45  ;;  %v1139_v31 = vcvt.s32.f32 %v1137_v5 }
 0x193   : > { %v2857_v9 = vpop.eup %2856  ;;  %v919_v43 = vadd.f32 %v878_v47, %v4808_v28  ;;  %2868 = vlog2.f32 %v826_v33  ;;  %v864_v24 = vmul.f32 0.6931472, %v2855_v10 }
 0x194   : > { %v2859_v18 = vpop.eup %2858  ;;  %1015 = vst.msk [vmem:[%s3178_s13 + $0xb0] sm:$0xff] %vm544_vm1, %v983_v12  ;;  %v886_v33 = vmul.f32 0.6931472, %v2857_v9 }
 0x195   : > { %v3934_v44 = vpop.xlane.xlu1 %1096  ;;  %v2861_v57 = vpop.eup %2860  ;;  %v2047_v20 = vadd.f32 %v2046_v22, %v919_v43  ;;  %v990_v63 = vmul.f32 %v2859_v18, %v3621_v26  ;;  %v912_v60 = vadd.f32 %v864_v24, %v3469_v21  ;;  %v4813_v18 = vld [vmem:[#allocation32_spill] sm:$0xff] }
 0x196   : > { %v829_v27 = vpop.xlane.xlu2 %828  ;;  %vm1098_vm4 = vcmp.eq.f32.partialorder %v3646_v55, %v3934_v44  ;;  %v2863_v61 = vpop.eup %2862  ;;  %v888_v46 = vmul.f32 0.6931472, %v2861_v57  ;;  %v923_v54 = vadd.f32 %v886_v33, %v4812_v59 }
 0x197   : > { %2870 = vlog2.f32 %v829_v27  ;;  %v823_v50 = vpop.xlane.xlu0 %822  ;;  %v1099_v35 = vsel %vm1098_vm4, %v1094_v39, inf  ;;  %v2865_v36 = vpop.eup %2864  ;;  %v2048_v58 = vadd.f32 %v2047_v20, %v920_v62  ;;  %1022 = vst.msk [vmem:[%s3178_s13 + $0xe8] sm:$0xff] %vm544_vm1, %v990_v63  ;;  %v988_v26 = vmul.f32 %v2863_v61, %v3628_v25  ;;  %v4815_v63 = vld [vmem:[#allocation31_spill] sm:$0xff] }
 0x198   : > { %2872 = vrcp.f32 %v829_v27  ;;  %1100 = vmin.xlane.f32.xlu2 %v1099_v35  ;;  %v2867_v55 = vpop.eup %2866  ;;  %v884_v30 = vmul.f32 0.6931472, %v2865_v36  ;;  %v1122_v25 = vand.u32 65535, %v3659_v13  ;;  %v2035_v49 = vadd.f32 %v2034_v15, %v912_v60  ;;  %v4817_v36 = vld [vmem:[#allocation38_spill] sm:$0xff]  ;;  %v4821_v60 = vld [vmem:[#allocation37_spill] sm:$0xff] }
 0x199   : > { %2874 = vlog2.f32 %v823_v50  ;;  %1020 = vst.msk [vmem:[%s3178_s13 + $0xd8] sm:$0xff] %vm544_vm1, %v988_v26  ;;  %v986_v34 = vmul.f32 %v2867_v55, %v3612_v2  ;;  %v2049_v0 = vadd.f32 %v2048_v58, %v921_v56  ;;  %v2869_v48 = vpop.eup %2868  ;;  %v924_v52 = vadd.f32 %v888_v46, %v4813_v18  ;;  %v4819_v15 = vld [vmem:[#allocation34_spill] sm:$0xff] }
 0x19a   : > { %2876 = vrcp.f32 %v823_v50  ;;  %v922_v45 = vadd.f32 %v884_v30, %v4811_v53  ;;  %v1124_v9 = vcvt.s32.f32 %v1122_v25  ;;  %v892_v43 = vmul.f32 0.6931472, %v2869_v48  ;;  %v4816_v50 = vld [vmem:[#allocation30_spill] sm:$0xff]  ;;  %v4820_v48 = vld [vmem:[#allocation39_spill] sm:$0xff] }
 0x19b   : > { %1018 = vst.msk [vmem:[%s3178_s13 + $0xc8] sm:$0xff] %vm544_vm1, %v986_v34  ;;  %v2036_v57 = vrot.slane %v2035_v49, 4  ;;  %v1107_v24 = vand.u32 65535, %v4817_v36  ;;  %v4829_v36 = vld [vmem:[#allocation49_spill] sm:$0xff] }
 0x19c   : > { %v2050_v4 = vadd.f32 %v2049_v0, %v922_v45  ;;  %v926_v35 = vadd.f32 %v892_v43, %v4816_v50 }
 0x19d   : > { %v2871_v23 = vpop.eup %2870  ;;  %v3954_v32 = vpop.xlane.xlu1 %1141  ;;  %v2037_v26 = vadd.f32 %v2036_v57, %v2035_v49 }
 0x19e   : > { %v2873_v2 = vpop.eup %2872  ;;  %v3956_v47 = vpop.xlane.xlu2 %1126  ;;  %vm1143_vm5 = vcmp.eq.f32.partialorder %v3677_v7, %v3954_v32  ;;  %v2051_v10 = vadd.f32 %v2050_v4, %v923_v54  ;;  %v1182_v7 = vand.u32 65535, %v3688_v17  ;;  %v894_v61 = vmul.f32 0.6931472, %v2871_v23  ;;  %v4822_v54 = vld [vmem:[#allocation42_spill] sm:$0xff] }
 0x19f   : > { %v2875_v13 = vpop.eup %2874  ;;  %v991_v37 = vmul.f32 %v2873_v2, %v3648_v40  ;;  %v832_v42 = vpop.xlane.xlu0 %831  ;;  %v1144_v12 = vsel %vm1143_vm5, %v1139_v31, inf  ;;  %v1167_v40 = vand.u32 65535, %v3680_v41  ;;  %vm1128_vm6 = vcmp.eq.f32.partialorder %v3685_v14, %v3956_v47  ;;  %v4818_v14 = vld [vmem:[#allocation40_spill] sm:$0xff]  ;;  %v4823_v2 = vld [vmem:[#allocation35_spill] sm:$0xff] }
 0x1a0   : > { %v2877_v22 = vpop.eup %2876  ;;  %v890_v62 = vmul.f32 0.6931472, %v2875_v13  ;;  %2878 = vlog2.f32 %v832_v42  ;;  %1145 = vmin.xlane.f32.xlu2 %v1144_v12  ;;  %v2052_v20 = vadd.f32 %v2051_v10, %v924_v52  ;;  %v1129_v51 = vsel %vm1128_vm6, %v1124_v9, inf  ;;  %v4824_v10 = vld [vmem:[#allocation43_spill] sm:$0xff]  ;;  %v4826_v9 = vld [vmem:[#allocation44_spill] sm:$0xff] }
 0x1a1   : > { %1023 = vst.msk [vmem:[%s3178_s13 + $0xf0] sm:$0xff] %vm544_vm1, %v991_v37  ;;  %v989_v39 = vmul.f32 %v2877_v22, %v4814_v19  ;;  %2880 = vrcp.f32 %v832_v42  ;;  %1130 = vmin.xlane.f32.xlu0 %v1129_v51  ;;  %v1184_v41 = vcvt.s32.f32 %v1182_v7  ;;  %v1169_v56 = vcvt.s32.f32 %v1167_v40  ;;  %v4825_v42 = vld [vmem:[#allocation41_spill] sm:$0xff]  ;;  %v4827_v40 = vld [vmem:[#allocation46_spill] sm:$0xff] }
 0x1a2   : > { %v925_v27 = vadd.f32 %v890_v62, %v4815_v63  ;;  %v927_v34 = vadd.f32 %v894_v61, %v4819_v15  ;;  %v1109_v23 = vcvt.s32.f32 %v1107_v24  ;;  %v1227_v4 = vand.u32 65535, %v4822_v54  ;;  %v4833_v54 = vld [vmem:[#allocation52_spill] sm:$0xff] }
 0x1a3   : > { %1021 = vst.msk [vmem:[%s3178_s13 + $0xe0] sm:$0xff] %vm544_vm1, %v989_v39  ;;  %v1212_v12 = vand.u32 65535, %v4825_v42  ;;  %v1152_v22 = vand.u32 65535, %v4826_v9  ;;  %v2038_v43 = vrot.slane %v2037_v26, 2  ;;  %v4834_v42 = vld [vmem:[#allocation51_spill] sm:$0xff]  ;;  %v4835_v9 = vld [vmem:[#allocation54_spill] sm:$0xff] }
 0x1a4   : > { %v2053_v5 = vadd.f32 %v2052_v20, %v925_v27  ;;  %v1229_v39 = vcvt.s32.f32 %v1227_v4 }
 0x1a5   : > { %v3974_v17 = vpop.xlane.xlu1 %1186  ;;  %v1214_v57 = vcvt.s32.f32 %v1212_v12  ;;  %v1154_v20 = vcvt.s32.f32 %v1152_v22  ;;  %v2039_v27 = vadd.f32 %v2038_v43, %v2037_v26  ;;  %v2020_v12 = vld [vmem:[%s4655_s3] sm:$0x3] }
 0x1a6   : > { %v2879_v58 = vpop.eup %2878  ;;  %v2054_v55 = vadd.f32 %v2053_v5, %v926_v35  ;;  %v3976_v33 = vpop.xlane.xlu2 %1171  ;;  %vm1188_vm7 = vcmp.eq.f32.partialorder %v4818_v14, %v3974_v17  ;;  %v4828_v5 = vld [vmem:[#allocation45_spill] sm:$0xff] }
 0x1a7   : > { %v2881_v30 = vpop.eup %2880  ;;  %v896_v0 = vmul.f32 0.6931472, %v2879_v58  ;;  %v3981_v45 = vpop.xlane.xlu0 %1111  ;;  %v1189_v25 = vsel %vm1188_vm7, %v1184_v41, inf  ;;  %vm1173_vm10 = vcmp.eq.f32.partialorder %v4820_v48, %v3976_v33 }
 0x1a8   : > { %v992_v46 = vmul.f32 %v2881_v30, %v4821_v60  ;;  %1190 = vmin.xlane.f32.xlu2 %v1189_v25  ;;  %v2055_v31 = vadd.f32 %v2054_v55, %v927_v34  ;;  %v1174_v13 = vsel %vm1173_vm10, %v1169_v56, inf  ;;  %vm1113_vm11 = vcmp.eq.f32.partialorder %v4824_v10, %v3981_v45  ;;  %v4830_v55 = vld [vmem:[#allocation48_spill] sm:$0xff]  ;;  %v4831_v56 = vld [vmem:[#allocation47_spill] sm:$0xff]  ;;  %v4832_v34 = vld [vmem:[#allocation50_spill] sm:$0xff] }
 0x1a9   : > { %v928_v49 = vadd.f32 %v896_v0, %v4823_v2  ;;  %v1114_v37 = vsel %vm1113_vm11, %v1109_v23, inf  ;;  %1175 = vmin.xlane.f32.xlu0 %v1174_v13  ;;  %v1272_v14 = vand.u32 65535, %v4830_v55  ;;  %v1257_v30 = vand.u32 65535, %v4831_v56 }
 0x1aa   : > { %1024 = vst.msk [vmem:[%s3178_s13 + $0xf8] sm:$0xff] %vm544_vm1, %v992_v46  ;;  %1115 = vmin.xlane.f32.xlu1 %v1114_v37  ;;  %v1197_v26 = vand.u32 65535, %v4832_v34  ;;  %v2040_v0 = vrot.slane %v2039_v27, 1  ;;  %vm1574_vm10 = vcmask 130112   ;;  %vm1578_vm11 = vcmask 195712  }
 0x1ab   : > { %v2056_v52 = vadd.f32 %v2055_v31, %v928_v49  ;;  %v1274_v46 = vcvt.s32.f32 %v1272_v14  ;;  %v1259_v4 = vcvt.s32.f32 %v1257_v30 }
 0x1ac   : > { %v1199_v31 = vcvt.s32.f32 %v1197_v26  ;;  %v2041_v49 = vadd.f32 %v2040_v0, %v2039_v27  ;;  %v2882_v27 = vld [vmem:[%s3176_s12 + $0x80] sm:$0xff]  ;;  %v2883_v26 = vld [vmem:[%s3176_s12 + $0x78] sm:$0xff] }
 0x1ad   : > { %v2057_v62 = vrot.slane %v2056_v52, 4  ;;  %v3994_v19 = vpop.xlane.xlu1 %1231  ;;  %vm1043_vm3 = vcmp.eq.f32.partialorder %v2882_v27, %v4801_v1  ;;  %v4841_v1 = vld [vmem:[#allocation58_spill] sm:$0xff]  ;;  %vm1042_vm6 = vcmp.eq.f32.partialorder %v2883_v26, %v3469_v21 }
 0x1ae   : > { %v3996_v7 = vpop.xlane.xlu2 %1216  ;;  %vm1233_vm12 = vcmp.eq.f32.partialorder %v4827_v40, %v3994_v19  ;;  %v1287_v34 = vand.u32 65535, %v4841_v1 }
 0x1af   : > { %v2058_v61 = vadd.f32 %v2057_v62, %v2056_v52  ;;  %v4000_v51 = vpop.xlane.xlu0 %1156  ;;  %v1234_v35 = vsel %vm1233_vm12, %v1229_v39, inf  ;;  %vm1218_vm13 = vcmp.eq.f32.partialorder %v4828_v5, %v3996_v7  ;;  %v4836_v39 = vld [vmem:[#allocation53_spill] sm:$0xff]  ;;  %vm1582_vm12 = vcmask 261312  }
 0x1b0   : > { %1235 = vmin.xlane.f32.xlu2 %v1234_v35  ;;  %vm1158_vm14 = vcmp.eq.f32.partialorder %v4829_v36, %v4000_v51  ;;  %v1219_v41 = vsel %vm1218_vm13, %v1214_v57, inf  ;;  %v1302_v40 = vand.u32 65535, %v4836_v39  ;;  %v4837_v57 = vld [vmem:[#allocation55_spill] sm:$0xff]  ;;  %v4838_v36 = vld [vmem:[#allocation56_spill] sm:$0xff]  ;;  %v1133_v39 = vcvt.f32.s32 %v3956_v47 }
 0x1b1   : > { %v2059_v24 = vrot.slane %v2058_v61, 2  ;;  %v1159_v58 = vsel %vm1158_vm14, %v1154_v20, inf  ;;  %1220 = vmin.xlane.f32.xlu0 %v1219_v41  ;;  %v1242_v20 = vand.u32 65535, %v4837_v57  ;;  %v4839_v41 = vld [vmem:[#allocation57_spill] sm:$0xff]  ;;  %vm1586_vm13 = vcmask 326912  }
 0x1b2   : > { %1160 = vmin.xlane.f32.xlu1 %v1159_v58  ;;  %v1304_v5 = vcvt.s32.f32 %v1302_v40  ;;  %v4840_v58 = vld [vmem:[#allocation33_spill] sm:$0xff]  ;;  %v1134_v27 = vshll.u32 %v1133_v39, 16  ;;  %vm1590_vm14 = vcmask 392512  }
 0x1b3   : > { %v2060_v25 = vadd.f32 %v2059_v24, %v2058_v61  ;;  %v1244_v24 = vcvt.s32.f32 %v1242_v20  ;;  %v1075_v55 = vsel %vm1043_vm3, %v4840_v58, 32  ;;  %v4071_v47 = vadd.s32 4294967288, %v4840_v58 }
 0x1b4   : > { %v4043_v30 = vsel %vm544_vm1, %v1075_v55, 2147483647  ;;  %vm1606_vm3 = vcmask 654912  }
 0x1b5   : > { %v2061_v48 = vrot.slane %v2060_v25, 1  ;;  %v4009_v60 = vpop.xlane.xlu1 %1276  ;;  %v1333_v0 = vshra.s32 %v4043_v30, 16 }
 0x1b6   : > { %v4011_v23 = vpop.xlane.xlu2 %1261  ;;  %vm1278_vm15 = vcmp.eq.f32.partialorder %v4833_v54, %v4009_v60  ;;  %v4842_v54 = vld [vmem:[#allocation59_spill] sm:$0xff] }
 0x1b7   : > { %v2062_v13 = vadd.f32 %v2061_v48, %v2060_v25  ;;  %v4015_v10 = vpop.xlane.xlu0 %1201  ;;  %v1279_v37 = vsel %vm1278_vm15, %v1274_v46, inf  ;;  %vm1263_vm0 = vcmp.eq.f32.partialorder %v4834_v42, %v4011_v23  ;;  %v1289_v48 = vcvt.s32.f32 %v1287_v34 }
 0x1b8   : > { %1280 = vmin.xlane.f32.xlu2 %v1279_v37  ;;  %vm1203_vm2 = vcmp.eq.f32.partialorder %v4835_v9, %v4015_v10  ;;  %v1264_v22 = vsel %vm1263_vm0, %v1259_v4, inf  ;;  %v1074_v46 = vsel %vm1042_vm6, %v4840_v58, 32  ;;  %v1103_v37 = vcvt.f32.s32 %v3934_v44 }
 0x1b9   : > { %v1204_v43 = vsel %vm1203_vm2, %v1199_v31, inf  ;;  %v2065_v52 = vsel %vm4731_vm8, %v2062_v13, %v2041_v49  ;;  %1265 = vmin.xlane.f32.xlu0 %v1264_v22  ;;  %v4054_v31 = vcvt.s32.f32 %v1333_v0  ;;  %v4057_v49 = vsel %vm544_vm1, %v1074_v46, 2147483647 }
 0x1ba   : > { %v2067_v62 = vadd.f32 %v2065_v52, %v2020_v12  ;;  %1205 = vmin.xlane.f32.xlu1 %v1204_v43  ;;  %v1318_v21 = vshra.s32 %v4057_v49, 16  ;;  %v1104_v12 = vshll.u32 %v1103_v37, 16  ;;  %v1148_v43 = vcvt.f32.s32 %v3954_v32 }
 0x1bb   : > { %v1118_v44 = vcvt.f32.s32 %v3981_v45  ;;  %v4075_v46 = vadd.s32 4294967280, %v4840_v58  ;;  %v1163_v37 = vcvt.f32.s32 %v4000_v51  ;;  %vm1594_vm15 = vcmask 458112  }
 0x1bc   : > { %2069 = vst.msk [vmem:[%s4655_s3] sm:$0x3] %vm4730_vm9, %v2067_v62  ;;  %v4061_v13 = vcvt.s32.f32 %v1318_v21  ;;  %v1149_v62 = vshll.u32 %v1148_v43, 16  ;;  %vm1598_vm0 = vcmask 523712   ;;  %vm1602_vm2 = vcmask 589312  }
 0x1bd   : > { %v1119_v34 = vshll.u32 %v1118_v44, 16  ;;  %v1164_v51 = vshll.u32 %v1163_v37, 16  ;;  %vm4732_vm6 = vcmask 786112   ;;  %vm1622_vm9 = vcmask 917312  }
 0x1be   : > { %v4033_v61 = vpop.xlane.xlu2 %1306 }
 0x1bf   : > { %v4035_v35 = vpop.xlane.xlu0 %1246  ;;  %vm1308_vm4 = vcmp.eq.f32.partialorder %v4838_v36, %v4033_v61 }
 0x1c0   : > { %vm1248_vm5 = vcmp.eq.f32.partialorder %v4839_v41, %v4035_v35  ;;  %v1309_v14 = vsel %vm1308_vm4, %v1304_v5, inf  ;;  %v1193_v5 = vcvt.f32.s32 %v3974_v17  ;;  %v1238_v17 = vcvt.f32.s32 %v3994_v19 }
 0x1c1   : > { %v1249_v56 = vsel %vm1248_vm5, %v1244_v24, inf  ;;  %1310 = vmin.xlane.f32.xlu0 %v1309_v14  ;;  %v1178_v14 = vcvt.f32.s32 %v3976_v33  ;;  %vm1610_vm4 = vcmask 720512  }
 0x1c2   : > { %1250 = vmin.xlane.f32.xlu1 %v1249_v56  ;;  %v1194_v55 = vshll.u32 %v1193_v5, 16 }
 0x1c7   : > { %v4049_v25 = vpop.xlane.xlu0 %1291 }
 0x1c8   : > { %vm1293_vm7 = vcmp.eq.f32.partialorder %v4842_v54, %v4049_v25  ;;  %v4078_v54 = vadd.s32 4294967272, %v4840_v58 }
 0x1c9   : > { %v1294_v4 = vsel %vm1293_vm7, %v1289_v48, inf  ;;  %1336 = vmin.xlane.f32.xlu0 %v4054_v31  ;;  %v1179_v48 = vshll.u32 %v1178_v14, 16 }
 0x1ca   : > { %1295 = vmin.xlane.f32.xlu1 %v1294_v4  ;;  %v1223_v4 = vcvt.f32.s32 %v3996_v7 }
 0x1cc   : > { %v1224_v44 = vshll.u32 %v1223_v4, 16  ;;  %v4106_v4 = vadd.s32 4294967240, %v4840_v58 }
 0x1d2   : > { %1321 = vmin.xlane.f32.xlu1 %v4061_v13 }
 0x20b   : > { %v1101_v42 = vpop.xlane.xlu2 %1100 }
 0x20c   : > { %v1102_v9 = vcvt.f32.s32 %v1101_v42 }
 0x20e   : > { %v1105_v22 = vadd.s32 %v1104_v12, %v1102_v9  ;;  %v1239_v9 = vshll.u32 %v1238_v17, 16 }
 0x210   : > { %v1571_v42 = vperm.slane %v1105_v22, %v4840_v58  ;;  %v4089_v22 = vadd.s32 4294967264, %v4840_v58 }
 0x213   : > { %v1146_v52 = vpop.xlane.xlu2 %1145 }
 0x214   : > { %v1147_v40 = vcvt.f32.s32 %v1146_v52  ;;  %v1131_v20 = vpop.xlane.xlu0 %1130 }
 0x215   : > { %v1132_v36 = vcvt.f32.s32 %v1131_v20 }
 0x216   : > { %v1150_v57 = vadd.s32 %v1149_v62, %v1147_v40 }
 0x217   : > { %v1135_v24 = vadd.s32 %v1134_v27, %v1132_v36 }
 0x218   : > { %v1581_v62 = vperm.slane %v1150_v57, %v4078_v54  ;;  %v4096_v57 = vadd.s32 4294967248, %v4840_v58 }
 0x219   : > { %v1577_v43 = vperm.slane %v1135_v24, %v4075_v46  ;;  %v4093_v24 = vadd.s32 4294967256, %v4840_v58 }
 0x21b   : > { %v1191_v41 = vpop.xlane.xlu2 %1190 }
 0x21c   : > { %v1192_v56 = vcvt.f32.s32 %v1191_v41  ;;  %v1176_v0 = vpop.xlane.xlu0 %1175 }
 0x21d   : > { %v1116_v1 = vpop.xlane.xlu1 %1115  ;;  %v1177_v45 = vcvt.f32.s32 %v1176_v0 }
 0x21e   : > { %v1195_v32 = vadd.s32 %v1194_v55, %v1192_v56  ;;  %v1117_v26 = vcvt.f32.s32 %v1116_v1  ;;  %v1208_v56 = vcvt.f32.s32 %v4015_v10 }
 0x21f   : > { %v1180_v21 = vadd.s32 %v1179_v48, %v1177_v45 }
 0x220   : > { %v1120_v33 = vadd.s32 %v1119_v34, %v1117_v26  ;;  %v1268_v34 = vcvt.f32.s32 %v4011_v23  ;;  %v1593_v0 = vperm.slane %v1195_v32, %v4096_v57  ;;  %v4110_v23 = vadd.s32 4294967232, %v4840_v58 }
 0x221   : > { %v1589_v26 = vperm.slane %v1180_v21, %v4093_v24  ;;  %v4113_v32 = vadd.s32 4294967224, %v4840_v58 }
 0x222   : > { %v1573_v12 = vperm.slane %v1120_v33, %v4071_v47  ;;  %v1209_v33 = vshll.u32 %v1208_v56, 16  ;;  %v1313_v56 = vcvt.f32.s32 %v4033_v61 }
 0x223   : > { %v1236_v19 = vpop.xlane.xlu2 %1235 }
 0x224   : > { %v1237_v52 = vcvt.f32.s32 %v1236_v19  ;;  %v1575_v39 = vsel %vm1574_vm10, %v1573_v12, %v1571_v42  ;;  %v1221_v36 = vpop.xlane.xlu0 %1220  ;;  %v1269_v12 = vshll.u32 %v1268_v34, 16  ;;  %v4131_v34 = vld [vmem:[%s3176_s12 + $0x90] sm:$0xff] }
 0x225   : > { %v1579_v7 = vsel %vm1578_vm11, %v1577_v43, %v1575_v39  ;;  %v1161_v20 = vpop.xlane.xlu1 %1160  ;;  %v1222_v41 = vcvt.f32.s32 %v1221_v36  ;;  %v1253_v43 = vcvt.f32.s32 %v4035_v35  ;;  %v4122_v36 = vadd.s32 4294967216, %v4840_v58 }
 0x226   : > { %v1240_v40 = vadd.s32 %v1239_v9, %v1237_v52  ;;  %v1162_v27 = vcvt.f32.s32 %v1161_v20  ;;  %v1583_v5 = vsel %vm1582_vm12, %v1581_v62, %v1579_v7  ;;  %vm1045_vm5 = vcmp.eq.f32.partialorder %v4131_v34, %v4803_v11 }
 0x227   : > { %v1225_v14 = vadd.s32 %v1224_v44, %v1222_v41 }
 0x228   : > { %v1165_v55 = vadd.s32 %v1164_v51, %v1162_v27  ;;  %v1605_v39 = vperm.slane %v1240_v40, %v4113_v32  ;;  %v1254_v27 = vshll.u32 %v1253_v43, 16  ;;  %v4151_v43 = vadd.s32 4294967184, %v4840_v58 }
 0x229   : > { %v1601_v62 = vperm.slane %v1225_v14, %v4110_v23  ;;  %v4127_v14 = vadd.s32 4294967208, %v4840_v58 }
 0x22a   : > { %v1585_v1 = vperm.slane %v1165_v55, %v4089_v22  ;;  %v1283_v55 = vcvt.f32.s32 %v4009_v60  ;;  %v1332_v60 = vand.u32 65535, %v4043_v30  ;;  %v4146_v30 = vadd.s32 4294967192, %v4840_v58 }
 0x22c   : > { %v1587_v48 = vsel %vm1586_vm13, %v1585_v1, %v1583_v5  ;;  %v1266_v42 = vpop.xlane.xlu0 %1265  ;;  %v1281_v5 = vpop.xlane.xlu2 %1280 }
 0x22d   : > { %v1591_v17 = vsel %vm1590_vm14, %v1589_v26, %v1587_v48  ;;  %v1206_v45 = vpop.xlane.xlu1 %1205  ;;  %v1267_v21 = vcvt.f32.s32 %v1266_v42  ;;  %v1282_v1 = vcvt.f32.s32 %v1281_v5  ;;  %v1298_v26 = vcvt.f32.s32 %v4049_v25 }
 0x22e   : > { %v1207_v10 = vcvt.f32.s32 %v1206_v45  ;;  %v1595_v37 = vsel %vm1594_vm15, %v1593_v0, %v1591_v17  ;;  %v1284_v48 = vshll.u32 %v1283_v55, 16 }
 0x22f   : > { %v1270_v9 = vadd.s32 %v1269_v12, %v1267_v21  ;;  %v1299_v12 = vshll.u32 %v1298_v26, 16 }
 0x230   : > { %v1210_v19 = vadd.s32 %v1209_v33, %v1207_v10  ;;  %v1077_v33 = vsel %vm1045_vm5, %v4840_v58, 32  ;;  %v1314_v10 = vshll.u32 %v1313_v56, 16  ;;  %v1285_v11 = vadd.s32 %v1284_v48, %v1282_v1 }
 0x231   : > { %v1613_v17 = vperm.slane %v1270_v9, %v4127_v14  ;;  %v1334_v9 = vcvt.s32.f32 %v1332_v60  ;;  %vm1618_vm5 = vcmask 851712  }
 0x232   : > { %v1597_v52 = vperm.slane %v1210_v19, %v4106_v4 }
 0x234   : > { %v1599_v7 = vsel %vm1598_vm0, %v1597_v52, %v1595_v37  ;;  %v1311_v41 = vpop.xlane.xlu0 %1310  ;;  %v4142_v37 = vadd.s32 4294967200, %v4840_v58 }
 0x235   : > { %v1603_v20 = vsel %vm1602_vm2, %v1601_v62, %v1599_v7  ;;  %v1251_v51 = vpop.xlane.xlu1 %1250  ;;  %v1312_v45 = vcvt.f32.s32 %v1311_v41  ;;  %v1361_v7 = vsel %vm544_vm1, %v1077_v33, 2147483647 }
 0x236   : > { %v1252_v35 = vcvt.f32.s32 %v1251_v51  ;;  %v1607_v44 = vsel %vm1606_vm3, %v1605_v39, %v1603_v20  ;;  %v1617_v20 = vperm.slane %v1285_v11, %v4142_v37  ;;  %v1317_v51 = vand.u32 65535, %v4057_v49 }
 0x237   : > { %v1315_v52 = vadd.s32 %v1314_v10, %v1312_v45  ;;  %v1362_v45 = vand.u32 65535, %v1361_v7  ;;  %v4178_v11 = vadd.s32 4294967176, %v4840_v58 }
 0x238   : > { %v1255_v40 = vadd.s32 %v1254_v27, %v1252_v35  ;;  %v4159_v27 = vld [vmem:[%s3176_s12 + $0x88] sm:$0xff]  ;;  %v1319_v49 = vcvt.s32.f32 %v1317_v51 }
 0x239   : > { %vm1044_vm8 = vcmp.eq.f32.partialorder %v4159_v27, %v4802_v29 }
 0x23a   : > { %v1609_v0 = vperm.slane %v1255_v40, %v4122_v36  ;;  %v1076_v55 = vsel %vm1044_vm8, %v4840_v58, 32 }
 0x23b   : > { %v1346_v26 = vsel %vm544_vm1, %v1076_v55, 2147483647 }
 0x23c   : > { %v1611_v61 = vsel %vm1610_vm4, %v1609_v0, %v1607_v44  ;;  %v4148_v19 = vpop.xlane.xlu0 %1336  ;;  %v1363_v44 = vshra.s32 %v1361_v7, 16  ;;  %v1348_v0 = vshra.s32 %v1346_v26, 16 }
 0x23d   : > { %v1615_v25 = vsel %vm4732_vm6, %v1613_v17, %v1611_v61  ;;  %v1296_v42 = vpop.xlane.xlu1 %1295  ;;  %vm1338_vm7 = vcmp.eq.f32.partialorder %v4054_v31, %v4148_v19  ;;  %vm4733_vm6 = vcmask 982912   ;;  %v1625_v31 = vperm.slane %v1315_v52, %v4151_v43  ;;  %v4172_v61 = vld [vmem:[%s3176_s12 + $0xa0] sm:$0xff] }
 0x23e   : > { %v1297_v21 = vcvt.f32.s32 %v1296_v42  ;;  %v1339_v39 = vsel %vm1338_vm7, %v1334_v9, inf  ;;  %v1619_v35 = vsel %vm1618_vm5, %v1617_v20, %v1615_v25  ;;  %v1365_v1 = vcvt.s32.f32 %v1363_v44 }
 0x23f   : > { %1340 = vmin.xlane.f32.xlu1 %v1339_v39  ;;  %v1350_v60 = vcvt.s32.f32 %v1348_v0  ;;  %vm1047_vm8 = vcmp.eq.f32.partialorder %v4172_v61, %v4806_v6  ;;  %v4182_v39 = vld [vmem:[%s3176_s12 + $0x98] sm:$0xff]  ;;  %v4194_v0 = vld [vmem:[%s3176_s12 + $0xb0] sm:$0xff] }
 0x240   : > { %v1300_v62 = vadd.s32 %v1299_v12, %v1297_v21  ;;  %v1364_v12 = vcvt.s32.f32 %v1362_v45 }
 0x242   : > { %v1621_v5 = vperm.slane %v1300_v62, %v4146_v30  ;;  %v1347_v62 = vand.u32 65535, %v1346_v26 }
 0x244   : > { %v1623_v41 = vsel %vm1622_vm9, %v1621_v5, %v1619_v35 }
 0x245   : > { %v1322_v40 = vpop.xlane.xlu1 %1321  ;;  %v1627_v56 = vsel %vm4733_vm6, %v1625_v31, %v1623_v41  ;;  %vm4734_vm6 = vcmask 1048512   ;;  %v1349_v31 = vcvt.s32.f32 %v1347_v62  ;;  %v4201_v62 = vld [vmem:[%s3176_s12 + $0xa8] sm:$0xff] }
 0x246   : > { %vm1323_vm7 = vcmp.eq.f32.partialorder %v4061_v13, %v1322_v40  ;;  %v1328_v17 = vcvt.f32.s32 %v1322_v40  ;;  %v1079_v13 = vsel %vm1047_vm8, %v4840_v58, 32  ;;  %vm1046_vm8 = vcmp.eq.f32.partialorder %v4182_v39, %v4805_v16 }
 0x247   : > { %v1324_v29 = vsel %vm1323_vm7, %v1319_v49, inf  ;;  %1366 = vmin.xlane.f32.xlu1 %v1365_v1  ;;  %v1391_v52 = vsel %vm544_vm1, %v1079_v13, 2147483647  ;;  %v1078_v51 = vsel %vm1046_vm8, %v4840_v58, 32  ;;  %v1343_v49 = vcvt.f32.s32 %v4148_v19 }
 0x248   : > { %1325 = vmin.xlane.f32.xlu2 %v1324_v29  ;;  %v1329_v10 = vshll.u32 %v1328_v17, 16  ;;  %v1393_v7 = vshra.s32 %v1391_v52, 16  ;;  %v1376_v41 = vsel %vm544_vm1, %v1078_v51, 2147483647  ;;  %v1392_v26 = vand.u32 65535, %v1391_v52 }
 0x249   : > { %v1378_v55 = vshra.s32 %v1376_v41, 16  ;;  %vm1049_vm8 = vcmp.eq.f32.partialorder %v4194_v0, %v4808_v28  ;;  %v1344_v17 = vshll.u32 %v1343_v49, 16  ;;  %v1377_v28 = vand.u32 65535, %v1376_v41 }
 0x24a   : > { %v1395_v44 = vcvt.s32.f32 %v1393_v7  ;;  %v1081_v13 = vsel %vm1049_vm8, %v4840_v58, 32 }
 0x24b   : > { %v1380_v16 = vcvt.s32.f32 %v1378_v55  ;;  %v1421_v52 = vsel %vm544_vm1, %v1081_v13, 2147483647  ;;  %v1379_v55 = vcvt.s32.f32 %v1377_v28 }
 0x250   : > { %1351 = vmin.xlane.f32.xlu2 %v1350_v60 }
 0x2b2   : > { %v1341_v48 = vpop.xlane.xlu1 %1340 }
 0x2b3   : > { %v1342_v29 = vcvt.f32.s32 %v1341_v48 }
 0x2ba   : > { %v1367_v42 = vpop.xlane.xlu1 %1366 }
 0x2bb   : > { %v1326_v33 = vpop.xlane.xlu2 %1325  ;;  %vm1368_vm7 = vcmp.eq.f32.partialorder %v1365_v1, %v1367_v42 }
 0x2bc   : > { %v1327_v25 = vcvt.f32.s32 %v1326_v33  ;;  %v1369_v9 = vsel %vm1368_vm7, %v1364_v12, inf }
 0x2bd   : > { %1370 = vmin.xlane.f32.xlu2 %v1369_v9 }
 0x2be   : > { %v1330_v21 = vadd.s32 %v1329_v10, %v1327_v25  ;;  %v1345_v10 = vadd.s32 %v1344_v17, %v1342_v29 }
 0x2c0   : > { %v1629_v6 = vperm.slane %v1330_v21, %v4178_v11 }
 0x2c2   : > { %v4188_v20 = vsel %vm4734_vm6, %v1629_v6, %v1627_v56  ;;  %v1373_v56 = vcvt.f32.s32 %v1367_v42  ;;  %v1394_v42 = vcvt.s32.f32 %v1392_v26  ;;  %vm1048_vm6 = vcmp.eq.f32.partialorder %v4201_v62, %v4807_v3 }
 0x2c3   : > { %v1352_v5 = vpop.xlane.xlu2 %1351  ;;  %v1632_v6 = vperm.slane %v1345_v10, %v4840_v58  ;;  %v1422_v26 = vand.u32 65535, %v1421_v52 }
 0x2c4   : > { %vm1353_vm7 = vcmp.eq.f32.partialorder %v1350_v60, %v1352_v5  ;;  %v1358_v1 = vcvt.f32.s32 %v1352_v5  ;;  %v1374_v45 = vshll.u32 %v1373_v56, 16  ;;  %v1423_v5 = vshra.s32 %v1421_v52, 16  ;;  %v4220_v52 = vld [vmem:[%s3176_s12 + $0xb8] sm:$0xff] }
 0x2c5   : > { %v1354_v35 = vsel %vm1353_vm7, %v1349_v31, inf  ;;  %1396 = vmin.xlane.f32.xlu2 %v1395_v44 }
 0x2c6   : > { %1355 = vmin.xlane.f32.xlu0 %v1354_v35  ;;  %v1359_v25 = vshll.u32 %v1358_v1, 16  ;;  %v1080_v35 = vsel %vm1048_vm6, %v4840_v58, 32  ;;  %vm1050_vm6 = vcmp.eq.f32.partialorder %v4220_v52, %v4809_v8 }
 0x2c7   : > { %v1406_v3 = vsel %vm544_vm1, %v1080_v35, 2147483647 }
 0x2ce   : > { %1381 = vmin.xlane.f32.xlu0 %v1380_v16 }
 0x330   : > { %v1371_v40 = vpop.xlane.xlu2 %1370 }
 0x331   : > { %v1372_v60 = vcvt.f32.s32 %v1371_v40  ;;  %v1425_v40 = vcvt.s32.f32 %v1423_v5 }
 0x333   : > { %v1375_v48 = vadd.s32 %v1374_v45, %v1372_v60  ;;  %v4213_v60 = vld [vmem:[%s3176_s12 + $0xc0] sm:$0xff] }
 0x335   : > { %v1635_v51 = vperm.slane %v1375_v48, %v4075_v46 }
 0x338   : > { %v1397_v12 = vpop.xlane.xlu2 %1396 }
 0x339   : > { %v1356_v33 = vpop.xlane.xlu0 %1355  ;;  %vm1398_vm7 = vcmp.eq.f32.partialorder %v1395_v44, %v1397_v12  ;;  %v1403_v29 = vcvt.f32.s32 %v1397_v12 }
 0x33a   : > { %v1357_v19 = vcvt.f32.s32 %v1356_v33  ;;  %v1399_v9 = vsel %vm1398_vm7, %v1394_v42, inf }
 0x33b   : > { %1400 = vmin.xlane.f32.xlu0 %v1399_v9  ;;  %v1404_v17 = vshll.u32 %v1403_v29, 16  ;;  %v1407_v9 = vand.u32 65535, %v1406_v3 }
 0x33c   : > { %v1360_v21 = vadd.s32 %v1359_v25, %v1357_v19  ;;  %v1424_v19 = vcvt.s32.f32 %v1422_v26 }
 0x33e   : > { %v1633_v7 = vperm.slane %v1360_v21, %v4071_v47  ;;  %v1408_v47 = vshra.s32 %v1406_v3, 16 }
 0x340   : > { %v1634_v31 = vsel %vm1574_vm10, %v1633_v7, %v1632_v6  ;;  %v1410_v56 = vcvt.s32.f32 %v1408_v47  ;;  %vm1051_vm10 = vcmp.eq.f32.partialorder %v4213_v60, %v4810_v38  ;;  %v4231_v47 = vld [vmem:[%s3176_s12 + $0xd0] sm:$0xff] }
 0x341   : > { %v1382_v44 = vpop.xlane.xlu0 %1381  ;;  %v1636_v41 = vsel %vm1578_vm11, %v1635_v51, %v1634_v31  ;;  %v1083_v33 = vsel %vm1051_vm10, %v4840_v58, 32  ;;  %v1082_v51 = vsel %vm1050_vm6, %v4840_v58, 32  ;;  %v1409_v31 = vcvt.s32.f32 %v1407_v9 }
 0x342   : > { %vm1383_vm8 = vcmp.eq.f32.partialorder %v1380_v16, %v1382_v44  ;;  %v1388_v1 = vcvt.f32.s32 %v1382_v44  ;;  %v1451_v21 = vsel %vm544_vm1, %v1083_v33, 2147483647 }
 0x343   : > { %v1384_v49 = vsel %vm1383_vm8, %v1379_v55, inf  ;;  %1426 = vmin.xlane.f32.xlu0 %v1425_v40  ;;  %v1453_v6 = vshra.s32 %v1451_v21, 16  ;;  %v1452_v3 = vand.u32 65535, %v1451_v21 }
 0x344   : > { %1385 = vmin.xlane.f32.xlu1 %v1384_v49  ;;  %v1389_v13 = vshll.u32 %v1388_v1, 16 }
 0x345   : > { %v1455_v55 = vcvt.s32.f32 %v1453_v6 }
 0x34c   : > { %1411 = vmin.xlane.f32.xlu1 %v1410_v56 }
 0x3ae   : > { %v1401_v46 = vpop.xlane.xlu0 %1400 }
 0x3af   : > { %v1402_v16 = vcvt.f32.s32 %v1401_v46 }
 0x3b1   : > { %v1405_v42 = vadd.s32 %v1404_v17, %v1402_v16 }
 0x3b3   : > { %v1639_v28 = vperm.slane %v1405_v42, %v4089_v22  ;;  %v4238_v42 = vld [vmem:[%s3176_s12 + $0xc8] sm:$0xff] }
 0x3b4   : > { %vm1052_vm8 = vcmp.eq.f32.partialorder %v4238_v42, %v4811_v53 }
 0x3b5   : > { %v1084_v9 = vsel %vm1052_vm8, %v4840_v58, 32 }
 0x3b6   : > { %v1427_v25 = vpop.xlane.xlu0 %1426 }
 0x3b7   : > { %v1386_v45 = vpop.xlane.xlu1 %1385  ;;  %vm1428_vm11 = vcmp.eq.f32.partialorder %v1425_v40, %v1427_v25  ;;  %v1436_v40 = vsel %vm544_vm1, %v1082_v51, 2147483647  ;;  %v1433_v49 = vcvt.f32.s32 %v1427_v25 }
 0x3b8   : > { %v1387_v10 = vcvt.f32.s32 %v1386_v45  ;;  %v1429_v48 = vsel %vm1428_vm11, %v1424_v19, inf  ;;  %v1438_v8 = vshra.s32 %v1436_v40, 16  ;;  %v1454_v45 = vcvt.s32.f32 %v1452_v3 }
 0x3b9   : > { %1430 = vmin.xlane.f32.xlu1 %v1429_v48  ;;  %v1434_v46 = vshll.u32 %v1433_v49, 16  ;;  %v1437_v19 = vand.u32 65535, %v1436_v40 }
 0x3ba   : > { %v1390_v12 = vadd.s32 %v1389_v13, %v1387_v10 }
 0x3bc   : > { %v1637_v38 = vperm.slane %v1390_v12, %v4078_v54  ;;  %v1440_v54 = vcvt.s32.f32 %v1438_v8 }
 0x3be   : > { %v1638_v7 = vsel %vm1582_vm12, %v1637_v38, %v1636_v41  ;;  %vm1053_vm12 = vcmp.eq.f32.partialorder %v4231_v47, %v4812_v59 }
 0x3bf   : > { %v1412_v5 = vpop.xlane.xlu1 %1411  ;;  %v1640_v35 = vsel %vm1586_vm13, %v1639_v28, %v1638_v7  ;;  %v1085_v1 = vsel %vm1053_vm12, %v4840_v58, 32  ;;  %v1439_v28 = vcvt.s32.f32 %v1437_v19 }
 0x3c0   : > { %vm1413_vm7 = vcmp.eq.f32.partialorder %v1410_v56, %v1412_v5  ;;  %v1418_v41 = vcvt.f32.s32 %v1412_v5  ;;  %v1481_v25 = vsel %vm544_vm1, %v1085_v1, 2147483647  ;;  %v1466_v5 = vsel %vm544_vm1, %v1084_v9, 2147483647 }
 0x3c1   : > { %v1414_v44 = vsel %vm1413_vm7, %v1409_v31, inf  ;;  %1456 = vmin.xlane.f32.xlu1 %v1455_v55  ;;  %v1483_v48 = vshra.s32 %v1481_v25, 16  ;;  %v1468_v53 = vshra.s32 %v1466_v5, 16 }
 0x3c2   : > { %1415 = vmin.xlane.f32.xlu2 %v1414_v44  ;;  %v1419_v26 = vshll.u32 %v1418_v41, 16  ;;  %v1482_v44 = vand.u32 65535, %v1481_v25 }
 0x3c3   : > { %v1485_v51 = vcvt.s32.f32 %v1483_v48 }
 0x3ca   : > { %1441 = vmin.xlane.f32.xlu2 %v1440_v54 }
 0x42c   : > { %v1431_v22 = vpop.xlane.xlu1 %1430 }
 0x42d   : > { %v1432_v56 = vcvt.f32.s32 %v1431_v22 }
 0x42f   : > { %v1435_v33 = vadd.s32 %v1434_v46, %v1432_v56  ;;  %v1484_v56 = vcvt.s32.f32 %v1482_v44 }
 0x431   : > { %v1643_v12 = vperm.slane %v1435_v33, %v4096_v57 }
 0x434   : > { %v1457_v17 = vpop.xlane.xlu1 %1456 }
 0x435   : > { %v1416_v29 = vpop.xlane.xlu2 %1415  ;;  %vm1458_vm13 = vcmp.eq.f32.partialorder %v1455_v55, %v1457_v17  ;;  %v1463_v31 = vcvt.f32.s32 %v1457_v17  ;;  %v4249_v55 = vld [vmem:[%s3176_s12 + $0xe0] sm:$0xff]  ;;  %v4256_v17 = vld [vmem:[%s3176_s12 + $0xd8] sm:$0xff] }
 0x436   : > { %v1417_v16 = vcvt.f32.s32 %v1416_v29  ;;  %v1459_v10 = vsel %vm1458_vm13, %v1454_v45, inf  ;;  %vm1054_vm11 = vcmp.eq.f32.partialorder %v4256_v17, %v4813_v18  ;;  %vm4844_vm13 = vcmask 786112  }
 0x437   : > { %1460 = vmin.xlane.f32.xlu2 %v1459_v10  ;;  %v1464_v8 = vshll.u32 %v1463_v31, 16  ;;  %v1086_v10 = vsel %vm1054_vm11, %v4840_v58, 32 }
 0x438   : > { %v1420_v13 = vadd.s32 %v1419_v26, %v1417_v16  ;;  %v1467_v16 = vand.u32 65535, %v1466_v5 }
 0x43a   : > { %v1641_v59 = vperm.slane %v1420_v13, %v4093_v24  ;;  %v1470_v24 = vcvt.s32.f32 %v1468_v53  ;;  %v1469_v19 = vcvt.s32.f32 %v1467_v16 }
 0x43c   : > { %v1642_v21 = vsel %vm1590_vm14, %v1641_v59, %v1640_v35  ;;  %vm1055_vm14 = vcmp.eq.f32.partialorder %v4249_v55, %v4815_v63 }
 0x43d   : > { %v1442_v38 = vpop.xlane.xlu2 %1441  ;;  %v1644_v6 = vsel %vm1594_vm15, %v1643_v12, %v1642_v21  ;;  %v1087_v22 = vsel %vm1055_vm14, %v4840_v58, 32  ;;  %v1496_v21 = vsel %vm544_vm1, %v1086_v10, 2147483647  ;;  %vm4847_vm14 = vcmask 1041409  }
 0x43e   : > { %vm1443_vm10 = vcmp.eq.f32.partialorder %v1440_v54, %v1442_v38  ;;  %v1448_v35 = vcvt.f32.s32 %v1442_v38  ;;  %v1511_v26 = vsel %vm544_vm1, %v1087_v22, 2147483647  ;;  %v1498_v18 = vshra.s32 %v1496_v21, 16 }
 0x43f   : > { %v1444_v7 = vsel %vm1443_vm10, %v1439_v28, inf  ;;  %1486 = vmin.xlane.f32.xlu2 %v1485_v51  ;;  %v1513_v33 = vshra.s32 %v1511_v26, 16  ;;  %v1512_v28 = vand.u32 65535, %v1511_v26  ;;  %v1497_v22 = vand.u32 65535, %v1496_v21 }
 0x440   : > { %1445 = vmin.xlane.f32.xlu0 %v1444_v7  ;;  %v1449_v49 = vshll.u32 %v1448_v35, 16  ;;  %vm4846_vm10 = vcmask 1048512  }
 0x441   : > { %v1515_v12 = vcvt.s32.f32 %v1513_v33  ;;  %v1514_v35 = vcvt.s32.f32 %v1512_v28 }
 0x448   : > { %1471 = vmin.xlane.f32.xlu0 %v1470_v24 }
 0x4aa   : > { %v1461_v57 = vpop.xlane.xlu2 %1460 }
 0x4ab   : > { %v1462_v40 = vcvt.f32.s32 %v1461_v57 }
 0x4ad   : > { %v1465_v46 = vadd.s32 %v1464_v8, %v1462_v40 }
 0x4af   : > { %v1647_v45 = vperm.slane %v1465_v46, %v4110_v23 }
 0x4b2   : > { %v1487_v41 = vpop.xlane.xlu2 %1486 }
 0x4b3   : > { %v1446_v54 = vpop.xlane.xlu0 %1445  ;;  %vm1488_vm15 = vcmp.eq.f32.partialorder %v1485_v51, %v1487_v41  ;;  %v1493_v9 = vcvt.f32.s32 %v1487_v41 }
 0x4b4   : > { %v1447_v3 = vcvt.f32.s32 %v1446_v54  ;;  %v1489_v1 = vsel %vm1488_vm15, %v1484_v56, inf }
 0x4b5   : > { %1490 = vmin.xlane.f32.xlu0 %v1489_v1  ;;  %v1494_v51 = vshll.u32 %v1493_v9, 16  ;;  %v1499_v1 = vcvt.s32.f32 %v1497_v22 }
 0x4b6   : > { %v1450_v29 = vadd.s32 %v1449_v49, %v1447_v3  ;;  %v4274_v49 = vld [vmem:[%s3176_s12 + $0xe8] sm:$0xff] }
 0x4b7   : > { %vm1056_vm7 = vcmp.eq.f32.partialorder %v4274_v49, %v4816_v50 }
 0x4b8   : > { %v1645_v63 = vperm.slane %v1450_v29, %v4106_v4  ;;  %v1500_v4 = vcvt.s32.f32 %v1498_v18  ;;  %v1088_v46 = vsel %vm1056_vm7, %v4840_v58, 32 }
 0x4ba   : > { %v1646_v13 = vsel %vm1598_vm0, %v1645_v63, %v1644_v6  ;;  %v4267_v6 = vld [vmem:[%s3176_s12 + $0xf0] sm:$0xff] }
 0x4bb   : > { %v1472_v25 = vpop.xlane.xlu0 %1471  ;;  %v1648_v59 = vsel %vm1602_vm2, %v1647_v45, %v1646_v13  ;;  %vm1057_vm0 = vcmp.eq.f32.partialorder %v4267_v6, %v4819_v15  ;;  %v1526_v45 = vsel %vm544_vm1, %v1088_v46, 2147483647 }
 0x4bc   : > { %vm1473_vm6 = vcmp.eq.f32.partialorder %v1470_v24, %v1472_v25  ;;  %v1478_v38 = vcvt.f32.s32 %v1472_v25  ;;  %v1089_v53 = vsel %vm1057_vm0, %v4840_v58, 32  ;;  %v1528_v50 = vshra.s32 %v1526_v45, 16 }
 0x4bd   : > { %v1474_v48 = vsel %vm1473_vm6, %v1469_v19, inf  ;;  %1516 = vmin.xlane.f32.xlu0 %v1515_v12  ;;  %v1541_v54 = vsel %vm544_vm1, %v1089_v53, 2147483647 }
 0x4be   : > { %1475 = vmin.xlane.f32.xlu1 %v1474_v48  ;;  %v1479_v24 = vshll.u32 %v1478_v38, 16  ;;  %v1543_v3 = vshra.s32 %v1541_v54, 16  ;;  %v1542_v19 = vand.u32 65535, %v1541_v54 }
 0x4c0   : > { %v1545_v63 = vcvt.s32.f32 %v1543_v3 }
 0x4c6   : > { %1501 = vmin.xlane.f32.xlu1 %v1500_v4 }
 0x528   : > { %v1491_v23 = vpop.xlane.xlu0 %1490 }
 0x529   : > { %v1492_v7 = vcvt.f32.s32 %v1491_v23  ;;  %v1544_v23 = vcvt.s32.f32 %v1542_v19 }
 0x52b   : > { %v1495_v44 = vadd.s32 %v1494_v51, %v1492_v7  ;;  %v1527_v7 = vand.u32 65535, %v1526_v45  ;;  %v4292_v51 = vld [vmem:[%s3176_s12 + $0xf8] sm:$0xff] }
 0x52d   : > { %v1651_v41 = vperm.slane %v1495_v44, %v4122_v36  ;;  %v4843_v36 = vlaneseq }
 0x52f   : > { %v4285_v33 = vshrl.u32 %v4843_v36, 7 }
 0x530   : > { %v1517_v31 = vpop.xlane.xlu0 %1516 }
 0x531   : > { %v1476_v5 = vpop.xlane.xlu1 %1475  ;;  %vm1518_vm2 = vcmp.eq.f32.partialorder %v1515_v12, %v1517_v31  ;;  %2657 = vset.pattern.permute.xlu2 %v4285_v33  ;;  %v1523_v10 = vcvt.f32.s32 %v1517_v31  ;;  %v4319_v3 = vadd.s32 72, %v4285_v33  ;;  %v4329_v46 = vadd.s32 112, %v4285_v33 }
 0x532   : > { %v1477_v57 = vcvt.f32.s32 %v1476_v5  ;;  %v1519_v8 = vsel %vm1518_vm2, %v1514_v35, inf  ;;  %v1529_v35 = vcvt.s32.f32 %v1527_v7  ;;  %v1759_v7 = vadd.s32 120, %v4285_v33 }
 0x533   : > { %1520 = vmin.xlane.f32.xlu1 %v1519_v8  ;;  %v1524_v12 = vshll.u32 %v1523_v10, 16 }
 0x534   : > { %v1480_v40 = vadd.s32 %v1479_v24, %v1477_v57 }
 0x536   : > { %v1649_v15 = vperm.slane %v1480_v40, %v4113_v32  ;;  %v1530_v32 = vcvt.s32.f32 %v1528_v50 }
 0x538   : > { %v1650_v56 = vsel %vm1606_vm3, %v1649_v15, %v1648_v59  ;;  %v4309_v15 = vadd.s32 32, %v4285_v33 }
 0x539   : > { %v1502_v29 = vpop.xlane.xlu1 %1501  ;;  %v1652_v26 = vsel %vm1610_vm4, %v1651_v41, %v1650_v56  ;;  %vm1058_vm4 = vcmp.eq.f32.partialorder %v4292_v51, %v4823_v2  ;;  %v543_v2 = vld [vmem:[%s3174_s11] sm:$0x3]  ;;  %v4314_v41 = vadd.s32 48, %v4285_v33  ;;  %v4324_v56 = vadd.s32 88, %v4285_v33 }
 0x53a   : > { %vm1503_vm12 = vcmp.eq.f32.partialorder %v1500_v4, %v1502_v29  ;;  %v1508_v25 = vcvt.f32.s32 %v1502_v29  ;;  %v1090_v57 = vsel %vm1058_vm4, %v4840_v58, 32  ;;  %v1681_v29 = vadd.s32 16, %v4285_v33 }
 0x53b   : > { %v1504_v16 = vsel %vm1503_vm12, %v1499_v1, inf  ;;  %1546 = vmin.xlane.f32.xlu1 %v1545_v63  ;;  %v1556_v8 = vsel %vm544_vm1, %v1090_v57, 2147483647  ;;  %v4339_v19 = vperm.slane %v543_v2, 1 }
 0x53c   : > { %1505 = vmin.xlane.f32.xlu2 %v1504_v16  ;;  %v1509_v21 = vshll.u32 %v1508_v25, 16  ;;  %v1558_v54 = vshra.s32 %v1556_v8, 16  ;;  %2659 = vset.pattern.permute.xlu1 %v1681_v29  ;;  %v1557_v50 = vand.u32 65535, %v1556_v8 }
 0x53e   : > { %v1560_v22 = vcvt.s32.f32 %v1558_v54  ;;  %v1559_v10 = vcvt.s32.f32 %v1557_v50 }
 0x544   : > { %1531 = vmin.xlane.f32.xlu2 %v1530_v32 }
 0x5a6   : > { %v1521_v13 = vpop.xlane.xlu1 %1520 }
 0x5a7   : > { %v1522_v59 = vcvt.f32.s32 %v1521_v13 }
 0x5a9   : > { %v1525_v9 = vadd.s32 %v1524_v12, %v1522_v59  ;;  %v1699_v59 = vadd.s32 40, %v4285_v33  ;;  %v1675_v12 = vadd.s32 8, %v4285_v33 }
 0x5ab   : > { %v1655_v53 = vperm.slane %v1525_v9, %v4142_v37  ;;  %v1687_v37 = vadd.s32 24, %v4285_v33  ;;  %2658 = vset.pattern.permute.xlu0 %v1675_v12  ;;  %v1747_v9 = vadd.s32 104, %v4285_v33 }
 0x5ae   : > { %v4288_v4 = vpop.xlane.xlu1 %1546 }
 0x5af   : > { %v1506_v48 = vpop.xlane.xlu2 %1505  ;;  %vm1548_vm3 = vcmp.eq.f32.partialorder %v1545_v63, %v4288_v4  ;;  %v1553_v57 = vcvt.f32.s32 %v4288_v4 }
 0x5b0   : > { %v1507_v18 = vcvt.f32.s32 %v1506_v48  ;;  %v1549_v28 = vsel %vm1548_vm3, %v1544_v23, inf  ;;  %v1711_v48 = vadd.s32 56, %v4285_v33 }
 0x5b1   : > { %1550 = vmin.xlane.f32.xlu2 %v1549_v28 }
 0x5b2   : > { %v1510_v38 = vadd.s32 %v1509_v21, %v1507_v18  ;;  %v1729_v21 = vadd.s32 80, %v4285_v33 }
 0x5b4   : > { %v1653_v5 = vperm.slane %v1510_v38, %v4127_v14  ;;  %v4303_v14 = vperm.slane %v543_v2, 0  ;;  %v1741_v38 = vadd.s32 96, %v4285_v33 }
 0x5b6   : > { %v1654_v24 = vsel %vm4844_vm13, %v1653_v5, %v1652_v26 }
 0x5b7   : > { %v1532_v31 = vpop.xlane.xlu2 %1531  ;;  %v1656_v44 = vsel %vm1618_vm5, %v1655_v53, %v1654_v24 }
 0x5b8   : > { %vm1533_vm8 = vcmp.eq.f32.partialorder %v1530_v32, %v1532_v31  ;;  %v1538_v1 = vcvt.f32.s32 %v1532_v31 }
 0x5b9   : > { %v1534_v40 = vsel %vm1533_vm8, %v1529_v35, inf  ;;  %v1554_v35 = vshll.u32 %v1553_v57, 16 }
 0x5ba   : > { %1535 = vmin.xlane.f32.xlu0 %v1534_v40  ;;  %v1539_v16 = vshll.u32 %v1538_v1, 16 }
 0x5c2   : > { %1561 = vmin.xlane.f32.xlu0 %v1560_v22 }
 0x5c9   : > { %1671 = vperm.xlu2 %2657, %v4303_v14  }
 0x5d1   : > { %2660 = vset.pattern.permute.xlu2 %v1687_v37 }
 0x5d6   : > { %1677 = vperm.xlu0 %2658, %v4303_v14  }
 0x5d9   : > { %1689 = vperm.xlu2 %2660, %v4303_v14  }
 0x5e1   : > { %2661 = vset.pattern.permute.xlu2 %v4309_v15 }
 0x5e9   : > { %1695 = vperm.xlu2 %2661, %v4303_v14  }
 0x5f1   : > { %2663 = vset.pattern.permute.xlu2 %v4314_v41 }
 0x5f9   : > { %1707 = vperm.xlu2 %2663, %v4303_v14  }
 0x601   : > { %2666 = vset.pattern.permute.xlu2 %v4319_v3 }
 0x609   : > { %1725 = vperm.xlu2 %2666, %v4303_v14  }
 0x611   : > { %2668 = vset.pattern.permute.xlu2 %v4324_v56 }
 0x619   : > { %1737 = vperm.xlu2 %2668, %v4303_v14  }
 0x621   : > { %2671 = vset.pattern.permute.xlu2 %v4329_v46 }
 0x624   : > { %v1551_v18 = vpop.xlane.xlu2 %1550 }
 0x629   : > { %1755 = vperm.xlu2 %2671, %v4303_v14  }
 0x62c   : > { %v4355_v23 = vpop.permute.xlu2 %1671 }
 0x62d   : > { %v1536_v26 = vpop.xlane.xlu0 %1535  ;;  %vm1860_vm7 = vcmp.eq.s32.totalorder %v4840_v58, %v4355_v23  ;;  %v2905_v23 = vld [vmem:[%s3176_s12 + $0x18] sm:$0xff] }
 0x62e   : > { %v1537_v63 = vcvt.f32.s32 %v1536_v26 }
 0x630   : > { %v1540_v45 = vadd.s32 %v1539_v16, %v1537_v63  ;;  %v2899_v16 = vld [vmem:[%s3176_s12 + $0x10] sm:$0xff] }
 0x631   : > { %2673 = vset.pattern.permute.xlu2 %v4285_v33 }
 0x632   : > { %v1657_v32 = vperm.slane %v1540_v45, %v4146_v30  ;;  %v1717_v30 = vadd.s32 64, %v4285_v33  ;;  %v1552_v33 = vcvt.f32.s32 %v1551_v18 }
 0x634   : > { %v4337_v36 = vsel %vm1622_vm9, %v1657_v32, %v1656_v44  ;;  %2665 = vset.pattern.permute.xlu0 %v1717_v30  ;;  %v4361_v28 = vpop.permute.xlu2 %1689  ;;  %v1555_v44 = vadd.s32 %v1554_v35, %v1552_v33  ;;  %vm4845_vm9 = vcmask 982912   ;;  %v2904_v35 = vld [vmem:[%s3176_s12 + $0x20] sm:$0xff] }
 0x635   : > { %v1562_v13 = vpop.xlane.xlu0 %1561  ;;  %vm1863_vm4 = vcmp.eq.s32.totalorder %v4840_v58, %v4361_v28 }
 0x636   : > { %vm1563_vm5 = vcmp.eq.f32.partialorder %v1560_v22, %v1562_v13  ;;  %v1568_v31 = vcvt.f32.s32 %v1562_v13 }
 0x637   : > { %v1564_v25 = vsel %vm1563_vm5, %v1559_v10, inf }
 0x638   : > { %1565 = vmin.xlane.f32.xlu1 %v1564_v25  ;;  %v1569_v8 = vshll.u32 %v1568_v31, 16 }
 0x639   : > { %1768 = vperm.xlu2 %2673, %v4339_v19  }
 0x63c   : > { %1719 = vperm.xlu0 %2665, %v4303_v14  }
 0x641   : > { %2676 = vset.pattern.permute.xlu2 %v1687_v37 }
 0x643   : > { %v4366_v5 = vpop.permute.xlu2 %1695 }
 0x644   : > { %2670 = vset.pattern.permute.xlu0 %v1747_v9  ;;  %vm1864_vm3 = vcmp.eq.s32.totalorder %v4840_v58, %v4366_v5 }
 0x649   : > { %1786 = vperm.xlu2 %2676, %v4339_v19  }
 0x64c   : > { %1749 = vperm.xlu0 %2670, %v4303_v14  }
 0x651   : > { %1683 = vperm.xlu1 %2659, %v4303_v14   ;;  %2678 = vset.pattern.permute.xlu2 %v1699_v59 }
 0x653   : > { %v4369_v53 = vpop.permute.xlu2 %1707 }
 0x654   : > { %2675 = vset.pattern.permute.xlu0 %v1681_v29 }
 0x659   : > { %2662 = vset.pattern.permute.xlu1 %v1699_v59  ;;  %1798 = vperm.xlu2 %2678, %v4339_v19  }
 0x65c   : > { %1780 = vperm.xlu0 %2675, %v4339_v19  }
 0x661   : > { %1701 = vperm.xlu1 %2662, %v4303_v14   ;;  %2681 = vset.pattern.permute.xlu2 %v1717_v30  ;;  %v1678_v30 = vpop.permute.xlu0 %1677 }
 0x662   : > { %vm1861_vm2 = vcmp.eq.s32.totalorder %v4840_v58, %v1678_v30 }
 0x663   : > { %v4374_v24 = vpop.permute.xlu2 %1725 }
 0x664   : > { %2680 = vset.pattern.permute.xlu0 %v1711_v48 }
 0x669   : > { %2664 = vset.pattern.permute.xlu1 %v1711_v48  ;;  %1816 = vperm.xlu2 %2681, %v4339_v19  }
 0x66c   : > { %1810 = vperm.xlu0 %2680, %v4339_v19  }
 0x671   : > { %1713 = vperm.xlu1 %2664, %v4303_v14   ;;  %2683 = vset.pattern.permute.xlu2 %v1729_v21 }
 0x673   : > { %v4377_v22 = vpop.permute.xlu2 %1737 }
 0x674   : > { %2685 = vset.pattern.permute.xlu0 %v1741_v38 }
 0x679   : > { %2667 = vset.pattern.permute.xlu1 %v1729_v21  ;;  %1828 = vperm.xlu2 %2683, %v4339_v19  }
 0x67c   : > { %1840 = vperm.xlu0 %2685, %v4339_v19  }
 0x681   : > { %1731 = vperm.xlu1 %2667, %v4303_v14   ;;  %2686 = vset.pattern.permute.xlu2 %v1747_v9 }
 0x683   : > { %v4389_v26 = vpop.permute.xlu2 %1755 }
 0x684   : > { %2689 = vset.pattern.permute.xlu0 %v1759_v7 }
 0x689   : > { %2669 = vset.pattern.permute.xlu1 %v1741_v38  ;;  %1846 = vperm.xlu2 %2686, %v4339_v19  }
 0x691   : > { %1743 = vperm.xlu1 %2669, %v4303_v14   ;;  %2688 = vset.pattern.permute.xlu2 %v1759_v7 }
 0x699   : > { %2672 = vset.pattern.permute.xlu1 %v1759_v7  ;;  %1858 = vperm.xlu2 %2688, %v4339_v19  }
 0x6a1   : > { %1761 = vperm.xlu1 %2672, %v4303_v14   ;;  %v1659_v14 = vperm.slane %v1555_v44, %v4151_v43  ;;  %v1769_v43 = vpop.permute.xlu2 %1768  ;;  %v1896_v44 = vsel %vm1864_vm3, %v2904_v35, 0.0 }
 0x6a2   : > { %vm1876_vm11 = vcmp.eq.s32.totalorder %v4840_v58, %v1769_v43 }
 0x6a3   : > { %v1660_v37 = vsel %vm4845_vm9, %v1659_v14, %v4337_v36 }
 0x6a9   : > { %2674 = vset.pattern.permute.xlu1 %v1675_v12  ;;  %v1787_v50 = vpop.permute.xlu2 %1786  ;;  %v2902_v12 = vld [vmem:[%s3176_s12 + $0x8] sm:$0xff] }
 0x6aa   : > { %vm1879_vm6 = vcmp.eq.s32.totalorder %v4840_v58, %v1787_v50 }
 0x6ab   : > { %v1566_v40 = vpop.xlane.xlu1 %1565  ;;  %v1911_v36 = vsel %vm1879_vm6, %v4182_v39, 0.0  ;;  %v1893_v39 = vsel %vm1861_vm2, %v2902_v12, 0.0  ;;  %vm1869_vm2 = vcmp.eq.s32.totalorder %v4840_v58, %v4374_v24 }
 0x6ac   : > { %v1567_v54 = vcvt.f32.s32 %v1566_v40  ;;  %v1981_v13 = vsel %vm544_vm1, %v1911_v36, 0.0  ;;  %v1927_v48 = vsel %vm544_vm1, %v1893_v39, 0.0  ;;  %v1895_v40 = vsel %vm1863_vm4, %v2905_v23, 0.0  ;;  %v2909_v36 = vld [vmem:[%s3176_s12 + $0x40] sm:$0xff]  ;;  %v2910_v39 = vld [vmem:[%s3176_s12 + $0x48] sm:$0xff] }
 0x6ad   : > { %1928 = vadd.xlane.f32.xlu0 %v1927_v48  ;;  %v1933_v5 = vsel %vm544_vm1, %v1895_v40, 0.0  ;;  %v1901_v48 = vsel %vm1869_vm2, %v2910_v39, 0.0  ;;  %v2914_v40 = vld [vmem:[%s3176_s12 + $0x68] sm:$0xff] }
 0x6ae   : > { %v1570_v2 = vadd.s32 %v1569_v8, %v1567_v54  ;;  %v4423_v38 = vpop.permute.xlu0 %1719 }
 0x6af   : > { %vm1868_vm6 = vcmp.eq.s32.totalorder %v4840_v58, %v4423_v38 }
 0x6b0   : > { %v1661_v4 = vperm.slane %v1570_v2, %v4178_v11 }
 0x6b1   : > { %1774 = vperm.xlu1 %2674, %v4339_v19  }
 0x6b2   : > { %v1662_v29 = vsel %vm4846_vm10, %v1661_v4, %v1660_v37 }
 0x6b3   : > { %v1664_v1 = vsel %vm4847_vm14, %v1662_v29, %v4188_v20  ;;  %v1799_v8 = vpop.permute.xlu2 %1798  ;;  %v2906_v29 = vld [vmem:[%s3176_s12 + $0x38] sm:$0xff]  ;;  %vm1866_vm14 = vcmp.eq.s32.totalorder %v4840_v58, %v4369_v53 }
 0x6b4   : > { %1665 = vst [vmem:[%s3180_s14] sm:$0x3] %v1664_v1  ;;  %vm1881_vm13 = vcmp.eq.s32.totalorder %v4840_v58, %v1799_v8 }
 0x6b5   : > { %v1913_v2 = vsel %vm1881_vm13, %v4201_v62, 0.0 }
 0x6b6   : > { %v1987_v28 = vsel %vm544_vm1, %v1913_v2, 0.0 }
 0x6b9   : > { %2677 = vset.pattern.permute.xlu1 %v4309_v15  ;;  %v2900_v15 = vld [vmem:[%s3176_s12 + $0x80] sm:$0xff] }
 0x6ba   : > { %v1908_v45 = vsel %vm1876_vm11, %v2900_v15, 0.0 }
 0x6bb   : > { %v1972_v32 = vsel %vm544_vm1, %v1908_v45, 0.0  ;;  %v2907_v45 = vld [vmem:[%s3176_s12 + $0x30] sm:$0xff] }
 0x6bc   : > { %v1898_v50 = vsel %vm1866_vm14, %v2907_v45, 0.0 }
 0x6bd   : > { %v1942_v53 = vsel %vm544_vm1, %v1898_v50, 0.0 }
 0x6be   : > { %v4431_v33 = vpop.permute.xlu0 %1749 }
 0x6c1   : > { %1792 = vperm.xlu1 %2677, %v4339_v19  }
 0x6c3   : > { %v1684_v11 = vpop.permute.xlu1 %1683  ;;  %v1817_v62 = vpop.permute.xlu2 %1816 }
 0x6c4   : > { %vm1862_vm15 = vcmp.eq.s32.totalorder %v4840_v58, %v1684_v11  ;;  %vm1884_vm10 = vcmp.eq.s32.totalorder %v4840_v58, %v1817_v62 }
 0x6c5   : > { %v1894_v63 = vsel %vm1862_vm15, %v2899_v16, 0.0  ;;  %v1916_v16 = vsel %vm1884_vm10, %v4213_v60, 0.0 }
 0x6c6   : > { %v1930_v20 = vsel %vm544_vm1, %v1894_v63, 0.0  ;;  %v1996_v15 = vsel %vm544_vm1, %v1916_v16, 0.0 }
 0x6c7   : > { %1931 = vadd.xlane.f32.xlu2 %v1930_v20 }
 0x6c9   : > { %2679 = vset.pattern.permute.xlu1 %v4314_v41  ;;  %v2901_v41 = vld [vmem:[%s3176_s12 + $0x28] sm:$0xff] }
 0x6ce   : > { %v1781_v54 = vpop.permute.xlu0 %1780 }
 0x6cf   : > { %1973 = vadd.xlane.f32.xlu2 %v1972_v32  ;;  %vm1878_vm8 = vcmp.eq.s32.totalorder %v4840_v58, %v1781_v54 }
 0x6d0   : > { %v1910_v14 = vsel %vm1878_vm8, %v4131_v34, 0.0 }
 0x6d1   : > { %1804 = vperm.xlu1 %2679, %v4339_v19   ;;  %v1978_v4 = vsel %vm544_vm1, %v1910_v14, 0.0 }
 0x6d3   : > { %v1702_v10 = vpop.permute.xlu1 %1701 }
 0x6d4   : > { %vm1865_vm0 = vcmp.eq.s32.totalorder %v4840_v58, %v1702_v10 }
 0x6d5   : > { %v1897_v25 = vsel %vm1865_vm0, %v2901_v41, 0.0 }
 0x6d6   : > { %v1939_v59 = vsel %vm544_vm1, %v1897_v25, 0.0 }
 0x6d7   : > { %1982 = vadd.xlane.f32.xlu2 %v1981_v13  ;;  %v1900_v13 = vsel %vm1868_vm6, %v2909_v36, 0.0  ;;  %vm4849_vm6 = vcmask 1024  }
 0x6d8   : > { %v1948_v25 = vsel %vm544_vm1, %v1900_v13, 0.0 }
 0x6d9   : > { %2682 = vset.pattern.permute.xlu1 %v4319_v3 }
 0x6de   : > { %v1811_v60 = vpop.permute.xlu0 %1810 }
 0x6df   : > { %1940 = vadd.xlane.f32.xlu2 %v1939_v59  ;;  %vm1883_vm0 = vcmp.eq.s32.totalorder %v4840_v58, %v1811_v60 }
 0x6e0   : > { %v1915_v10 = vsel %vm1883_vm0, %v4220_v52, 0.0 }
 0x6e1   : > { %1822 = vperm.xlu1 %2682, %v4339_v19   ;;  %v1993_v59 = vsel %vm544_vm1, %v1915_v10, 0.0 }
 0x6e3   : > { %v1714_v3 = vpop.permute.xlu1 %1713 }
 0x6e4   : > { %vm1867_vm5 = vcmp.eq.s32.totalorder %v4840_v58, %v1714_v3  ;;  %v1951_v3 = vsel %vm544_vm1, %v1901_v48, 0.0 }
 0x6e5   : > { %v1899_v1 = vsel %vm1867_vm5, %v2906_v29, 0.0  ;;  %vm1874_vm5 = vcmp.eq.s32.totalorder %v4840_v58, %v4389_v26 }
 0x6e6   : > { %v1945_v43 = vsel %vm544_vm1, %v1899_v1, 0.0 }
 0x6e9   : > { %2684 = vset.pattern.permute.xlu1 %v4324_v56 }
 0x6f1   : > { %1834 = vperm.xlu1 %2684, %v4339_v19  }
 0x6f3   : > { %v4417_v21 = vpop.permute.xlu1 %1731 }
 0x6f4   : > { %vm1870_vm11 = vcmp.eq.s32.totalorder %v4840_v58, %v4417_v21  ;;  %v2911_v21 = vld [vmem:[%s3176_s12 + $0x58] sm:$0xff] }
 0x6f9   : > { %2687 = vset.pattern.permute.xlu1 %v4329_v46 }
 0x701   : > { %1852 = vperm.xlu1 %2687, %v4339_v19   ;;  %v2903_v19 = vld [vmem:[%s3176_s12] sm:$0xff] }
 0x702   : > { %v1892_v57 = vsel %vm1860_vm7, %v2903_v19, 0.0 }
 0x703   : > { %v4419_v18 = vpop.permute.xlu1 %1743  ;;  %v1924_v31 = vsel %vm544_vm1, %v1892_v57, 0.0 }
 0x704   : > { %vm1872_vm13 = vcmp.eq.s32.totalorder %v4840_v58, %v4419_v18 }
 0x713   : > { %v4421_v9 = vpop.permute.xlu1 %1761 }
 0x723   : > { %v1775_v7 = vpop.permute.xlu1 %1774 }
 0x724   : > { %vm1877_vm12 = vcmp.eq.s32.totalorder %v4840_v58, %v1775_v7  ;;  %v1829_v7 = vpop.permute.xlu2 %1828 }
 0x725   : > { %v1909_v56 = vsel %vm1877_vm12, %v4159_v27, 0.0  ;;  %v1936_v27 = vsel %vm544_vm1, %v1896_v44, 0.0  ;;  %vm1871_vm12 = vcmp.eq.s32.totalorder %v4840_v58, %v4377_v22  ;;  %vm1886_vm3 = vcmp.eq.s32.totalorder %v4840_v58, %v1829_v7  ;;  %v2912_v44 = vld [vmem:[%s3176_s12 + $0x60] sm:$0xff] }
 0x726   : > { %v1975_v46 = vsel %vm544_vm1, %v1909_v56, 0.0  ;;  %v1903_v38 = vsel %vm1871_vm12, %v2911_v21, 0.0  ;;  %v1841_v56 = vpop.permute.xlu0 %1840  ;;  %v1918_v24 = vsel %vm1886_vm3, %v4231_v47, 0.0 }
 0x727   : > { %1976 = vadd.xlane.f32.xlu0 %v1975_v46  ;;  %vm1888_vm4 = vcmp.eq.s32.totalorder %v4840_v58, %v1841_v56  ;;  %v2002_v22 = vsel %vm544_vm1, %v1918_v24, 0.0 }
 0x728   : > { %v1920_v46 = vsel %vm1888_vm4, %v4249_v55, 0.0  ;;  %v1904_v55 = vsel %vm1872_vm13, %v2912_v44, 0.0 }
 0x729   : > { %v2008_v57 = vsel %vm544_vm1, %v1920_v46, 0.0  ;;  %v1960_v18 = vsel %vm544_vm1, %v1904_v55, 0.0 }
 0x72b   : > { %1925 = vadd.xlane.f32.xlu1 %v1924_v31 }
 0x72c   : > { %v1847_v31 = vpop.permute.xlu2 %1846 }
 0x72d   : > { %vm1889_vm10 = vcmp.eq.s32.totalorder %v4840_v58, %v1847_v31 }
 0x72f   : > { %1937 = vadd.xlane.f32.xlu0 %v1936_v27  ;;  %v2913_v27 = vld [vmem:[%s3176_s12 + $0x70] sm:$0xff] }
 0x730   : > { %v1906_v23 = vsel %vm1874_vm5, %v2913_v27, 0.0 }
 0x731   : > { %v1966_v54 = vsel %vm544_vm1, %v1906_v23, 0.0 }
 0x733   : > { %1934 = vadd.xlane.f32.xlu1 %v1933_v5  ;;  %v1793_v37 = vpop.permute.xlu1 %1792  ;;  %v1921_v5 = vsel %vm1889_vm10, %v4274_v49, 0.0 }
 0x734   : > { %vm1880_vm9 = vcmp.eq.s32.totalorder %v4840_v58, %v1793_v37  ;;  %v1859_v26 = vpop.permute.xlu2 %1858  ;;  %v2915_v37 = vld [vmem:[%s3176_s12 + $0x78] sm:$0xff] }
 0x735   : > { %v1912_v11 = vsel %vm1880_vm9, %v4172_v61, 0.0  ;;  %vm1873_vm9 = vcmp.eq.s32.totalorder %v4840_v58, %v4431_v33  ;;  %vm1891_vm14 = vcmp.eq.s32.totalorder %v4840_v58, %v1859_v26  ;;  %v2011_v33 = vsel %vm544_vm1, %v1921_v5, 0.0 }
 0x736   : > { %v1984_v34 = vsel %vm544_vm1, %v1912_v11, 0.0  ;;  %v1905_v8 = vsel %vm1873_vm9, %v2914_v40, 0.0  ;;  %v1923_v2 = vsel %vm1891_vm14, %v4292_v51, 0.0 }
 0x737   : > { %1988 = vadd.xlane.f32.xlu0 %v1987_v28 }
 0x73b   : > { %1979 = vadd.xlane.f32.xlu1 %v1978_v4  ;;  %v2017_v4 = vsel %vm544_vm1, %v1923_v2, 0.0 }
 0x73c   : > { %v1932_v51 = vpop.xlane.xlu2 %1931 }
 0x73f   : > { %1946 = vadd.xlane.f32.xlu0 %v1945_v43  ;;  %v1929_v43 = vpop.xlane.xlu0 %1928 }
 0x743   : > { %v1805_v63 = vpop.permute.xlu1 %1804  ;;  %1985 = vadd.xlane.f32.xlu1 %v1984_v34 }
 0x744   : > { %vm1882_vm15 = vcmp.eq.s32.totalorder %v4840_v58, %v1805_v63  ;;  %v1974_v62 = vpop.xlane.xlu2 %1973 }
 0x745   : > { %v1914_v20 = vsel %vm1882_vm15, %v4194_v0, 0.0  ;;  %v2908_v0 = vld [vmem:[%s3176_s12 + $0x50] sm:$0xff]  ;;  %vm1875_vm15 = vcmp.eq.s32.totalorder %v4840_v58, %v4421_v9 }
 0x746   : > { %v1990_v61 = vsel %vm544_vm1, %v1914_v20, 0.0  ;;  %v1902_v32 = vsel %vm1870_vm11, %v2908_v0, 0.0  ;;  %v1907_v29 = vsel %vm1875_vm15, %v2915_v37, 0.0 }
 0x747   : > { %1991 = vadd.xlane.f32.xlu2 %v1990_v61  ;;  %1997 = vadd.xlane.f32.xlu0 %v1996_v15  ;;  %v1954_v41 = vsel %vm544_vm1, %v1902_v32, 0.0  ;;  %v1969_v1 = vsel %vm544_vm1, %v1907_v29, 0.0 }
 0x74b   : > { %1943 = vadd.xlane.f32.xlu1 %v1942_v53 }
 0x74f   : > { %1955 = vadd.xlane.f32.xlu0 %v1954_v41  ;;  %1949 = vadd.xlane.f32.xlu2 %v1948_v25 }
 0x753   : > { %v1823_v30 = vpop.permute.xlu1 %1822  ;;  %1994 = vadd.xlane.f32.xlu1 %v1993_v59 }
 0x754   : > { %vm1885_vm7 = vcmp.eq.s32.totalorder %v4840_v58, %v1823_v30 }
 0x755   : > { %v1917_v12 = vsel %vm1885_vm7, %v4238_v42, 0.0  ;;  %v1957_v42 = vsel %vm544_vm1, %v1903_v38, 0.0 }
 0x756   : > { %v1999_v52 = vsel %vm544_vm1, %v1917_v12, 0.0 }
 0x757   : > { %2000 = vadd.xlane.f32.xlu2 %v1999_v52 }
 0x75b   : > { %1952 = vadd.xlane.f32.xlu1 %v1951_v3 }
 0x75f   : > { %1958 = vadd.xlane.f32.xlu2 %v1957_v42 }
 0x763   : > { %v1835_v19 = vpop.permute.xlu1 %1834  ;;  %2003 = vadd.xlane.f32.xlu1 %v2002_v22 }
 0x764   : > { %vm1887_vm8 = vcmp.eq.s32.totalorder %v4840_v58, %v1835_v19 }
 0x765   : > { %v1919_v35 = vsel %vm1887_vm8, %v4256_v17, 0.0  ;;  %v1963_v17 = vsel %vm544_vm1, %v1905_v8, 0.0 }
 0x766   : > { %v2005_v47 = vsel %vm544_vm1, %v1919_v35, 0.0 }
 0x767   : > { %2006 = vadd.xlane.f32.xlu0 %v2005_v47  ;;  %2009 = vadd.xlane.f32.xlu2 %v2008_v57 }
 0x76b   : > { %1961 = vadd.xlane.f32.xlu1 %v1960_v18 }
 0x76f   : > { %1964 = vadd.xlane.f32.xlu0 %v1963_v17  ;;  %1967 = vadd.xlane.f32.xlu2 %v1966_v54 }
 0x773   : > { %v1853_v14 = vpop.permute.xlu1 %1852  ;;  %2012 = vadd.xlane.f32.xlu1 %v2011_v33 }
 0x774   : > { %vm1890_vm11 = vcmp.eq.s32.totalorder %v4840_v58, %v1853_v14  ;;  %v1983_v58 = vpop.xlane.xlu2 %1982 }
 0x775   : > { %v1922_v28 = vsel %vm1890_vm11, %v4267_v6, 0.0 }
 0x776   : > { %v2014_v49 = vsel %vm544_vm1, %v1922_v28, 0.0  ;;  %vm4848_vm1 = vcmask 1041409  }
 0x777   : > { %2015 = vadd.xlane.f32.xlu0 %v2014_v49  ;;  %2018 = vadd.xlane.f32.xlu2 %v2017_v4 }
 0x77b   : > { %1970 = vadd.xlane.f32.xlu1 %v1969_v1 }
 0x77c   : > { %v1941_v63 = vpop.xlane.xlu2 %1940 }
 0x79a   : > { %v1977_v9 = vpop.xlane.xlu0 %1976 }
 0x79b   : > { %v2092_v0 = vadd.f32 %v1977_v9, %v1974_v62 }
 0x79e   : > { %v1926_v11 = vpop.xlane.xlu1 %1925 }
 0x79f   : > { %v2071_v53 = vadd.f32 %v1929_v43, %v1926_v11 }
 0x7a1   : > { %v2072_v36 = vadd.f32 %v2071_v53, %v1932_v51 }
 0x7a2   : > { %v1938_v16 = vpop.xlane.xlu0 %1937 }
 0x7a6   : > { %v1935_v34 = vpop.xlane.xlu1 %1934 }
 0x7a7   : > { %v2073_v41 = vadd.f32 %v2072_v36, %v1935_v34 }
 0x7a9   : > { %v2074_v30 = vadd.f32 %v2073_v41, %v1938_v16 }
 0x7aa   : > { %v1989_v20 = vpop.xlane.xlu0 %1988 }
 0x7ab   : > { %v2075_v48 = vadd.f32 %v2074_v30, %v1941_v63  ;;  %v2070_v63 = vld [vmem:[%s4654_s2] sm:$0x3] }
 0x7ae   : > { %v1980_v6 = vpop.xlane.xlu1 %1979 }
 0x7af   : > { %v2093_v13 = vadd.f32 %v2092_v0, %v1980_v6 }
 0x7b1   : > { %v2094_v59 = vadd.f32 %v2093_v13, %v1983_v58 }
 0x7b2   : > { %v1947_v45 = vpop.xlane.xlu0 %1946 }
 0x7b6   : > { %v1986_v61 = vpop.xlane.xlu1 %1985 }
 0x7b7   : > { %v2095_v12 = vadd.f32 %v2094_v59, %v1986_v61 }
 0x7b9   : > { %v2096_v39 = vadd.f32 %v2095_v12, %v1989_v20 }
 0x7ba   : > { %v1992_v15 = vpop.xlane.xlu2 %1991  ;;  %v1998_v10 = vpop.xlane.xlu0 %1997 }
 0x7bb   : > { %v2097_v7 = vadd.f32 %v2096_v39, %v1992_v15 }
 0x7be   : > { %v1944_v50 = vpop.xlane.xlu1 %1943 }
 0x7bf   : > { %v2076_v38 = vadd.f32 %v2075_v48, %v1944_v50 }
 0x7c1   : > { %v2077_v42 = vadd.f32 %v2076_v38, %v1947_v45 }
 0x7c2   : > { %v1950_v60 = vpop.xlane.xlu2 %1949  ;;  %v1956_v3 = vpop.xlane.xlu0 %1955 }
 0x7c3   : > { %v2078_v19 = vadd.f32 %v2077_v42, %v1950_v60 }
 0x7c6   : > { %v1995_v32 = vpop.xlane.xlu1 %1994 }
 0x7c7   : > { %v2098_v24 = vadd.f32 %v2097_v7, %v1995_v32 }
 0x7c9   : > { %v2099_v57 = vadd.f32 %v2098_v24, %v1998_v10 }
 0x7ca   : > { %v2001_v25 = vpop.xlane.xlu2 %2000 }
 0x7cb   : > { %v2100_v47 = vadd.f32 %v2099_v57, %v2001_v25 }
 0x7ce   : > { %v1953_v52 = vpop.xlane.xlu1 %1952 }
 0x7cf   : > { %v2079_v31 = vadd.f32 %v2078_v19, %v1953_v52 }
 0x7d1   : > { %v2080_v44 = vadd.f32 %v2079_v31, %v1956_v3 }
 0x7d2   : > { %v1959_v21 = vpop.xlane.xlu2 %1958 }
 0x7d3   : > { %v2081_v40 = vadd.f32 %v2080_v44, %v1959_v21 }
 0x7d6   : > { %v2004_v56 = vpop.xlane.xlu1 %2003 }
 0x7d7   : > { %v2101_v55 = vadd.f32 %v2100_v47, %v2004_v56 }
 0x7da   : > { %v2010_v46 = vpop.xlane.xlu2 %2009  ;;  %v2007_v22 = vpop.xlane.xlu0 %2006 }
 0x7db   : > { %v2102_v23 = vadd.f32 %v2101_v55, %v2007_v22 }
 0x7dd   : > { %v2103_v54 = vadd.f32 %v2102_v23, %v2010_v46 }
 0x7de   : > { %v1962_v35 = vpop.xlane.xlu1 %1961 }
 0x7df   : > { %v2082_v17 = vadd.f32 %v2081_v40, %v1962_v35 }
 0x7e2   : > { %v1968_v18 = vpop.xlane.xlu2 %1967  ;;  %v1965_v27 = vpop.xlane.xlu0 %1964 }
 0x7e3   : > { %v2083_v5 = vadd.f32 %v2082_v17, %v1965_v27 }
 0x7e5   : > { %v2084_v49 = vadd.f32 %v2083_v5, %v1968_v18 }
 0x7e6   : > { %v2013_v8 = vpop.xlane.xlu1 %2012 }
 0x7e7   : > { %v2104_v26 = vadd.f32 %v2103_v54, %v2013_v8 }
 0x7ea   : > { %v2016_v33 = vpop.xlane.xlu0 %2015  ;;  %v2019_v14 = vpop.xlane.xlu2 %2018 }
 0x7eb   : > { %v2105_v2 = vadd.f32 %v2104_v26, %v2016_v33 }
 0x7ed   : > { %v2106_v28 = vadd.f32 %v2105_v2, %v2019_v14 }
 0x7ee   : > { %v1971_v4 = vpop.xlane.xlu1 %1970 }
 0x7ef   : > { %v2107_v37 = vrot.slane %v2106_v28, 4  ;;  %v2085_v29 = vadd.f32 %v2084_v49, %v1971_v4 }
 0x7f1   : > { %v2108_v1 = vadd.f32 %v2107_v37, %v2106_v28  ;;  %v2086_v51 = vrot.slane %v2085_v29, 4 }
 0x7f3   : > { %v2109_v43 = vrot.slane %v2108_v1, 2  ;;  %v2087_v62 = vadd.f32 %v2086_v51, %v2085_v29 }
 0x7f5   : > { %v2110_v11 = vadd.f32 %v2109_v43, %v2108_v1  ;;  %v2088_v9 = vrot.slane %v2087_v62, 2 }
 0x7f7   : > { %v2111_v34 = vrot.slane %v2110_v11, 1  ;;  %v2089_v58 = vadd.f32 %v2088_v9, %v2087_v62 }
 0x7f9   : > { %v2090_v16 = vrot.slane %v2089_v58, 1  ;;  %v2112_v6 = vadd.f32 %v2111_v34, %v2110_v11 }
 0x7fb   : > { %v2091_v20 = vadd.f32 %v2090_v16, %v2089_v58 }
 0x7fc   : > { %2171 = sbr.rel (%p2588_p2) target bundleno = 2059 (0x80b), region = 74 }
 0x7fd   : > { %v2115_v61 = vsel %vm4848_vm1, %v2112_v6, %v2091_v20 }
 0x7fe   : > { %v2117_v15 = vadd.f32 %v2115_v61, %v2070_v63 }
 0x800   : > { %2118 = vst.msk [vmem:[%s4654_s2] sm:$0x3] %vm4849_vm6, %v2117_v15 }
 0x801   : > { %v2173_v50 = vld [vmem:[%s4655_s3] sm:$0x3]  ;;  %vm4850_vm0 = vcmask 1024  }
 0x807   : > { %v2172_v45 = vld [vmem:[%s4654_s2] sm:$0x3] }
 0x808   : > { %v2174_v60 = vsub.f32 %v2172_v45, %v2173_v50 }
 0x80a   : > { %2175 = vst.msk [vmem:[%s4654_s2] sm:$0x3] %vm4850_vm0, %v2174_v60 }
 0x80b PF: > { %s2193_s28 = scalar_lea.sflag [#allocation5], %s3165_s18  ;;  %2208 = sbr.rel (!%p3071_p5) target bundleno = 2094 (0x82e), region = 90  ;;  %v2305_v53 = vld [vmem:[%s3178_s13] sm:$0xff] (%p3071_p5)  ;;  %v2307_v0 = vld [vmem:[%s3178_s13 + $0x8] sm:$0xff] (%p3071_p5)  ;;  %v2309_v32 = vld [vmem:[%s3178_s13 + $0x10] sm:$0xff] (%p3071_p5) }
 0x80c   : > { %s2600_s11 = sshll.u32 (%p3071_p5), %s2986_s24, 7  ;;  %v2311_v36 = vld [vmem:[%s3178_s13 + $0x18] sm:$0xff] (%p3071_p5)  ;;  %v2313_v13 = vld [vmem:[%s3178_s13 + $0x20] sm:$0xff] (%p3071_p5)  ;;  %v2315_v10 = vld [vmem:[%s3178_s13 + $0x28] sm:$0xff] (%p3071_p5) }
 0x80d   : > { %s4548_s19 = scalar_lea.vmem (%p3071_p5), %s4657_s5, %s2600_s11  ;;  %v2317_v41 = vld [vmem:[%s3178_s13 + $0x30] sm:$0xff] (%p3071_p5)  ;;  %v2319_v25 = vld [vmem:[%s3178_s13 + $0x38] sm:$0xff] (%p3071_p5)  ;;  %v2321_v59 = vld [vmem:[%s3178_s13 + $0x40] sm:$0xff] (%p3071_p5) }
 0x80e   : > { %2306 = vst [vmem:[%s4548_s19] sm:$0xff] (%p3071_p5), %v2305_v53  ;;  %v2323_v30 = vld [vmem:[%s3178_s13 + $0x48] sm:$0xff] (%p3071_p5)  ;;  %v2325_v12 = vld [vmem:[%s3178_s13 + $0x50] sm:$0xff] (%p3071_p5)  ;;  %v2327_v52 = vld [vmem:[%s3178_s13 + $0x58] sm:$0xff] (%p3071_p5) }
 0x80f   : > { %2308 = vst [vmem:[%s4548_s19 + $0x8] sm:$0xff] (%p3071_p5), %v2307_v0  ;;  %v2329_v39 = vld [vmem:[%s3178_s13 + $0x60] sm:$0xff] (%p3071_p5)  ;;  %v2331_v48 = vld [vmem:[%s3178_s13 + $0x68] sm:$0xff] (%p3071_p5)  ;;  %v2333_v3 = vld [vmem:[%s3178_s13 + $0x70] sm:$0xff] (%p3071_p5) }
 0x810   : > { %2310 = vst [vmem:[%s4548_s19 + $0x10] sm:$0xff] %v2309_v32  ;;  %v2335_v21 = vld [vmem:[%s3178_s13 + $0x78] sm:$0xff]  ;;  %v2337_v38 = vld [vmem:[%s3178_s13 + $0x80] sm:$0xff]  ;;  %v2339_v7 = vld [vmem:[%s3178_s13 + $0x88] sm:$0xff] }
 0x811   : > { %2312 = vst [vmem:[%s4548_s19 + $0x18] sm:$0xff] %v2311_v36  ;;  %v2341_v56 = vld [vmem:[%s3178_s13 + $0x90] sm:$0xff]  ;;  %v2343_v42 = vld [vmem:[%s3178_s13 + $0x98] sm:$0xff]  ;;  %v2345_v24 = vld [vmem:[%s3178_s13 + $0xa0] sm:$0xff] }
 0x812   : > { %2314 = vst [vmem:[%s4548_s19 + $0x20] sm:$0xff] %v2313_v13  ;;  %v2347_v46 = vld [vmem:[%s3178_s13 + $0xa8] sm:$0xff]  ;;  %v2349_v22 = vld [vmem:[%s3178_s13 + $0xb0] sm:$0xff]  ;;  %v2351_v19 = vld [vmem:[%s3178_s13 + $0xb8] sm:$0xff] }
 0x813   : > { %2316 = vst [vmem:[%s4548_s19 + $0x28] sm:$0xff] %v2315_v10  ;;  %v2353_v57 = vld [vmem:[%s3178_s13 + $0xc0] sm:$0xff]  ;;  %v2355_v31 = vld [vmem:[%s3178_s13 + $0xc8] sm:$0xff]  ;;  %v2357_v35 = vld [vmem:[%s3178_s13 + $0xd0] sm:$0xff] }
 0x814   : > { %2318 = vst [vmem:[%s4548_s19 + $0x30] sm:$0xff] %v2317_v41  ;;  %v2359_v47 = vld [vmem:[%s3178_s13 + $0xd8] sm:$0xff]  ;;  %v2361_v44 = vld [vmem:[%s3178_s13 + $0xe0] sm:$0xff]  ;;  %v2363_v55 = vld [vmem:[%s3178_s13 + $0xe8] sm:$0xff] }
 0x815   : > { %2320 = vst [vmem:[%s4548_s19 + $0x38] sm:$0xff] %v2319_v25  ;;  %v2365_v18 = vld [vmem:[%s3178_s13 + $0xf0] sm:$0xff]  ;;  %v2367_v27 = vld [vmem:[%s3178_s13 + $0xf8] sm:$0xff] }
 0x816   : > { %2322 = vst [vmem:[%s4548_s19 + $0x40] sm:$0xff] %v2321_v59 }
 0x817   : > { %2324 = vst [vmem:[%s4548_s19 + $0x48] sm:$0xff] %v2323_v30 }
 0x818   : > { %2326 = vst [vmem:[%s4548_s19 + $0x50] sm:$0xff] %v2325_v12 }
 0x819   : > { %2328 = vst [vmem:[%s4548_s19 + $0x58] sm:$0xff] %v2327_v52 }
 0x81a   : > { %2330 = vst [vmem:[%s4548_s19 + $0x60] sm:$0xff] %v2329_v39 }
 0x81b   : > { %2332 = vst [vmem:[%s4548_s19 + $0x68] sm:$0xff] %v2331_v48 }
 0x81c   : > { %2334 = vst [vmem:[%s4548_s19 + $0x70] sm:$0xff] %v2333_v3 }
 0x81d   : > { %2336 = vst [vmem:[%s4548_s19 + $0x78] sm:$0xff] %v2335_v21 }
 0x81e   : > { %2338 = vst [vmem:[%s4548_s19 + $0x100] sm:$0xff] %v2337_v38 }
 0x81f   : > { %2340 = vst [vmem:[%s4548_s19 + $0x108] sm:$0xff] %v2339_v7 }
 0x820   : > { %2342 = vst [vmem:[%s4548_s19 + $0x110] sm:$0xff] %v2341_v56 }
 0x821   : > { %2344 = vst [vmem:[%s4548_s19 + $0x118] sm:$0xff] %v2343_v42 }
 0x822   : > { %2346 = vst [vmem:[%s4548_s19 + $0x120] sm:$0xff] %v2345_v24 }
 0x823   : > { %2348 = vst [vmem:[%s4548_s19 + $0x128] sm:$0xff] %v2347_v46 }
 0x824   : > { %2350 = vst [vmem:[%s4548_s19 + $0x130] sm:$0xff] %v2349_v22 }
 0x825   : > { %2352 = vst [vmem:[%s4548_s19 + $0x138] sm:$0xff] %v2351_v19 }
 0x826   : > { %2354 = vst [vmem:[%s4548_s19 + $0x140] sm:$0xff] %v2353_v57 }
 0x827   : > { %2356 = vst [vmem:[%s4548_s19 + $0x148] sm:$0xff] %v2355_v31 }
 0x828   : > { %2358 = vst [vmem:[%s4548_s19 + $0x150] sm:$0xff] %v2357_v35 }
 0x829   : > { %2360 = vst [vmem:[%s4548_s19 + $0x158] sm:$0xff] %v2359_v47 }
 0x82a   : > { %2362 = vst [vmem:[%s4548_s19 + $0x160] sm:$0xff] %v2361_v44 }
 0x82b   : > { %2364 = vst [vmem:[%s4548_s19 + $0x168] sm:$0xff] %v2363_v55 }
 0x82c   : > { %2366 = vst [vmem:[%s4548_s19 + $0x170] sm:$0xff] %v2365_v18 }
 0x82d   : > { %2368 = vst [vmem:[%s4548_s19 + $0x178] sm:$0xff] %v2367_v27 }
 0x82e PF: > { %s2593_s20 = sshll.u32 %s2986_s24, 1  ;;  %s2382_s8 = sshll.u32 %s3180_s14, 4  ;;  %s2383_s8 = int_to_ptr.vmem [resolvable:$true] %s2382_s8 }
 0x82f   : > { %s2380_s17 = scalar_lea.hbm %s4658_s6, %s2593_s20  ;;  %s2936_s19 = scalar_lea.hbm %s4658_s6, 4 }
 0x830   : > { %s2384_s27 = sshll.u32 %s2380_s17, 4  ;;  %s2385_s27 = int_to_ptr.hbm [resolvable:$true] %s2384_s27 }
 0x831   : > { %s2930_s11 = sshra.s32 %s2385_s27, 4  ;;  %s2931_s11 = int_to_ptr.hbm [resolvable:$true] %s2930_s11 }
 0x832   : > { %s2932_s12 = scalar_lea.hbm %s2931_s11, 2  ;;  %p2937_p7 = scmp.lt.s32.totalorder %s2931_s11, %s4658_s6 }
 0x833   : > { %p2933_p3 = scmp.ne.s32.totalorder %s2931_s11, %s2932_s12  ;;  %p2938_p8 = scmp.lt.s32.totalorder %s2936_s19, %s2932_s12 }
 0x835   : > { %p2934_p4 = pnand %p2933_p3, %p3071_p5  ;;  %p2939_p11 = por %p2938_p8, %p2937_p7 }
 0x837   : > { %p2935_p6 = pneg %p2934_p4 }
 0x839   : > { %p2940_p12 = pnand %p2939_p11, %p2935_p6 }
 0x83b   : > { %2943 = shalt.err (!%p2940_p12)
}
 0x83c   : > { %2601 = dma.vmem_to_hbm [thread:$0]  (%p3071_p5), %s2383_s8, 32, %s2385_s27, %s2193_s28  }
 0x83d PF: > { %s2424_s20 = sand.u32 1, %s2974_s21   ;;  %p2604_p13 = pnand %p2578_p10, %p3082_p9 }
 0x83e   : > { %s2425_s15 = scalar_lea.sflag [#allocation5], %s2424_s20 }
 0x83f   : > { %p2605_p0 = pneg %p2604_p13 }
 0x841   : > { %2969 = dma.done.wait (%p2605_p0), %s2425_s15, 32  }
 0x842   : > { %2971 = vsyncadd (%p2605_p0), %s2425_s15, 4294967264  ;;  %s20_s26 = sadd.s32 1, %s2994_s26   ;;  %s4851_s21 = smov %s2978_s22 }
 0x843   : > { %p17_p1 = scmp.ge.s32.totalorder %s20_s26, 4   ;;  %s4852_s22 = smov %s2982_s23 }
 0x844   : > { %s4853_s23 = smov %s3080_s9  ;;  %s4854_s24 = smov %s2990_s25 }
 0x845   : > { %s4855_s25 = smov %s4857_s29  ;;  %19 = sbr.rel (!%p17_p1) target bundleno = 4 (0x4), region = 203 }
 0x84a   :  { %2431 = vsyncpa [#allocation5], 1 }
 0x84b   :  { %2433 = vsyncpa [#allocation5 + $0x1], 1 }

</bundles_post_ra>
